<compile_context>
chip_gen: v5e
topology: v5e:2x2
jax: 0.10.0
libtpu: 0.0.40
codegen_flags: <defaults>
</compile_context>

<pallas_src>
import functools

import jax
import jax.numpy as jnp
from jax.experimental import pallas as pl
from jax.experimental.pallas import tpu as pltpu

IN_DIM = 636
HID = 512
OUT_DIM = 232

# Lane-aligned (multiple-of-128) padded feature dims -> unmasked loads/stores.
IN_PAD = 640    # 636 -> 640
OUT_PAD = 256   # 232 -> 256


def _round_up(n, m):
    return ((n + m - 1) // m) * m


def _mlp_kernel(x_ref,
                w1, b1, w2, b2, w3, b3, w4, b4, w5, b5, w6, b6,
                o_ref):
    """Whole 6-layer forward pass for one batch tile, entirely in VMEM.

    All six matmuls hit the MXU with f32 accumulation; ReLU is a VPU max.
    """
    h = x_ref[...]

    def dense_relu(h, w_ref, b_ref):
        y = jnp.dot(h, w_ref[...], preferred_element_type=jnp.float32) + b_ref[...]
        return jnp.maximum(y, 0.0)

    h = dense_relu(h, w1, b1)
    h = dense_relu(h, w2, b2)
    h = dense_relu(h, w3, b3)
    h = dense_relu(h, w4, b4)
    h = dense_relu(h, w5, b5)
    # final layer: no activation
    y = jnp.dot(h, w6[...], preferred_element_type=jnp.float32) + b6[...]
    o_ref[...] = y.astype(o_ref.dtype)


@functools.partial(jax.jit, static_argnames=("bm",))
def combined_action_model(x, params, *, bm=256):
    """x: [B, 636] float32. params: list of six (W [in,out], b [1,out]) pairs.

    Returns [B, 232] float32.
    bm: batch tile. 128 is ideal on v5e, 256+ on v6e/v7x. Arbitrary B is handled
    by zero-padding the batch up to a whole number of tiles.
    """
    B = x.shape[0]

    # Effective tile / padded batch (no divisibility assert: pad instead).
    if B <= bm:
        bm_eff = max(8, _round_up(B, 8))
        Bp = bm_eff
    else:
        bm_eff = bm
        Bp = _round_up(B, bm)

    # Zero-pad batch rows and the K dim (636 -> 640). Padded rows are sliced off
    # afterwards; padded K columns are zero so they contribute nothing.
    x_pad = jnp.pad(x, ((0, Bp - B), (0, IN_PAD - IN_DIM)))

    (w1, b1) = params[0]
    (w6, b6) = params[5]
    w1p = jnp.pad(w1, ((0, IN_PAD - IN_DIM), (0, 0)))          # zero K-pad rows
    w6p = jnp.pad(w6, ((0, 0), (0, OUT_PAD - OUT_DIM)))        # zero N-pad cols
    b6p = jnp.pad(b6, ((0, 0), (0, OUT_PAD - OUT_DIM)))
    padded_params = [(w1p, b1)] + list(params[1:5]) + [(w6p, b6p)]

    flat = []
    for w, b in padded_params:
        flat.extend([w, b])

    # x tiled over the batch; every weight/bias is a full-array block with a
    # constant index_map -> fetched once and kept resident in VMEM.
    in_specs = [pl.BlockSpec((bm_eff, IN_PAD), lambda i: (i, 0))]
    for w, b in padded_params:
        in_specs.append(pl.BlockSpec(w.shape, lambda i: (0, 0)))
        in_specs.append(pl.BlockSpec(b.shape, lambda i: (0, 0)))

    out_spec = pl.BlockSpec((bm_eff, OUT_PAD), lambda i: (i, 0))

    out = pl.pallas_call(
        _mlp_kernel,
        out_shape=jax.ShapeDtypeStruct((Bp, OUT_PAD), jnp.float32),
        grid_spec=pltpu.PrefetchScalarGridSpec(
            num_scalar_prefetch=0,
            grid=(Bp // bm_eff,),
            in_specs=in_specs,
            out_specs=out_spec,
        ),
        compiler_params=pltpu.CompilerParams(
            dimension_semantics=("parallel",),
            vmem_limit_bytes=48 << 20,   # within v7x's 64 MiB physical VMEM
        ),
    )(x_pad, *flat)

    return out[:B, :OUT_DIM]


def init_params(key):
    """Deterministic synthetic init (shapes match the PyTorch module)."""
    dims = [(IN_DIM, HID), (HID, HID), (HID, HID), (HID, HID), (HID, HID), (HID, OUT_DIM)]
    params = []
    for fan_in, fan_out in dims:
        key, kw, kb = jax.random.split(key, 3)
        bound = 1.0 / jnp.sqrt(fan_in)
        w = jax.random.uniform(kw, (fan_in, fan_out), jnp.float32, -bound, bound)
        b = jax.random.uniform(kb, (1, fan_out), jnp.float32, -bound, bound)
        params.append((w, b))
    return params


def reference_forward(x, params):
    h = x
    for i, (w, b) in enumerate(params):
        h = h @ w + b
        if i < len(params) - 1:
            h = jnp.maximum(h, 0.0)
    return h


if __name__ == "__main__":
    key = jax.random.PRNGKey(0)
    kx, kp = jax.random.split(key)

    # Small, non-multiple-of-8 batch exercises the padding path.
    B = 10
    x = jax.random.normal(kx, (B, IN_DIM), jnp.float32)
    params = init_params(kp)

    out = combined_action_model(x, params)
    out = jax.block_until_ready(out)

    ref = reference_forward(x, params)
    assert out.shape == (B, OUT_DIM)
    assert jnp.allclose(out, ref, atol=1e-4, rtol=1e-4), "mismatch vs JAX reference"

    print("KERNEL_OK")
</pallas_src>

<mosaic_0001>
module attributes {stable_mosaic.version = 11 : i64} {
  func.func @_mlp_kernel(%arg0: i32, %arg1: memref<16x640xf32, #tpu.memory_space<vmem>>, %arg2: memref<640x512xf32, #tpu.memory_space<vmem>>, %arg3: memref<1x512xf32, #tpu.memory_space<vmem>>, %arg4: memref<512x512xf32, #tpu.memory_space<vmem>>, %arg5: memref<1x512xf32, #tpu.memory_space<vmem>>, %arg6: memref<512x512xf32, #tpu.memory_space<vmem>>, %arg7: memref<1x512xf32, #tpu.memory_space<vmem>>, %arg8: memref<512x512xf32, #tpu.memory_space<vmem>>, %arg9: memref<1x512xf32, #tpu.memory_space<vmem>>, %arg10: memref<512x512xf32, #tpu.memory_space<vmem>>, %arg11: memref<1x512xf32, #tpu.memory_space<vmem>>, %arg12: memref<512x256xf32, #tpu.memory_space<vmem>>, %arg13: memref<1x256xf32, #tpu.memory_space<vmem>>, %arg14: memref<16x256xf32, #tpu.memory_space<vmem>>) attributes {dimension_semantics = [#tpu.dimension_semantics<parallel>], iteration_bounds = array<i64: 1>, scalar_prefetch = 0 : i64, scratch_operands = 0 : i64, tpu.core_type = #tpu.core_type<tc>, window_params = [{transform_indices = @transform_0, window_bounds = array<i64: 16, 640>}, {pipeline_mode = #tpu.pipeline_mode<synchronous>, transform_indices = @transform_1, window_bounds = array<i64: 640, 512>}, {pipeline_mode = #tpu.pipeline_mode<synchronous>, transform_indices = @transform_2, window_bounds = array<i64: 1, 512>}, {pipeline_mode = #tpu.pipeline_mode<synchronous>, transform_indices = @transform_3, window_bounds = array<i64: 512, 512>}, {pipeline_mode = #tpu.pipeline_mode<synchronous>, transform_indices = @transform_4, window_bounds = array<i64: 1, 512>}, {pipeline_mode = #tpu.pipeline_mode<synchronous>, transform_indices = @transform_5, window_bounds = array<i64: 512, 512>}, {pipeline_mode = #tpu.pipeline_mode<synchronous>, transform_indices = @transform_6, window_bounds = array<i64: 1, 512>}, {pipeline_mode = #tpu.pipeline_mode<synchronous>, transform_indices = @transform_7, window_bounds = array<i64: 512, 512>}, {pipeline_mode = #tpu.pipeline_mode<synchronous>, transform_indices = @transform_8, window_bounds = array<i64: 1, 512>}, {pipeline_mode = #tpu.pipeline_mode<synchronous>, transform_indices = @transform_9, window_bounds = array<i64: 512, 512>}, {pipeline_mode = #tpu.pipeline_mode<synchronous>, transform_indices = @transform_10, window_bounds = array<i64: 1, 512>}, {pipeline_mode = #tpu.pipeline_mode<synchronous>, transform_indices = @transform_11, window_bounds = array<i64: 512, 256>}, {pipeline_mode = #tpu.pipeline_mode<synchronous>, transform_indices = @transform_12, window_bounds = array<i64: 1, 256>}, {transform_indices = @transform_13, window_bounds = array<i64: 16, 256>}]} {
    %c0 = arith.constant 0 : index
    %c0_0 = arith.constant 0 : index
    %0 = vector.load %arg1[%c0, %c0_0] : memref<16x640xf32, #tpu.memory_space<vmem>>, vector<16x640xf32>
    %c0_1 = arith.constant 0 : index
    %c0_2 = arith.constant 0 : index
    %1 = vector.load %arg2[%c0_1, %c0_2] : memref<640x512xf32, #tpu.memory_space<vmem>>, vector<640x512xf32>
    %cst = arith.constant dense<0.000000e+00> : vector<16x512xf32>
    %2 = tpu.matmul %0, %1, %cst {dimension_numbers = #tpu.dot_dimension_numbers<[1], [0], [0], [1], [0, 0, 1, 1], [], []>} : vector<16x640xf32>, vector<640x512xf32>, vector<16x512xf32> -> vector<16x512xf32>
    %c0_3 = arith.constant 0 : index
    %c0_4 = arith.constant 0 : index
    %3 = vector.load %arg3[%c0_3, %c0_4] : memref<1x512xf32, #tpu.memory_space<vmem>>, vector<1x512xf32>
    %4 = vector.broadcast %3 : vector<1x512xf32> to vector<16x512xf32>
    %5 = arith.addf %2, %4 : vector<16x512xf32>
    %cst_5 = arith.constant 0.000000e+00 : f32
    %6 = vector.broadcast %cst_5 : f32 to vector<16x512xf32>
    %7 = arith.maximumf %5, %6 : vector<16x512xf32>
    %c0_6 = arith.constant 0 : index
    %c0_7 = arith.constant 0 : index
    %8 = vector.load %arg4[%c0_6, %c0_7] : memref<512x512xf32, #tpu.memory_space<vmem>>, vector<512x512xf32>
    %cst_8 = arith.constant dense<0.000000e+00> : vector<16x512xf32>
    %9 = tpu.matmul %7, %8, %cst_8 {dimension_numbers = #tpu.dot_dimension_numbers<[1], [0], [0], [1], [0, 0, 1, 1], [], []>} : vector<16x512xf32>, vector<512x512xf32>, vector<16x512xf32> -> vector<16x512xf32>
    %c0_9 = arith.constant 0 : index
    %c0_10 = arith.constant 0 : index
    %10 = vector.load %arg5[%c0_9, %c0_10] : memref<1x512xf32, #tpu.memory_space<vmem>>, vector<1x512xf32>
    %11 = vector.broadcast %10 : vector<1x512xf32> to vector<16x512xf32>
    %12 = arith.addf %9, %11 : vector<16x512xf32>
    %cst_11 = arith.constant 0.000000e+00 : f32
    %13 = vector.broadcast %cst_11 : f32 to vector<16x512xf32>
    %14 = arith.maximumf %12, %13 : vector<16x512xf32>
    %c0_12 = arith.constant 0 : index
    %c0_13 = arith.constant 0 : index
    %15 = vector.load %arg6[%c0_12, %c0_13] : memref<512x512xf32, #tpu.memory_space<vmem>>, vector<512x512xf32>
    %cst_14 = arith.constant dense<0.000000e+00> : vector<16x512xf32>
    %16 = tpu.matmul %14, %15, %cst_14 {dimension_numbers = #tpu.dot_dimension_numbers<[1], [0], [0], [1], [0, 0, 1, 1], [], []>} : vector<16x512xf32>, vector<512x512xf32>, vector<16x512xf32> -> vector<16x512xf32>
    %c0_15 = arith.constant 0 : index
    %c0_16 = arith.constant 0 : index
    %17 = vector.load %arg7[%c0_15, %c0_16] : memref<1x512xf32, #tpu.memory_space<vmem>>, vector<1x512xf32>
    %18 = vector.broadcast %17 : vector<1x512xf32> to vector<16x512xf32>
    %19 = arith.addf %16, %18 : vector<16x512xf32>
    %cst_17 = arith.constant 0.000000e+00 : f32
    %20 = vector.broadcast %cst_17 : f32 to vector<16x512xf32>
    %21 = arith.maximumf %19, %20 : vector<16x512xf32>
    %c0_18 = arith.constant 0 : index
    %c0_19 = arith.constant 0 : index
    %22 = vector.load %arg8[%c0_18, %c0_19] : memref<512x512xf32, #tpu.memory_space<vmem>>, vector<512x512xf32>
    %cst_20 = arith.constant dense<0.000000e+00> : vector<16x512xf32>
    %23 = tpu.matmul %21, %22, %cst_20 {dimension_numbers = #tpu.dot_dimension_numbers<[1], [0], [0], [1], [0, 0, 1, 1], [], []>} : vector<16x512xf32>, vector<512x512xf32>, vector<16x512xf32> -> vector<16x512xf32>
    %c0_21 = arith.constant 0 : index
    %c0_22 = arith.constant 0 : index
    %24 = vector.load %arg9[%c0_21, %c0_22] : memref<1x512xf32, #tpu.memory_space<vmem>>, vector<1x512xf32>
    %25 = vector.broadcast %24 : vector<1x512xf32> to vector<16x512xf32>
    %26 = arith.addf %23, %25 : vector<16x512xf32>
    %cst_23 = arith.constant 0.000000e+00 : f32
    %27 = vector.broadcast %cst_23 : f32 to vector<16x512xf32>
    %28 = arith.maximumf %26, %27 : vector<16x512xf32>
    %c0_24 = arith.constant 0 : index
    %c0_25 = arith.constant 0 : index
    %29 = vector.load %arg10[%c0_24, %c0_25] : memref<512x512xf32, #tpu.memory_space<vmem>>, vector<512x512xf32>
    %cst_26 = arith.constant dense<0.000000e+00> : vector<16x512xf32>
    %30 = tpu.matmul %28, %29, %cst_26 {dimension_numbers = #tpu.dot_dimension_numbers<[1], [0], [0], [1], [0, 0, 1, 1], [], []>} : vector<16x512xf32>, vector<512x512xf32>, vector<16x512xf32> -> vector<16x512xf32>
    %c0_27 = arith.constant 0 : index
    %c0_28 = arith.constant 0 : index
    %31 = vector.load %arg11[%c0_27, %c0_28] : memref<1x512xf32, #tpu.memory_space<vmem>>, vector<1x512xf32>
    %32 = vector.broadcast %31 : vector<1x512xf32> to vector<16x512xf32>
    %33 = arith.addf %30, %32 : vector<16x512xf32>
    %cst_29 = arith.constant 0.000000e+00 : f32
    %34 = vector.broadcast %cst_29 : f32 to vector<16x512xf32>
    %35 = arith.maximumf %33, %34 : vector<16x512xf32>
    %c0_30 = arith.constant 0 : index
    %c0_31 = arith.constant 0 : index
    %36 = vector.load %arg12[%c0_30, %c0_31] : memref<512x256xf32, #tpu.memory_space<vmem>>, vector<512x256xf32>
    %cst_32 = arith.constant dense<0.000000e+00> : vector<16x256xf32>
    %37 = tpu.matmul %35, %36, %cst_32 {dimension_numbers = #tpu.dot_dimension_numbers<[1], [0], [0], [1], [0, 0, 1, 1], [], []>} : vector<16x512xf32>, vector<512x256xf32>, vector<16x256xf32> -> vector<16x256xf32>
    %c0_33 = arith.constant 0 : index
    %c0_34 = arith.constant 0 : index
    %38 = vector.load %arg13[%c0_33, %c0_34] : memref<1x256xf32, #tpu.memory_space<vmem>>, vector<1x256xf32>
    %39 = vector.broadcast %38 : vector<1x256xf32> to vector<16x256xf32>
    %40 = arith.addf %37, %39 : vector<16x256xf32>
    %c0_35 = arith.constant 0 : index
    %c0_36 = arith.constant 0 : index
    %41 = vector.load %arg14[%c0_35, %c0_36] : memref<16x256xf32, #tpu.memory_space<vmem>>, vector<16x256xf32>
    tpu.vector_store %arg14[%c0_35, %c0_36], %40 {strides = array<i32>} : memref<16x256xf32, #tpu.memory_space<vmem>>, vector<16x256xf32>,
    return
  }
  func.func @transform_0(%arg0: i32) -> (i32, i32) {
    %c0_i32 = arith.constant 0 : i32
    %c0_i32_0 = arith.constant 0 : i32
    return %arg0, %c0_i32 : i32, i32
  }
  func.func @transform_1(%arg0: i32) -> (i32, i32) {
    %c0_i32 = arith.constant 0 : i32
    %c0_i32_0 = arith.constant 0 : i32
    %c0_i32_1 = arith.constant 0 : i32
    return %c0_i32, %c0_i32_0 : i32, i32
  }
  func.func @transform_2(%arg0: i32) -> (i32, i32) {
    %c0_i32 = arith.constant 0 : i32
    %c0_i32_0 = arith.constant 0 : i32
    %c0_i32_1 = arith.constant 0 : i32
    return %c0_i32, %c0_i32_0 : i32, i32
  }
  func.func @transform_3(%arg0: i32) -> (i32, i32) {
    %c0_i32 = arith.constant 0 : i32
    %c0_i32_0 = arith.constant 0 : i32
    %c0_i32_1 = arith.constant 0 : i32
    return %c0_i32, %c0_i32_0 : i32, i32
  }
  func.func @transform_4(%arg0: i32) -> (i32, i32) {
    %c0_i32 = arith.constant 0 : i32
    %c0_i32_0 = arith.constant 0 : i32
    %c0_i32_1 = arith.constant 0 : i32
    return %c0_i32, %c0_i32_0 : i32, i32
  }
  func.func @transform_5(%arg0: i32) -> (i32, i32) {
    %c0_i32 = arith.constant 0 : i32
    %c0_i32_0 = arith.constant 0 : i32
    %c0_i32_1 = arith.constant 0 : i32
    return %c0_i32, %c0_i32_0 : i32, i32
  }
  func.func @transform_6(%arg0: i32) -> (i32, i32) {
    %c0_i32 = arith.constant 0 : i32
    %c0_i32_0 = arith.constant 0 : i32
    %c0_i32_1 = arith.constant 0 : i32
    return %c0_i32, %c0_i32_0 : i32, i32
  }
  func.func @transform_7(%arg0: i32) -> (i32, i32) {
    %c0_i32 = arith.constant 0 : i32
    %c0_i32_0 = arith.constant 0 : i32
    %c0_i32_1 = arith.constant 0 : i32
    return %c0_i32, %c0_i32_0 : i32, i32
  }
  func.func @transform_8(%arg0: i32) -> (i32, i32) {
    %c0_i32 = arith.constant 0 : i32
    %c0_i32_0 = arith.constant 0 : i32
    %c0_i32_1 = arith.constant 0 : i32
    return %c0_i32, %c0_i32_0 : i32, i32
  }
  func.func @transform_9(%arg0: i32) -> (i32, i32) {
    %c0_i32 = arith.constant 0 : i32
    %c0_i32_0 = arith.constant 0 : i32
    %c0_i32_1 = arith.constant 0 : i32
    return %c0_i32, %c0_i32_0 : i32, i32
  }
  func.func @transform_10(%arg0: i32) -> (i32, i32) {
    %c0_i32 = arith.constant 0 : i32
    %c0_i32_0 = arith.constant 0 : i32
    %c0_i32_1 = arith.constant 0 : i32
    return %c0_i32, %c0_i32_0 : i32, i32
  }
  func.func @transform_11(%arg0: i32) -> (i32, i32) {
    %c0_i32 = arith.constant 0 : i32
    %c0_i32_0 = arith.constant 0 : i32
    %c0_i32_1 = arith.constant 0 : i32
    return %c0_i32, %c0_i32_0 : i32, i32
  }
  func.func @transform_12(%arg0: i32) -> (i32, i32) {
    %c0_i32 = arith.constant 0 : i32
    %c0_i32_0 = arith.constant 0 : i32
    %c0_i32_1 = arith.constant 0 : i32
    return %c0_i32, %c0_i32_0 : i32, i32
  }
  func.func @transform_13(%arg0: i32) -> (i32, i32) {
    %c0_i32 = arith.constant 0 : i32
    %c0_i32_0 = arith.constant 0 : i32
    return %arg0, %c0_i32 : i32, i32
  }
}

</mosaic_0001>

<bundles_post_ra>
// kernel: combined_action_model.1
= control target key start
LH: loop header
LB: loop body
LE: loop exit
PB: predicated region body
PF: predicated region fallthrough
CT: control target
= control target key end

     0   :  { %18 = vsyncpa [#allocation3], 0  ;;  %s7903_s0 = inlined_call_operand.vmem [shape: f32[16,640], index: 0, kind: input, shape index: {}]   ;;  %s7904_s1 = inlined_call_operand.vmem [shape: f32[640,512], index: 1, kind: input, shape index: {}]   ;;  %s7905_s2 = inlined_call_operand.vmem [shape: f32[1,512], index: 2, kind: input, shape index: {}]   ;;  %s7906_s3 = inlined_call_operand.vmem [shape: f32[512,512], index: 3, kind: input, shape index: {}]   ;;  %s7907_s4 = inlined_call_operand.vmem [shape: f32[1,512], index: 4, kind: input, shape index: {}]   ;;  %s7908_s5 = inlined_call_operand.vmem [shape: f32[512,512], index: 5, kind: input, shape index: {}]   ;;  %s7909_s6 = inlined_call_operand.vmem [shape: f32[1,512], index: 6, kind: input, shape index: {}]   ;;  %s7910_s7 = inlined_call_operand.vmem [shape: f32[512,512], index: 7, kind: input, shape index: {}]   ;;  %s7911_s8 = inlined_call_operand.vmem [shape: f32[1,512], index: 8, kind: input, shape index: {}]   ;;  %s7912_s9 = inlined_call_operand.hbm [shape: f32[512,512], index: 9, kind: input, shape index: {}]   ;;  %s7913_s10 = inlined_call_operand.vmem [shape: f32[1,512], index: 10, kind: input, shape index: {}]   ;;  %s7914_s11 = inlined_call_operand.vmem [shape: f32[512,256], index: 11, kind: input, shape index: {}]   ;;  %s7915_s12 = inlined_call_operand.vmem [shape: f32[1,256], index: 12, kind: input, shape index: {}]   ;;  %s7916_s13 = inlined_call_operand.hbm [shape: f32[16,256], index: 13, kind: output, shape index: {}]  }
   0x1   :  { %19 = vsyncpa [#allocation4], 0  ;;  %s42_s27 = sshll.u32 %s7912_s9, 4  ;;  %s3836_s28 = smov [#allocation2]   ;;  %s43_s27 = int_to_ptr.hbm [resolvable:$true] %s42_s27 }
   0x2   :  { %s44_s29 = sshll.u32 %s3836_s28, 4  ;;  %s3837_s30 = smov 512   ;;  %s45_s29 = int_to_ptr.vmem [resolvable:$true] %s44_s29 }
   0x3   :  { %s3838_s14 = smov 32  }
   0x4   :  { %50 = dma.hbm_to_vmem [thread:$0]  %s43_s27, 32768, %s45_s29, [#allocation3], %s3837_s30, %s3837_s30, %s3838_s14  }
   0x5   :  { %3832 = dma.done.wait [#allocation3], 32768  }
   0x6   :  { %3833 = vsyncadd [#allocation3], 4294934528  ;;  %v131_v0 = vld [vmem:[%s7904_s1 + $0x1e0] sm:$0xff]  ;;  %v196_v63 = vld [vmem:[%s7904_s1 + $0x3e8] sm:$0xff]  ;;  %s3840_s22 = smov 256   ;;  %s3841_s23 = smov 16  }
   0x7   :  { %v259_v1 = vld [vmem:[%s7904_s1 + $0x5e0] sm:$0xff]  ;;  %401 = vmatpush.msra.mxu0 %v131_v0 }
   0x8   :  { %v127_v2 = vld [vmem:[%s7904_s1 + $0x1c0] sm:$0xff]  ;;  %447 = vmatpush.msra.mxu2 %v259_v1 }
   0x9   :  { %v195_v3 = vld [vmem:[%s7904_s1 + $0x3e0] sm:$0xff]  ;;  %402 = vmatpush.msra.mxu0 %v127_v2 }
   0xa   :  { %v255_v4 = vld [vmem:[%s7904_s1 + $0x5c0] sm:$0xff]  ;;  %424 = vmatpush.msra.mxu1 %v195_v3  ;;  %v132_v3 = vld [vmem:[%s7904_s1 + $0x1e8] sm:$0xff] }
   0xb   :  { %v323_v5 = vld [vmem:[%s7904_s1 + $0x7e0] sm:$0xff]  ;;  %448 = vmatpush.msra.mxu2 %v255_v4  ;;  %v192_v4 = vld [vmem:[%s7904_s1 + $0x3c8] sm:$0xff] }
   0xc   :  { %470 = vmatpush.msra.mxu3 %v323_v5  ;;  %v123_v6 = vld [vmem:[%s7904_s1 + $0x1a0] sm:$0xff]  ;;  %v260_v5 = vld [vmem:[%s7904_s1 + $0x5e8] sm:$0xff] }
   0xd   :  { %v191_v7 = vld [vmem:[%s7904_s1 + $0x3c0] sm:$0xff]  ;;  %403 = vmatpush.msra.mxu0 %v123_v6 }
   0xe   :  { %v251_v8 = vld [vmem:[%s7904_s1 + $0x5a0] sm:$0xff]  ;;  %425 = vmatpush.msra.mxu1 %v191_v7  ;;  %v128_v7 = vld [vmem:[%s7904_s1 + $0x1c8] sm:$0xff] }
   0xf   :  { %v319_v9 = vld [vmem:[%s7904_s1 + $0x7c0] sm:$0xff]  ;;  %449 = vmatpush.msra.mxu2 %v251_v8  ;;  %v188_v8 = vld [vmem:[%s7904_s1 + $0x3a8] sm:$0xff] }
  0x10   :  { %v187_v10 = vld [vmem:[%s7904_s1 + $0x3a0] sm:$0xff]  ;;  %471 = vmatpush.msra.mxu3 %v319_v9  ;;  %v256_v9 = vld [vmem:[%s7904_s1 + $0x5c8] sm:$0xff] }
  0x11   :  { %v119_v11 = vld [vmem:[%s7904_s1 + $0x180] sm:$0xff]  ;;  %426 = vmatpush.msra.mxu1 %v187_v10 }
  0x12   :  { %v247_v12 = vld [vmem:[%s7904_s1 + $0x580] sm:$0xff]  ;;  %404 = vmatpush.msra.mxu0 %v119_v11  ;;  %v124_v11 = vld [vmem:[%s7904_s1 + $0x1a8] sm:$0xff] }
  0x13   :  { %v315_v13 = vld [vmem:[%s7904_s1 + $0x7a0] sm:$0xff]  ;;  %450 = vmatpush.msra.mxu2 %v247_v12  ;;  %v184_v12 = vld [vmem:[%s7904_s1 + $0x388] sm:$0xff] }
  0x14   :  { %v183_v14 = vld [vmem:[%s7904_s1 + $0x380] sm:$0xff]  ;;  %472 = vmatpush.msra.mxu3 %v315_v13  ;;  %v252_v13 = vld [vmem:[%s7904_s1 + $0x5a8] sm:$0xff] }
  0x15   :  { %v311_v15 = vld [vmem:[%s7904_s1 + $0x780] sm:$0xff]  ;;  %427 = vmatpush.msra.mxu1 %v183_v14 }
  0x16   :  { %v115_v16 = vld [vmem:[%s7904_s1 + $0x160] sm:$0xff]  ;;  %473 = vmatpush.msra.mxu3 %v311_v15  ;;  %v120_v15 = vld [vmem:[%s7904_s1 + $0x188] sm:$0xff] }
  0x17   :  { %v243_v17 = vld [vmem:[%s7904_s1 + $0x560] sm:$0xff]  ;;  %405 = vmatpush.msra.mxu0 %v115_v16  ;;  %v180_v16 = vld [vmem:[%s7904_s1 + $0x368] sm:$0xff] }
  0x18   :  { %v179_v18 = vld [vmem:[%s7904_s1 + $0x360] sm:$0xff]  ;;  %451 = vmatpush.msra.mxu2 %v243_v17  ;;  %v248_v17 = vld [vmem:[%s7904_s1 + $0x588] sm:$0xff] }
  0x19   :  { %v307_v19 = vld [vmem:[%s7904_s1 + $0x760] sm:$0xff]  ;;  %428 = vmatpush.msra.mxu1 %v179_v18 }
  0x1a   :  { %v111_v20 = vld [vmem:[%s7904_s1 + $0x140] sm:$0xff]  ;;  %474 = vmatpush.msra.mxu3 %v307_v19  ;;  %v116_v19 = vld [vmem:[%s7904_s1 + $0x168] sm:$0xff] }
  0x1b   :  { %v239_v21 = vld [vmem:[%s7904_s1 + $0x540] sm:$0xff]  ;;  %406 = vmatpush.msra.mxu0 %v111_v20  ;;  %v176_v20 = vld [vmem:[%s7904_s1 + $0x348] sm:$0xff] }
  0x1c   :  { %v175_v22 = vld [vmem:[%s7904_s1 + $0x340] sm:$0xff]  ;;  %452 = vmatpush.msra.mxu2 %v239_v21  ;;  %v244_v21 = vld [vmem:[%s7904_s1 + $0x568] sm:$0xff] }
  0x1d   :  { %v303_v23 = vld [vmem:[%s7904_s1 + $0x740] sm:$0xff]  ;;  %429 = vmatpush.msra.mxu1 %v175_v22 }
  0x1e   :  { %v107_v24 = vld [vmem:[%s7904_s1 + $0x120] sm:$0xff]  ;;  %475 = vmatpush.msra.mxu3 %v303_v23  ;;  %v112_v23 = vld [vmem:[%s7904_s1 + $0x148] sm:$0xff] }
  0x1f   :  { %v235_v25 = vld [vmem:[%s7904_s1 + $0x520] sm:$0xff]  ;;  %407 = vmatpush.msra.mxu0 %v107_v24  ;;  %v172_v24 = vld [vmem:[%s7904_s1 + $0x328] sm:$0xff] }
  0x20   :  { %v171_v26 = vld [vmem:[%s7904_s1 + $0x320] sm:$0xff]  ;;  %453 = vmatpush.msra.mxu2 %v235_v25  ;;  %v240_v25 = vld [vmem:[%s7904_s1 + $0x548] sm:$0xff] }
  0x21   :  { %v299_v27 = vld [vmem:[%s7904_s1 + $0x720] sm:$0xff]  ;;  %430 = vmatpush.msra.mxu1 %v171_v26 }
  0x22   :  { %v103_v28 = vld [vmem:[%s7904_s1 + $0x100] sm:$0xff]  ;;  %476 = vmatpush.msra.mxu3 %v299_v27  ;;  %v108_v27 = vld [vmem:[%s7904_s1 + $0x128] sm:$0xff] }
  0x23   :  { %v231_v29 = vld [vmem:[%s7904_s1 + $0x500] sm:$0xff]  ;;  %408 = vmatpush.msra.mxu0 %v103_v28  ;;  %v168_v28 = vld [vmem:[%s7904_s1 + $0x308] sm:$0xff] }
  0x24   :  { %v167_v30 = vld [vmem:[%s7904_s1 + $0x300] sm:$0xff]  ;;  %454 = vmatpush.msra.mxu2 %v231_v29  ;;  %v236_v29 = vld [vmem:[%s7904_s1 + $0x528] sm:$0xff] }
  0x25   :  { %v295_v31 = vld [vmem:[%s7904_s1 + $0x700] sm:$0xff]  ;;  %431 = vmatpush.msra.mxu1 %v167_v30 }
  0x26   :  { %v99_v32 = vld [vmem:[%s7904_s1 + $0xe0] sm:$0xff]  ;;  %477 = vmatpush.msra.mxu3 %v295_v31  ;;  %v104_v31 = vld [vmem:[%s7904_s1 + $0x108] sm:$0xff] }
  0x27   :  { %v227_v33 = vld [vmem:[%s7904_s1 + $0x4e0] sm:$0xff]  ;;  %409 = vmatpush.msra.mxu0 %v99_v32  ;;  %v164_v32 = vld [vmem:[%s7904_s1 + $0x2e8] sm:$0xff] }
  0x28   :  { %v163_v34 = vld [vmem:[%s7904_s1 + $0x2e0] sm:$0xff]  ;;  %455 = vmatpush.msra.mxu2 %v227_v33  ;;  %v232_v33 = vld [vmem:[%s7904_s1 + $0x508] sm:$0xff] }
  0x29   :  { %v291_v35 = vld [vmem:[%s7904_s1 + $0x6e0] sm:$0xff]  ;;  %432 = vmatpush.msra.mxu1 %v163_v34 }
  0x2a   :  { %v95_v36 = vld [vmem:[%s7904_s1 + $0xc0] sm:$0xff]  ;;  %478 = vmatpush.msra.mxu3 %v291_v35  ;;  %v100_v35 = vld [vmem:[%s7904_s1 + $0xe8] sm:$0xff] }
  0x2b   :  { %v223_v37 = vld [vmem:[%s7904_s1 + $0x4c0] sm:$0xff]  ;;  %410 = vmatpush.msra.mxu0 %v95_v36  ;;  %v160_v36 = vld [vmem:[%s7904_s1 + $0x2c8] sm:$0xff] }
  0x2c   :  { %v159_v38 = vld [vmem:[%s7904_s1 + $0x2c0] sm:$0xff]  ;;  %456 = vmatpush.msra.mxu2 %v223_v37  ;;  %v228_v37 = vld [vmem:[%s7904_s1 + $0x4e8] sm:$0xff] }
  0x2d   :  { %v287_v39 = vld [vmem:[%s7904_s1 + $0x6c0] sm:$0xff]  ;;  %433 = vmatpush.msra.mxu1 %v159_v38 }
  0x2e   :  { %v91_v40 = vld [vmem:[%s7904_s1 + $0xa0] sm:$0xff]  ;;  %479 = vmatpush.msra.mxu3 %v287_v39  ;;  %v96_v39 = vld [vmem:[%s7904_s1 + $0xc8] sm:$0xff] }
  0x2f   :  { %v219_v41 = vld [vmem:[%s7904_s1 + $0x4a0] sm:$0xff]  ;;  %411 = vmatpush.msra.mxu0 %v91_v40  ;;  %v156_v40 = vld [vmem:[%s7904_s1 + $0x2a8] sm:$0xff] }
  0x30   :  { %v155_v42 = vld [vmem:[%s7904_s1 + $0x2a0] sm:$0xff]  ;;  %457 = vmatpush.msra.mxu2 %v219_v41  ;;  %v224_v41 = vld [vmem:[%s7904_s1 + $0x4c8] sm:$0xff] }
  0x31   :  { %v283_v43 = vld [vmem:[%s7904_s1 + $0x6a0] sm:$0xff]  ;;  %434 = vmatpush.msra.mxu1 %v155_v42 }
  0x32   :  { %v87_v44 = vld [vmem:[%s7904_s1 + $0x80] sm:$0xff]  ;;  %480 = vmatpush.msra.mxu3 %v283_v43  ;;  %v92_v43 = vld [vmem:[%s7904_s1 + $0xa8] sm:$0xff] }
  0x33   :  { %v215_v45 = vld [vmem:[%s7904_s1 + $0x480] sm:$0xff]  ;;  %412 = vmatpush.msra.mxu0 %v87_v44  ;;  %v152_v44 = vld [vmem:[%s7904_s1 + $0x288] sm:$0xff] }
  0x34   :  { %v151_v46 = vld [vmem:[%s7904_s1 + $0x280] sm:$0xff]  ;;  %458 = vmatpush.msra.mxu2 %v215_v45  ;;  %v220_v45 = vld [vmem:[%s7904_s1 + $0x4a8] sm:$0xff] }
  0x35   :  { %v279_v47 = vld [vmem:[%s7904_s1 + $0x680] sm:$0xff]  ;;  %435 = vmatpush.msra.mxu1 %v151_v46 }
  0x36   :  { %v83_v48 = vld [vmem:[%s7904_s1 + $0x60] sm:$0xff]  ;;  %481 = vmatpush.msra.mxu3 %v279_v47  ;;  %v88_v47 = vld [vmem:[%s7904_s1 + $0x88] sm:$0xff] }
  0x37   :  { %v211_v49 = vld [vmem:[%s7904_s1 + $0x460] sm:$0xff]  ;;  %413 = vmatpush.msra.mxu0 %v83_v48 }
  0x38   :  { %v147_v50 = vld [vmem:[%s7904_s1 + $0x260] sm:$0xff]  ;;  %459 = vmatpush.msra.mxu2 %v211_v49  ;;  %v148_v49 = vld [vmem:[%s7904_s1 + $0x268] sm:$0xff] }
  0x39   :  { %v275_v51 = vld [vmem:[%s7904_s1 + $0x660] sm:$0xff]  ;;  %436 = vmatpush.msra.mxu1 %v147_v50  ;;  %v216_v50 = vld [vmem:[%s7904_s1 + $0x488] sm:$0xff] }
  0x3a   :  { %v79_v52 = vld [vmem:[%s7904_s1 + $0x40] sm:$0xff]  ;;  %482 = vmatpush.msra.mxu3 %v275_v51  ;;  %v84_v51 = vld [vmem:[%s7904_s1 + $0x68] sm:$0xff] }
  0x3b   :  { %v207_v53 = vld [vmem:[%s7904_s1 + $0x440] sm:$0xff]  ;;  %414 = vmatpush.msra.mxu0 %v79_v52 }
  0x3c   :  { %v143_v54 = vld [vmem:[%s7904_s1 + $0x240] sm:$0xff]  ;;  %460 = vmatpush.msra.mxu2 %v207_v53  ;;  %v144_v53 = vld [vmem:[%s7904_s1 + $0x248] sm:$0xff] }
  0x3d   :  { %v271_v55 = vld [vmem:[%s7904_s1 + $0x640] sm:$0xff]  ;;  %437 = vmatpush.msra.mxu1 %v143_v54  ;;  %v212_v54 = vld [vmem:[%s7904_s1 + $0x468] sm:$0xff] }
  0x3e   :  { %v75_v56 = vld [vmem:[%s7904_s1 + $0x20] sm:$0xff]  ;;  %483 = vmatpush.msra.mxu3 %v271_v55  ;;  %v80_v55 = vld [vmem:[%s7904_s1 + $0x48] sm:$0xff] }
  0x3f   :  { %v203_v57 = vld [vmem:[%s7904_s1 + $0x420] sm:$0xff]  ;;  %415 = vmatpush.msra.mxu0 %v75_v56 }
  0x40   :  { %v139_v58 = vld [vmem:[%s7904_s1 + $0x220] sm:$0xff]  ;;  %461 = vmatpush.msra.mxu2 %v203_v57  ;;  %v140_v57 = vld [vmem:[%s7904_s1 + $0x228] sm:$0xff] }
  0x41   :  { %v267_v59 = vld [vmem:[%s7904_s1 + $0x620] sm:$0xff]  ;;  %438 = vmatpush.msra.mxu1 %v139_v58  ;;  %v208_v58 = vld [vmem:[%s7904_s1 + $0x448] sm:$0xff] }
  0x42   :  { %v71_v60 = vld [vmem:[%s7904_s1] sm:$0xff]  ;;  %484 = vmatpush.msra.mxu3 %v267_v59  ;;  %v4290_v59 = vld [vmem:[%s7903_s0 + $0x10] sm:$0xff] }
  0x43   :  { %v199_v61 = vld [vmem:[%s7904_s1 + $0x400] sm:$0xff]  ;;  %416 = vmatpush.msra.mxu0 %v71_v60 }
  0x44   :  { %v387_v62 = vld [vmem:[%s7904_s1 + $0x9e0] sm:$0xff]  ;;  %462 = vmatpush.msra.mxu2 %v199_v61  ;;  %v76_v61 = vld [vmem:[%s7904_s1 + $0x28] sm:$0xff] }
  0x45   :  { %v135_v0 = vld [vmem:[%s7904_s1 + $0x200] sm:$0xff]  ;;  %493 = vmatpush.msrb.mxu0 %v387_v62  ;;  %v136_v62 = vld [vmem:[%s7904_s1 + $0x208] sm:$0xff]  ;;  %463 = vmatmul.f32.vlgmr.msra.gmra.mxu2 %v4290_v59 }
  0x46   :  { %v263_v1 = vld [vmem:[%s7904_s1 + $0x600] sm:$0xff]  ;;  %539 = vmatpush.msrb.mxu2 %v196_v63  ;;  %439 = vmatpush.msra.mxu1 %v135_v0  ;;  %v204_v63 = vld [vmem:[%s7904_s1 + $0x428] sm:$0xff] }
  0x47   :  { %v383_v2 = vld [vmem:[%s7904_s1 + $0x9c0] sm:$0xff]  ;;  %485 = vmatpush.msra.mxu3 %v263_v1  ;;  %v324_v0 = vld [vmem:[%s7904_s1 + $0x7e8] sm:$0xff]  ;;  %v133_v1 = vld [vmem:[%s7904_s1 + $0x1f0] sm:$0xff] }
  0x48   :  { %v379_v6 = vld [vmem:[%s7904_s1 + $0x9a0] sm:$0xff]  ;;  %494 = vmatpush.msrb.mxu0 %v383_v2  ;;  %516 = vmatpush.msrb.mxu1 %v132_v3  ;;  %v4314_v2 = vld [vmem:[%s7903_s0 + $0x28] sm:$0xff] }
  0x49   :  { %540 = vmatpush.msrb.mxu2 %v192_v4  ;;  %562 = vmatpush.msrb.mxu3 %v260_v5  ;;  %v375_v10 = vld [vmem:[%s7904_s1 + $0x980] sm:$0xff]  ;;  %v4319_v3 = vld [vmem:[%s7903_s0 + $0x8] sm:$0xff]  ;;  %v4324_v4 = vld [vmem:[%s7903_s0 + $0x18] sm:$0xff] }
  0x4a   :  { %495 = vmatpush.msrb.mxu0 %v379_v6  ;;  %517 = vmatpush.msrb.mxu1 %v128_v7  ;;  %v371_v14 = vld [vmem:[%s7904_s1 + $0x960] sm:$0xff]  ;;  %v72_v5 = vld [vmem:[%s7904_s1 + $0x8] sm:$0xff] }
  0x4b   :  { %541 = vmatpush.msrb.mxu2 %v188_v8  ;;  %563 = vmatpush.msrb.mxu3 %v256_v9  ;;  %v367_v18 = vld [vmem:[%s7904_s1 + $0x940] sm:$0xff]  ;;  %v200_v6 = vld [vmem:[%s7904_s1 + $0x408] sm:$0xff]  ;;  %v129_v9 = vld [vmem:[%s7904_s1 + $0x1d0] sm:$0xff] }
  0x4c   :  { %496 = vmatpush.msrb.mxu0 %v375_v10  ;;  %518 = vmatpush.msrb.mxu1 %v124_v11  ;;  %v363_v22 = vld [vmem:[%s7904_s1 + $0x920] sm:$0xff]  ;;  %v320_v7 = vld [vmem:[%s7904_s1 + $0x7c8] sm:$0xff]  ;;  %v197_v10 = vld [vmem:[%s7904_s1 + $0x3f0] sm:$0xff] }
  0x4d   :  { %542 = vmatpush.msrb.mxu2 %v184_v12  ;;  %564 = vmatpush.msrb.mxu3 %v252_v13  ;;  %v359_v26 = vld [vmem:[%s7904_s1 + $0x900] sm:$0xff]  ;;  %v388_v8 = vld [vmem:[%s7904_s1 + $0x9e8] sm:$0xff]  ;;  %v125_v13 = vld [vmem:[%s7904_s1 + $0x1b0] sm:$0xff] }
  0x4e   :  { %497 = vmatpush.msrb.mxu0 %v371_v14  ;;  %519 = vmatpush.msrb.mxu1 %v120_v15  ;;  %v355_v30 = vld [vmem:[%s7904_s1 + $0x8e0] sm:$0xff]  ;;  %v316_v11 = vld [vmem:[%s7904_s1 + $0x7a8] sm:$0xff]  ;;  %v193_v14 = vld [vmem:[%s7904_s1 + $0x3d0] sm:$0xff] }
  0x4f   :  { %543 = vmatpush.msrb.mxu2 %v180_v16  ;;  %565 = vmatpush.msrb.mxu3 %v248_v17  ;;  %v351_v34 = vld [vmem:[%s7904_s1 + $0x8c0] sm:$0xff]  ;;  %v384_v12 = vld [vmem:[%s7904_s1 + $0x9c8] sm:$0xff]  ;;  %v121_v17 = vld [vmem:[%s7904_s1 + $0x190] sm:$0xff] }
  0x50   :  { %498 = vmatpush.msrb.mxu0 %v367_v18  ;;  %520 = vmatpush.msrb.mxu1 %v116_v19  ;;  %v347_v38 = vld [vmem:[%s7904_s1 + $0x8a0] sm:$0xff]  ;;  %v312_v15 = vld [vmem:[%s7904_s1 + $0x788] sm:$0xff]  ;;  %v189_v18 = vld [vmem:[%s7904_s1 + $0x3b0] sm:$0xff] }
  0x51   :  { %544 = vmatpush.msrb.mxu2 %v176_v20  ;;  %566 = vmatpush.msrb.mxu3 %v244_v21  ;;  %v343_v42 = vld [vmem:[%s7904_s1 + $0x880] sm:$0xff]  ;;  %v380_v16 = vld [vmem:[%s7904_s1 + $0x9a8] sm:$0xff]  ;;  %v4374_v19 = vld [vmem:[%s7903_s0 + $0x38] sm:$0xff] }
  0x52   :  { %499 = vmatpush.msrb.mxu0 %v363_v22  ;;  %521 = vmatpush.msrb.mxu1 %v112_v23  ;;  %v4248_v46 = vld [vmem:[%s7903_s0] sm:$0xff]  ;;  %v308_v20 = vld [vmem:[%s7904_s1 + $0x768] sm:$0xff]  ;;  %v117_v22 = vld [vmem:[%s7904_s1 + $0x170] sm:$0xff] }
  0x53   :  { %545 = vmatpush.msrb.mxu2 %v172_v24  ;;  %567 = vmatpush.msrb.mxu3 %v240_v25  ;;  %v339_v48 = vld [vmem:[%s7904_s1 + $0x860] sm:$0xff]  ;;  %v376_v21 = vld [vmem:[%s7904_s1 + $0x988] sm:$0xff]  ;;  %v185_v23 = vld [vmem:[%s7904_s1 + $0x390] sm:$0xff] }
  0x54   :  { %500 = vmatpush.msrb.mxu0 %v359_v26  ;;  %522 = vmatpush.msrb.mxu1 %v108_v27  ;;  %v335_v52 = vld [vmem:[%s7904_s1 + $0x840] sm:$0xff]  ;;  %v4392_v24 = vld [vmem:[%s7903_s0 + $0x30] sm:$0xff]  ;;  %v372_v27 = vld [vmem:[%s7904_s1 + $0x968] sm:$0xff] }
  0x55   :  { %546 = vmatpush.msrb.mxu2 %v168_v28  ;;  %568 = vmatpush.msrb.mxu3 %v236_v29  ;;  %v331_v56 = vld [vmem:[%s7904_s1 + $0x820] sm:$0xff]  ;;  %v304_v28 = vld [vmem:[%s7904_s1 + $0x748] sm:$0xff]  ;;  %v113_v29 = vld [vmem:[%s7904_s1 + $0x150] sm:$0xff] }
  0x56   :  { %501 = vmatpush.msrb.mxu0 %v355_v30  ;;  %523 = vmatpush.msrb.mxu1 %v104_v31  ;;  %v327_v60 = vld [vmem:[%s7904_s1 + $0x800] sm:$0xff]  ;;  %v181_v30 = vld [vmem:[%s7904_s1 + $0x370] sm:$0xff]  ;;  %v368_v31 = vld [vmem:[%s7904_s1 + $0x948] sm:$0xff] }
  0x57   :  { %547 = vmatpush.msrb.mxu2 %v164_v32  ;;  %569 = vmatpush.msrb.mxu3 %v232_v33  ;;  %v4397_v25 = vld [vmem:[%s7903_s0 + $0x40] sm:$0xff]  ;;  %v300_v32 = vld [vmem:[%s7904_s1 + $0x728] sm:$0xff]  ;;  %v109_v33 = vld [vmem:[%s7904_s1 + $0x130] sm:$0xff] }
  0x58   :  { %502 = vmatpush.msrb.mxu0 %v351_v34  ;;  %524 = vmatpush.msrb.mxu1 %v100_v35  ;;  %v4402_v26 = vld [vmem:[%s7903_s0 + $0x20] sm:$0xff]  ;;  %v177_v34 = vld [vmem:[%s7904_s1 + $0x350] sm:$0xff]  ;;  %v364_v35 = vld [vmem:[%s7904_s1 + $0x928] sm:$0xff] }
  0x59   :  { %548 = vmatpush.msrb.mxu2 %v160_v36  ;;  %570 = vmatpush.msrb.mxu3 %v228_v37  ;;  %v296_v36 = vld [vmem:[%s7904_s1 + $0x708] sm:$0xff]  ;;  %v105_v37 = vld [vmem:[%s7904_s1 + $0x110] sm:$0xff] }
  0x5a   :  { %503 = vmatpush.msrb.mxu0 %v347_v38  ;;  %525 = vmatpush.msrb.mxu1 %v96_v39  ;;  %v173_v38 = vld [vmem:[%s7904_s1 + $0x330] sm:$0xff]  ;;  %v360_v39 = vld [vmem:[%s7904_s1 + $0x908] sm:$0xff] }
  0x5b   :  { %549 = vmatpush.msrb.mxu2 %v156_v40  ;;  %571 = vmatpush.msrb.mxu3 %v224_v41  ;;  %v292_v40 = vld [vmem:[%s7904_s1 + $0x6e8] sm:$0xff]  ;;  %v101_v41 = vld [vmem:[%s7904_s1 + $0xf0] sm:$0xff] }
  0x5c   :  { %504 = vmatpush.msrb.mxu0 %v343_v42  ;;  %526 = vmatpush.msrb.mxu1 %v92_v43  ;;  %v169_v42 = vld [vmem:[%s7904_s1 + $0x310] sm:$0xff]  ;;  %v4458_v43 = vld [vmem:[%s7903_s0 + $0x48] sm:$0xff] }
  0x5d   :  { %550 = vmatpush.msrb.mxu2 %v152_v44  ;;  %572 = vmatpush.msrb.mxu3 %v220_v45  ;;  %v288_v44 = vld [vmem:[%s7904_s1 + $0x6c8] sm:$0xff] }
  0x5e   :  { %417 = vmatmul.f32.vlgmr.msra.gmra.mxu0 %v4248_v46  ;;  %527 = vmatpush.msrb.mxu1 %v88_v47  ;;  %v356_v45 = vld [vmem:[%s7904_s1 + $0x8e8] sm:$0xff]  ;;  %v97_v47 = vld [vmem:[%s7904_s1 + $0xd0] sm:$0xff] }
  0x5f   :  { %505 = vmatpush.msrb.mxu0 %v339_v48  ;;  %551 = vmatpush.msrb.mxu2 %v148_v49  ;;  %v165_v48 = vld [vmem:[%s7904_s1 + $0x2f0] sm:$0xff]  ;;  %v284_v49 = vld [vmem:[%s7904_s1 + $0x6a8] sm:$0xff] }
  0x60   :  { %573 = vmatpush.msrb.mxu3 %v216_v50  ;;  %528 = vmatpush.msrb.mxu1 %v84_v51  ;;  %v352_v50 = vld [vmem:[%s7904_s1 + $0x8c8] sm:$0xff]  ;;  %v93_v51 = vld [vmem:[%s7904_s1 + $0xb0] sm:$0xff] }
  0x61   :  { %506 = vmatpush.msrb.mxu0 %v335_v52  ;;  %552 = vmatpush.msrb.mxu2 %v144_v53  ;;  %v161_v52 = vld [vmem:[%s7904_s1 + $0x2d0] sm:$0xff]  ;;  %v280_v53 = vld [vmem:[%s7904_s1 + $0x688] sm:$0xff] }
  0x62   :  { %574 = vmatpush.msrb.mxu3 %v212_v54  ;;  %529 = vmatpush.msrb.mxu1 %v80_v55  ;;  %v348_v54 = vld [vmem:[%s7904_s1 + $0x8a8] sm:$0xff]  ;;  %v89_v55 = vld [vmem:[%s7904_s1 + $0x90] sm:$0xff] }
  0x63   :  { %507 = vmatpush.msrb.mxu0 %v331_v56  ;;  %553 = vmatpush.msrb.mxu2 %v140_v57  ;;  %v157_v56 = vld [vmem:[%s7904_s1 + $0x2b0] sm:$0xff]  ;;  %v276_v57 = vld [vmem:[%s7904_s1 + $0x668] sm:$0xff] }
  0x64   :  { %575 = vmatpush.msrb.mxu3 %v208_v58  ;;  %530 = vmatpush.msrb.mxu1 %v76_v61  ;;  %v344_v58 = vld [vmem:[%s7904_s1 + $0x888] sm:$0xff]  ;;  %v153_v61 = vld [vmem:[%s7904_s1 + $0x290] sm:$0xff] }
  0x65   :  { %508 = vmatpush.msrb.mxu0 %v327_v60  ;;  %554 = vmatpush.msrb.mxu2 %v136_v62  ;;  %v85_v60 = vld [vmem:[%s7904_s1 + $0x70] sm:$0xff]  ;;  %v272_v62 = vld [vmem:[%s7904_s1 + $0x648] sm:$0xff] }
  0x66   :  { %576 = vmatpush.msrb.mxu3 %v204_v63  ;;  %420 = vmatmul.f32.gmra.mxu0 %v4314_v2  ;;  %v340_v63 = vld [vmem:[%s7904_s1 + $0x868] sm:$0xff] }
  0x67   :  { %585 = vmatpush.msra.mxu0 %v324_v0  ;;  %631 = vmatpush.msra.mxu2 %v133_v1  ;;  %v81_v0 = vld [vmem:[%s7904_s1 + $0x50] sm:$0xff] }
  0x68   :  { %440 = vmatmul.f32.vlgmr.msra.gmra.mxu1 %v4319_v3  ;;  %486 = vmatmul.f32.vlgmr.msra.gmra.mxu3 %v4324_v4  ;;  %v149_v1 = vld [vmem:[%s7904_s1 + $0x270] sm:$0xff] }
  0x69   :  { %531 = vmatpush.msrb.mxu1 %v72_v5  ;;  %577 = vmatpush.msrb.mxu3 %v200_v6  ;;  %v268_v5 = vld [vmem:[%s7904_s1 + $0x628] sm:$0xff] }
  0x6a   :  { %586 = vmatpush.msra.mxu0 %v320_v7  ;;  %632 = vmatpush.msra.mxu2 %v129_v9  ;;  %v336_v6 = vld [vmem:[%s7904_s1 + $0x848] sm:$0xff]  ;;  %v77_v7 = vld [vmem:[%s7904_s1 + $0x30] sm:$0xff] }
  0x6b   :  { %608 = vmatpush.msra.mxu1 %v388_v8  ;;  %654 = vmatpush.msra.mxu3 %v197_v10  ;;  %v145_v8 = vld [vmem:[%s7904_s1 + $0x250] sm:$0xff]  ;;  %v264_v9 = vld [vmem:[%s7904_s1 + $0x608] sm:$0xff] }
  0x6c   :  { %587 = vmatpush.msra.mxu0 %v316_v11  ;;  %633 = vmatpush.msra.mxu2 %v125_v13  ;;  %v332_v10 = vld [vmem:[%s7904_s1 + $0x828] sm:$0xff]  ;;  %v73_v11 = vld [vmem:[%s7904_s1 + $0x10] sm:$0xff] }
  0x6d   :  { %609 = vmatpush.msra.mxu1 %v384_v12  ;;  %655 = vmatpush.msra.mxu3 %v193_v14  ;;  %v141_v12 = vld [vmem:[%s7904_s1 + $0x230] sm:$0xff] }
  0x6e   :  { %588 = vmatpush.msra.mxu0 %v312_v15  ;;  %634 = vmatpush.msra.mxu2 %v121_v17  ;;  %v261_v13 = vld [vmem:[%s7904_s1 + $0x5f0] sm:$0xff]  ;;  %v328_v15 = vld [vmem:[%s7904_s1 + $0x808] sm:$0xff] }
  0x6f   :  { %610 = vmatpush.msra.mxu1 %v380_v16  ;;  %656 = vmatpush.msra.mxu3 %v189_v18  ;;  %v389_v14 = vld [vmem:[%s7904_s1 + $0x9f0] sm:$0xff] }
  0x70   :  { %466 = vmatmul.f32.gmra.mxu2 %v4374_v19  ;;  %589 = vmatpush.msra.mxu0 %v308_v20  ;;  %v137_v16 = vld [vmem:[%s7904_s1 + $0x210] sm:$0xff] }
  0x71   :  { %611 = vmatpush.msra.mxu1 %v376_v21  ;;  %635 = vmatpush.msra.mxu2 %v117_v22  ;;  %v257_v17 = vld [vmem:[%s7904_s1 + $0x5d0] sm:$0xff]  ;;  %v134_v21 = vld [vmem:[%s7904_s1 + $0x1f8] sm:$0xff] }
  0x72   :  { %657 = vmatpush.msra.mxu3 %v185_v23  ;;  %443 = vmatmul.f32.gmra.mxu1 %v4392_v24  ;;  %v325_v18 = vld [vmem:[%s7904_s1 + $0x7f0] sm:$0xff] }
  0x73   :  { %489 = vmatmul.f32.gmra.mxu3 %v4397_v25  ;;  %509 = vmatmul.f32.vlgmr.msrb.gmra.mxu0 %v4402_v26  ;;  %v385_v20 = vld [vmem:[%s7904_s1 + $0x9d0] sm:$0xff] }
  0x74   :  { %612 = vmatpush.msra.mxu1 %v372_v27  ;;  %590 = vmatpush.msra.mxu0 %v304_v28  ;;  %v253_v22 = vld [vmem:[%s7904_s1 + $0x5b0] sm:$0xff]  ;;  %v130_v28 = vld [vmem:[%s7904_s1 + $0x1d8] sm:$0xff] }
  0x75   :  { %636 = vmatpush.msra.mxu2 %v113_v29  ;;  %658 = vmatpush.msra.mxu3 %v181_v30  ;;  %v321_v23 = vld [vmem:[%s7904_s1 + $0x7d0] sm:$0xff] }
  0x76   :  { %613 = vmatpush.msra.mxu1 %v368_v31  ;;  %591 = vmatpush.msra.mxu0 %v300_v32  ;;  %v381_v27 = vld [vmem:[%s7904_s1 + $0x9b0] sm:$0xff]  ;;  %v126_v32 = vld [vmem:[%s7904_s1 + $0x1b8] sm:$0xff] }
  0x77   :  { %637 = vmatpush.msra.mxu2 %v109_v33  ;;  %659 = vmatpush.msra.mxu3 %v177_v34  ;;  %v249_v29 = vld [vmem:[%s7904_s1 + $0x590] sm:$0xff] }
  0x78   :  { %614 = vmatpush.msra.mxu1 %v364_v35  ;;  %592 = vmatpush.msra.mxu0 %v296_v36  ;;  %v317_v30 = vld [vmem:[%s7904_s1 + $0x7b0] sm:$0xff]  ;;  %v122_v36 = vld [vmem:[%s7904_s1 + $0x198] sm:$0xff] }
  0x79   :  { %638 = vmatpush.msra.mxu2 %v105_v37  ;;  %660 = vmatpush.msra.mxu3 %v173_v38  ;;  %v377_v31 = vld [vmem:[%s7904_s1 + $0x990] sm:$0xff] }
  0x7a   :  { %615 = vmatpush.msra.mxu1 %v360_v39  ;;  %593 = vmatpush.msra.mxu0 %v292_v40  ;;  %v313_v33 = vld [vmem:[%s7904_s1 + $0x790] sm:$0xff]  ;;  %v118_v40 = vld [vmem:[%s7904_s1 + $0x178] sm:$0xff] }
  0x7b   :  { %639 = vmatpush.msra.mxu2 %v101_v41  ;;  %661 = vmatpush.msra.mxu3 %v169_v42  ;;  %v245_v34 = vld [vmem:[%s7904_s1 + $0x570] sm:$0xff] }
  0x7c   :  { %512 = vmatmul.f32.gmra.mxu0 %v4458_v43  ;;  %532 = vmatmul.f32.vlgmr.msrb.gmra.mxu1 %v4248_v46  ;;  %v373_v35 = vld [vmem:[%s7904_s1 + $0x970] sm:$0xff] }
  0x7d   :  { %594 = vmatpush.msra.mxu0 %v288_v44  ;;  %616 = vmatpush.msra.mxu1 %v356_v45  ;;  %v241_v37 = vld [vmem:[%s7904_s1 + $0x550] sm:$0xff]  ;;  %v114_v45 = vld [vmem:[%s7904_s1 + $0x158] sm:$0xff] }
  0x7e   :  { %640 = vmatpush.msra.mxu2 %v97_v47  ;;  %662 = vmatpush.msra.mxu3 %v165_v48  ;;  %v309_v38 = vld [vmem:[%s7904_s1 + $0x770] sm:$0xff] }
  0x7f   :  { %595 = vmatpush.msra.mxu0 %v284_v49  ;;  %617 = vmatpush.msra.mxu1 %v352_v50  ;;  %v369_v39 = vld [vmem:[%s7904_s1 + $0x950] sm:$0xff]  ;;  %v110_v50 = vld [vmem:[%s7904_s1 + $0x138] sm:$0xff] }
  0x80   :  { %641 = vmatpush.msra.mxu2 %v93_v51  ;;  %663 = vmatpush.msra.mxu3 %v161_v52  ;;  %v237_v41 = vld [vmem:[%s7904_s1 + $0x530] sm:$0xff] }
  0x81   :  { %555 = vmatmul.f32.vlgmr.msrb.gmra.mxu2 %v4319_v3  ;;  %596 = vmatpush.msra.mxu0 %v280_v53  ;;  %v305_v42 = vld [vmem:[%s7904_s1 + $0x750] sm:$0xff] }
  0x82   :  { %618 = vmatpush.msra.mxu1 %v348_v54  ;;  %642 = vmatpush.msra.mxu2 %v89_v55  ;;  %v365_v44 = vld [vmem:[%s7904_s1 + $0x930] sm:$0xff]  ;;  %v106_v54 = vld [vmem:[%s7904_s1 + $0x118] sm:$0xff] }
  0x83   :  { %664 = vmatpush.msra.mxu3 %v157_v56  ;;  %597 = vmatpush.msra.mxu0 %v276_v57  ;;  %v233_v47 = vld [vmem:[%s7904_s1 + $0x510] sm:$0xff] }
  0x84   :  { %578 = vmatmul.f32.vlgmr.msrb.gmra.mxu3 %v4290_v59  ;;  %619 = vmatpush.msra.mxu1 %v344_v58  ;;  %v301_v48 = vld [vmem:[%s7904_s1 + $0x730] sm:$0xff]  ;;  %v102_v58 = vld [vmem:[%s7904_s1 + $0xf8] sm:$0xff] }
  0x85   :  { %643 = vmatpush.msra.mxu2 %v85_v60  ;;  %665 = vmatpush.msra.mxu3 %v153_v61  ;;  %v361_v49 = vld [vmem:[%s7904_s1 + $0x910] sm:$0xff] }
  0x86   :  { %535 = vmatmul.f32.gmra.mxu1 %v4314_v2  ;;  %598 = vmatpush.msra.mxu0 %v272_v62  ;;  %v229_v51 = vld [vmem:[%s7904_s1 + $0x4f0] sm:$0xff] }
  0x87   :  { %620 = vmatpush.msra.mxu1 %v340_v63  ;;  %644 = vmatpush.msra.mxu2 %v81_v0  ;;  %v297_v52 = vld [vmem:[%s7904_s1 + $0x710] sm:$0xff]  ;;  %v98_v63 = vld [vmem:[%s7904_s1 + $0xd8] sm:$0xff] }
  0x88   :  { %666 = vmatpush.msra.mxu3 %v149_v1  ;;  %599 = vmatpush.msra.mxu0 %v268_v5  ;;  %v357_v53 = vld [vmem:[%s7904_s1 + $0x8f0] sm:$0xff] }
  0x89   :  { %621 = vmatpush.msra.mxu1 %v336_v6  ;;  %645 = vmatpush.msra.mxu2 %v77_v7  ;;  %v225_v55 = vld [vmem:[%s7904_s1 + $0x4d0] sm:$0xff]  ;;  %v94_v6 = vld [vmem:[%s7904_s1 + $0xb8] sm:$0xff] }
  0x8a   :  { %667 = vmatpush.msra.mxu3 %v145_v8  ;;  %558 = vmatmul.f32.gmra.mxu2 %v4392_v24  ;;  %v293_v56 = vld [vmem:[%s7904_s1 + $0x6f0] sm:$0xff] }
  0x8b   :  { %600 = vmatpush.msra.mxu0 %v264_v9  ;;  %622 = vmatpush.msra.mxu1 %v332_v10  ;;  %v353_v57 = vld [vmem:[%s7904_s1 + $0x8d0] sm:$0xff]  ;;  %v90_v10 = vld [vmem:[%s7904_s1 + $0x98] sm:$0xff] }
  0x8c   :  { %646 = vmatpush.msra.mxu2 %v73_v11  ;;  %668 = vmatpush.msra.mxu3 %v141_v12  ;;  %v221_v60 = vld [vmem:[%s7904_s1 + $0x4b0] sm:$0xff] }
  0x8d   :  { %601 = vmatmul.f32.vlgmr.msra.gmra.mxu0 %v4324_v4  ;;  %581 = vmatmul.f32.gmra.mxu3 %v4374_v19  ;;  %v289_v61 = vld [vmem:[%s7904_s1 + $0x6d0] sm:$0xff] }
  0x8e   :  { %677 = vmatpush.msrb.mxu0 %v261_v13  ;;  %723 = vmatpush.msrb.mxu2 %v389_v14  ;;  %v349_v62 = vld [vmem:[%s7904_s1 + $0x8b0] sm:$0xff]  ;;  %v86_v14 = vld [vmem:[%s7904_s1 + $0x78] sm:$0xff] }
  0x8f   :  { %623 = vmatpush.msra.mxu1 %v328_v15  ;;  %669 = vmatpush.msra.mxu3 %v137_v16  ;;  %v217_v0 = vld [vmem:[%s7904_s1 + $0x490] sm:$0xff] }
  0x90   :  { %624 = vmatmul.f32.vlgmr.msra.gmra.mxu1 %v4402_v26  ;;  %678 = vmatpush.msrb.mxu0 %v257_v17  ;;  %v285_v1 = vld [vmem:[%s7904_s1 + $0x6b0] sm:$0xff] }
  0x91   :  { %700 = vmatpush.msrb.mxu1 %v325_v18  ;;  %724 = vmatpush.msrb.mxu2 %v385_v20  ;;  %v345_v5 = vld [vmem:[%s7904_s1 + $0x890] sm:$0xff]  ;;  %v82_v18 = vld [vmem:[%s7904_s1 + $0x58] sm:$0xff] }
  0x92   :  { %746 = vmatpush.msrb.mxu3 %v134_v21  ;;  %679 = vmatpush.msrb.mxu0 %v253_v22  ;;  %v213_v7 = vld [vmem:[%s7904_s1 + $0x470] sm:$0xff] }
  0x93   :  { %701 = vmatpush.msrb.mxu1 %v321_v23  ;;  %725 = vmatpush.msrb.mxu2 %v381_v27  ;;  %v281_v8 = vld [vmem:[%s7904_s1 + $0x690] sm:$0xff]  ;;  %v78_v23 = vld [vmem:[%s7904_s1 + $0x38] sm:$0xff] }
  0x94   :  { %747 = vmatpush.msrb.mxu3 %v130_v28  ;;  %680 = vmatpush.msrb.mxu0 %v249_v29  ;;  %v341_v9 = vld [vmem:[%s7904_s1 + $0x870] sm:$0xff]  ;;  %v198_v27 = vld [vmem:[%s7904_s1 + $0x3f8] sm:$0xff] }
  0x95   :  { %702 = vmatpush.msrb.mxu1 %v317_v30  ;;  %726 = vmatpush.msrb.mxu2 %v377_v31  ;;  %v209_v11 = vld [vmem:[%s7904_s1 + $0x450] sm:$0xff]  ;;  %v326_v28 = vld [vmem:[%s7904_s1 + $0x7f8] sm:$0xff] }
  0x96   :  { %748 = vmatpush.msrb.mxu3 %v126_v32  ;;  %604 = vmatmul.f32.gmra.mxu0 %v4397_v25  ;;  %v277_v12 = vld [vmem:[%s7904_s1 + $0x670] sm:$0xff]  ;;  %v74_v30 = vld [vmem:[%s7904_s1 + $0x18] sm:$0xff] }
  0x97   :  { %703 = vmatpush.msrb.mxu1 %v313_v33  ;;  %681 = vmatpush.msrb.mxu0 %v245_v34  ;;  %v337_v13 = vld [vmem:[%s7904_s1 + $0x850] sm:$0xff]  ;;  %v194_v31 = vld [vmem:[%s7904_s1 + $0x3d8] sm:$0xff] }
  0x98   :  { %727 = vmatpush.msrb.mxu2 %v373_v35  ;;  %749 = vmatpush.msrb.mxu3 %v122_v36  ;;  %v205_v15 = vld [vmem:[%s7904_s1 + $0x430] sm:$0xff]  ;;  %v262_v32 = vld [vmem:[%s7904_s1 + $0x5f8] sm:$0xff] }
  0x99   :  { %627 = vmatmul.f32.gmra.mxu1 %v4458_v43  ;;  %682 = vmatpush.msrb.mxu0 %v241_v37  ;;  %v273_v16 = vld [vmem:[%s7904_s1 + $0x650] sm:$0xff]  ;;  %v322_v33 = vld [vmem:[%s7904_s1 + $0x7d8] sm:$0xff] }
  0x9a   :  { %704 = vmatpush.msrb.mxu1 %v309_v38  ;;  %728 = vmatpush.msrb.mxu2 %v369_v39  ;;  %v333_v17 = vld [vmem:[%s7904_s1 + $0x830] sm:$0xff]  ;;  %v390_v34 = vld [vmem:[%s7904_s1 + $0x9f8] sm:$0xff] }
  0x9b   :  { %750 = vmatpush.msrb.mxu3 %v118_v40  ;;  %683 = vmatpush.msrb.mxu0 %v237_v41  ;;  %v201_v20 = vld [vmem:[%s7904_s1 + $0x410] sm:$0xff]  ;;  %v190_v35 = vld [vmem:[%s7904_s1 + $0x3b8] sm:$0xff] }
  0x9c   :  { %705 = vmatpush.msrb.mxu1 %v305_v42  ;;  %729 = vmatpush.msrb.mxu2 %v365_v44  ;;  %v269_v21 = vld [vmem:[%s7904_s1 + $0x630] sm:$0xff]  ;;  %v258_v36 = vld [vmem:[%s7904_s1 + $0x5d8] sm:$0xff] }
  0x9d   :  { %751 = vmatpush.msrb.mxu3 %v114_v45  ;;  %684 = vmatpush.msrb.mxu0 %v233_v47  ;;  %v329_v22 = vld [vmem:[%s7904_s1 + $0x810] sm:$0xff]  ;;  %v318_v37 = vld [vmem:[%s7904_s1 + $0x7b8] sm:$0xff] }
  0x9e   :  { %706 = vmatpush.msrb.mxu1 %v301_v48  ;;  %730 = vmatpush.msrb.mxu2 %v361_v49  ;;  %v265_v29 = vld [vmem:[%s7904_s1 + $0x610] sm:$0xff]  ;;  %v386_v38 = vld [vmem:[%s7904_s1 + $0x9d8] sm:$0xff] }
  0x9f   :  { %752 = vmatpush.msrb.mxu3 %v110_v50  ;;  %647 = vmatmul.f32.vlgmr.msra.gmra.mxu2 %v4248_v46  ;;  %v186_v39 = vld [vmem:[%s7904_s1 + $0x398] sm:$0xff] }
  0xa0   :  { %685 = vmatpush.msrb.mxu0 %v229_v51  ;;  %707 = vmatpush.msrb.mxu1 %v297_v52  ;;  %v254_v40 = vld [vmem:[%s7904_s1 + $0x5b8] sm:$0xff] }
  0xa1   :  { %731 = vmatpush.msrb.mxu2 %v357_v53  ;;  %753 = vmatpush.msrb.mxu3 %v106_v54  ;;  %v314_v41 = vld [vmem:[%s7904_s1 + $0x798] sm:$0xff] }
  0xa2   :  { %686 = vmatpush.msrb.mxu0 %v225_v55  ;;  %708 = vmatpush.msrb.mxu1 %v293_v56  ;;  %v382_v42 = vld [vmem:[%s7904_s1 + $0x9b8] sm:$0xff] }
  0xa3   :  { %732 = vmatpush.msrb.mxu2 %v353_v57  ;;  %754 = vmatpush.msrb.mxu3 %v102_v58  ;;  %v182_v44 = vld [vmem:[%s7904_s1 + $0x378] sm:$0xff] }
  0xa4   :  { %687 = vmatpush.msrb.mxu0 %v221_v60  ;;  %709 = vmatpush.msrb.mxu1 %v289_v61  ;;  %v250_v45 = vld [vmem:[%s7904_s1 + $0x598] sm:$0xff] }
  0xa5   :  { %733 = vmatpush.msrb.mxu2 %v349_v62  ;;  %755 = vmatpush.msrb.mxu3 %v98_v63  ;;  %v310_v47 = vld [vmem:[%s7904_s1 + $0x778] sm:$0xff] }
  0xa6   :  { %688 = vmatpush.msrb.mxu0 %v217_v0  ;;  %710 = vmatpush.msrb.mxu1 %v285_v1  ;;  %v378_v48 = vld [vmem:[%s7904_s1 + $0x998] sm:$0xff] }
  0xa7   :  { %734 = vmatpush.msrb.mxu2 %v345_v5  ;;  %756 = vmatpush.msrb.mxu3 %v94_v6  ;;  %v246_v49 = vld [vmem:[%s7904_s1 + $0x578] sm:$0xff] }
  0xa8   :  { %650 = vmatmul.f32.gmra.mxu2 %v4314_v2  ;;  %689 = vmatpush.msrb.mxu0 %v213_v7  ;;  %v178_v50 = vld [vmem:[%s7904_s1 + $0x358] sm:$0xff] }
  0xa9   :  { %711 = vmatpush.msrb.mxu1 %v281_v8  ;;  %735 = vmatpush.msrb.mxu2 %v341_v9  ;;  %v306_v51 = vld [vmem:[%s7904_s1 + $0x758] sm:$0xff] }
  0xaa   :  { %757 = vmatpush.msrb.mxu3 %v90_v10  ;;  %690 = vmatpush.msrb.mxu0 %v209_v11  ;;  %v374_v52 = vld [vmem:[%s7904_s1 + $0x978] sm:$0xff] }
  0xab   :  { %670 = vmatmul.f32.vlgmr.msra.gmra.mxu3 %v4319_v3  ;;  %712 = vmatpush.msrb.mxu1 %v277_v12  ;;  %v174_v53 = vld [vmem:[%s7904_s1 + $0x338] sm:$0xff] }
  0xac   :  { %736 = vmatpush.msrb.mxu2 %v337_v13  ;;  %758 = vmatpush.msrb.mxu3 %v86_v14  ;;  %v242_v54 = vld [vmem:[%s7904_s1 + $0x558] sm:$0xff] }
  0xad   :  { %691 = vmatpush.msrb.mxu0 %v205_v15  ;;  %713 = vmatpush.msrb.mxu1 %v273_v16  ;;  %v302_v55 = vld [vmem:[%s7904_s1 + $0x738] sm:$0xff] }
  0xae   :  { %737 = vmatpush.msrb.mxu2 %v333_v17  ;;  %759 = vmatpush.msrb.mxu3 %v82_v18  ;;  %v370_v56 = vld [vmem:[%s7904_s1 + $0x958] sm:$0xff] }
  0xaf   :  { %692 = vmatpush.msrb.mxu0 %v201_v20  ;;  %714 = vmatpush.msrb.mxu1 %v269_v21  ;;  %v170_v57 = vld [vmem:[%s7904_s1 + $0x318] sm:$0xff] }
  0xb0   :  { %738 = vmatpush.msrb.mxu2 %v329_v22  ;;  %760 = vmatpush.msrb.mxu3 %v78_v23  ;;  %v238_v58 = vld [vmem:[%s7904_s1 + $0x538] sm:$0xff] }
  0xb1   :  { %739 = vmatmul.f32.vlgmr.msrb.gmra.mxu2 %v4402_v26  ;;  %769 = vmatpush.msra.mxu0 %v198_v27  ;;  %v298_v60 = vld [vmem:[%s7904_s1 + $0x718] sm:$0xff] }
  0xb2   :  { %815 = vmatpush.msra.mxu2 %v326_v28  ;;  %715 = vmatpush.msrb.mxu1 %v265_v29  ;;  %v366_v61 = vld [vmem:[%s7904_s1 + $0x938] sm:$0xff] }
  0xb3   :  { %761 = vmatpush.msrb.mxu3 %v74_v30  ;;  %693 = vmatmul.f32.vlgmr.msrb.gmra.mxu0 %v4290_v59  ;;  %v166_v62 = vld [vmem:[%s7904_s1 + $0x2f8] sm:$0xff] }
  0xb4   :  { %673 = vmatmul.f32.gmra.mxu3 %v4392_v24  ;;  %770 = vmatpush.msra.mxu0 %v194_v31  ;;  %v234_v63 = vld [vmem:[%s7904_s1 + $0x518] sm:$0xff] }
  0xb5   :  { %792 = vmatpush.msra.mxu1 %v262_v32  ;;  %816 = vmatpush.msra.mxu2 %v322_v33  ;;  %v294_v0 = vld [vmem:[%s7904_s1 + $0x6f8] sm:$0xff] }
  0xb6   :  { %838 = vmatpush.msra.mxu3 %v390_v34  ;;  %716 = vmatmul.f32.vlgmr.msrb.gmra.mxu1 %v4324_v4  ;;  %v362_v1 = vld [vmem:[%s7904_s1 + $0x918] sm:$0xff] }
  0xb7   :  { %771 = vmatpush.msra.mxu0 %v190_v35  ;;  %793 = vmatpush.msra.mxu1 %v258_v36  ;;  %v162_v5 = vld [vmem:[%s7904_s1 + $0x2d8] sm:$0xff]  ;;  %v929_v35 = vld [vmem:[%s7906_s3 + $0x1e0] sm:$0xff] }
  0xb8   :  { %817 = vmatpush.msra.mxu2 %v318_v37  ;;  %839 = vmatpush.msra.mxu3 %v386_v38  ;;  %v230_v6 = vld [vmem:[%s7904_s1 + $0x4f8] sm:$0xff]  ;;  %v925_v38 = vld [vmem:[%s7906_s3 + $0x1c0] sm:$0xff] }
  0xb9   :  { %772 = vmatpush.msra.mxu0 %v186_v39  ;;  %794 = vmatpush.msra.mxu1 %v254_v40  ;;  %v290_v7 = vld [vmem:[%s7904_s1 + $0x6d8] sm:$0xff]  ;;  %v993_v39 = vld [vmem:[%s7906_s3 + $0x3e0] sm:$0xff] }
  0xba   :  { %818 = vmatpush.msra.mxu2 %v314_v41  ;;  %840 = vmatpush.msra.mxu3 %v382_v42  ;;  %v358_v8 = vld [vmem:[%s7904_s1 + $0x8f8] sm:$0xff]  ;;  %v921_v40 = vld [vmem:[%s7906_s3 + $0x1a0] sm:$0xff] }
  0xbb   :  { %742 = vmatmul.f32.gmra.mxu2 %v4458_v43  ;;  %773 = vmatpush.msra.mxu0 %v182_v44  ;;  %v158_v9 = vld [vmem:[%s7904_s1 + $0x2b8] sm:$0xff]  ;;  %v985_v41 = vld [vmem:[%s7906_s3 + $0x3a0] sm:$0xff] }
  0xbc   :  { %795 = vmatpush.msra.mxu1 %v250_v45  ;;  %819 = vmatpush.msra.mxu2 %v310_v47  ;;  %v226_v10 = vld [vmem:[%s7904_s1 + $0x4d8] sm:$0xff]  ;;  %v909_v44 = vld [vmem:[%s7906_s3 + $0x140] sm:$0xff] }
  0xbd   :  { %841 = vmatpush.msra.mxu3 %v378_v48  ;;  %696 = vmatmul.f32.gmra.mxu0 %v4374_v19  ;;  %v286_v11 = vld [vmem:[%s7904_s1 + $0x6b8] sm:$0xff]  ;;  %v981_v47 = vld [vmem:[%s7906_s3 + $0x380] sm:$0xff] }
  0xbe   :  { %796 = vmatpush.msra.mxu1 %v246_v49  ;;  %774 = vmatpush.msra.mxu0 %v178_v50  ;;  %v354_v12 = vld [vmem:[%s7904_s1 + $0x8d8] sm:$0xff]  ;;  %v977_v48 = vld [vmem:[%s7906_s3 + $0x360] sm:$0xff] }
  0xbf   :  { %820 = vmatpush.msra.mxu2 %v306_v51  ;;  %842 = vmatpush.msra.mxu3 %v374_v52  ;;  %v154_v13 = vld [vmem:[%s7904_s1 + $0x298] sm:$0xff]  ;;  %v901_v49 = vld [vmem:[%s7906_s3 + $0x100] sm:$0xff] }
  0xc0   :  { %719 = vmatmul.f32.gmra.mxu1 %v4397_v25  ;;  %775 = vmatpush.msra.mxu0 %v174_v53  ;;  %v282_v14 = vld [vmem:[%s7904_s1 + $0x698] sm:$0xff]  ;;  %v1053_v50 = vld [vmem:[%s7906_s3 + $0x5c0] sm:$0xff] }
  0xc1   :  { %797 = vmatpush.msra.mxu1 %v242_v54  ;;  %821 = vmatpush.msra.mxu2 %v302_v55  ;;  %v350_v15 = vld [vmem:[%s7904_s1 + $0x8b8] sm:$0xff]  ;;  %v897_v51 = vld [vmem:[%s7906_s3 + $0xe0] sm:$0xff] }
  0xc2   :  { %843 = vmatpush.msra.mxu3 %v370_v56  ;;  %776 = vmatpush.msra.mxu0 %v170_v57  ;;  %v150_v16 = vld [vmem:[%s7904_s1 + $0x278] sm:$0xff]  ;;  %v1049_v52 = vld [vmem:[%s7906_s3 + $0x5a0] sm:$0xff] }
  0xc3   :  { %798 = vmatpush.msra.mxu1 %v238_v58  ;;  %822 = vmatpush.msra.mxu2 %v298_v60  ;;  %v218_v17 = vld [vmem:[%s7904_s1 + $0x498] sm:$0xff]  ;;  %v969_v53 = vld [vmem:[%s7906_s3 + $0x320] sm:$0xff] }
  0xc4   :  { %844 = vmatpush.msra.mxu3 %v366_v61  ;;  %777 = vmatpush.msra.mxu0 %v166_v62  ;;  %v278_v18 = vld [vmem:[%s7904_s1 + $0x678] sm:$0xff]  ;;  %v893_v55 = vld [vmem:[%s7906_s3 + $0xc0] sm:$0xff] }
  0xc5   :  { %799 = vmatpush.msra.mxu1 %v234_v63  ;;  %823 = vmatpush.msra.mxu2 %v294_v0  ;;  %v346_v20 = vld [vmem:[%s7904_s1 + $0x898] sm:$0xff]  ;;  %v1045_v57 = vld [vmem:[%s7906_s3 + $0x580] sm:$0xff] }
  0xc6   :  { %845 = vmatpush.msra.mxu3 %v362_v1  ;;  %778 = vmatpush.msra.mxu0 %v162_v5  ;;  %v146_v21 = vld [vmem:[%s7904_s1 + $0x258] sm:$0xff]  ;;  %v965_v58 = vld [vmem:[%s7906_s3 + $0x300] sm:$0xff] }
  0xc7   :  { %762 = vmatmul.f32.vlgmr.msrb.gmra.mxu3 %v4248_v46  ;;  %800 = vmatpush.msra.mxu1 %v230_v6  ;;  %v222_v46 = vld [vmem:[%s7904_s1 + $0x4b8] sm:$0xff]  ;;  %v889_v62 = vld [vmem:[%s7906_s3 + $0xa0] sm:$0xff] }
  0xc8   :  { %824 = vmatpush.msra.mxu2 %v290_v7  ;;  %846 = vmatpush.msra.mxu3 %v358_v8  ;;  %v214_v22 = vld [vmem:[%s7904_s1 + $0x478] sm:$0xff]  ;;  %v464_v61 = vpop.f32.mrf.mxu2  ;;  %v1041_v63 = vld [vmem:[%s7906_s3 + $0x560] sm:$0xff] }
  0xc9   :  { %779 = vmatpush.msra.mxu0 %v158_v9  ;;  %801 = vmatpush.msra.mxu1 %v226_v10  ;;  %v274_v23 = vld [vmem:[%s7904_s1 + $0x658] sm:$0xff]  ;;  %v961_v0 = vld [vmem:[%s7906_s3 + $0x2e0] sm:$0xff] }
  0xca   :  { %825 = vmatpush.msra.mxu2 %v286_v11  ;;  %847 = vmatpush.msra.mxu3 %v354_v12  ;;  %v342_v27 = vld [vmem:[%s7904_s1 + $0x878] sm:$0xff]  ;;  %v885_v1 = vld [vmem:[%s7906_s3 + $0x80] sm:$0xff] }
  0xcb   :  { %780 = vmatpush.msra.mxu0 %v154_v13  ;;  %802 = vmatpush.msra.mxu1 %v222_v46  ;;  %v142_v28 = vld [vmem:[%s7904_s1 + $0x238] sm:$0xff]  ;;  %v1037_v6 = vld [vmem:[%s7906_s3 + $0x540] sm:$0xff] }
  0xcc   :  { %826 = vmatpush.msra.mxu2 %v282_v14  ;;  %848 = vmatpush.msra.mxu3 %v350_v15  ;;  %v210_v29 = vld [vmem:[%s7904_s1 + $0x458] sm:$0xff]  ;;  %v957_v7 = vld [vmem:[%s7906_s3 + $0x2c0] sm:$0xff] }
  0xcd   :  { %781 = vmatpush.msra.mxu0 %v150_v16  ;;  %803 = vmatpush.msra.mxu1 %v218_v17  ;;  %v270_v30 = vld [vmem:[%s7904_s1 + $0x638] sm:$0xff]  ;;  %v881_v8 = vld [vmem:[%s7906_s3 + $0x60] sm:$0xff] }
  0xce   :  { %827 = vmatpush.msra.mxu2 %v278_v18  ;;  %849 = vmatpush.msra.mxu3 %v346_v20  ;;  %v338_v31 = vld [vmem:[%s7904_s1 + $0x858] sm:$0xff]  ;;  %v1033_v10 = vld [vmem:[%s7906_s3 + $0x520] sm:$0xff] }
  0xcf   :  { %782 = vmatpush.msra.mxu0 %v146_v21  ;;  %765 = vmatmul.f32.gmra.mxu3 %v4314_v2  ;;  %v138_v32 = vld [vmem:[%s7904_s1 + $0x218] sm:$0xff]  ;;  %v953_v11 = vld [vmem:[%s7906_s3 + $0x2a0] sm:$0xff] }
  0xd0   :  { %804 = vmatpush.msra.mxu1 %v214_v22  ;;  %828 = vmatpush.msra.mxu2 %v274_v23  ;;  %v206_v33 = vld [vmem:[%s7904_s1 + $0x438] sm:$0xff]  ;;  %v877_v13 = vld [vmem:[%s7906_s3 + $0x40] sm:$0xff] }
  0xd1   :  { %850 = vmatpush.msra.mxu3 %v342_v27  ;;  %783 = vmatpush.msra.mxu0 %v142_v28  ;;  %v266_v2 = vld [vmem:[%s7904_s1 + $0x618] sm:$0xff]  ;;  %v1029_v14 = vld [vmem:[%s7906_s3 + $0x500] sm:$0xff] }
  0xd2   :  { %805 = vmatpush.msra.mxu1 %v210_v29  ;;  %v334_v34 = vld [vmem:[%s7904_s1 + $0x838] sm:$0xff]  ;;  %829 = vmatpush.msra.mxu2 %v270_v30  ;;  %v949_v15 = vld [vmem:[%s7906_s3 + $0x280] sm:$0xff]  ;;  %v930_v29 = vld [vmem:[%s7906_s3 + $0x1e8] sm:$0xff] }
  0xd3   :  { %851 = vmatpush.msra.mxu3 %v338_v31  ;;  %784 = vmatpush.msra.mxu0 %v138_v32  ;;  %v202_v36 = vld [vmem:[%s7904_s1 + $0x418] sm:$0xff]  ;;  %v873_v16 = vld [vmem:[%s7906_s3 + $0x20] sm:$0xff] }
  0xd4   :  { %806 = vmatpush.msra.mxu1 %v206_v33  ;;  %830 = vmatpush.msra.mxu2 %v266_v2  ;;  %v330_v37 = vld [vmem:[%s7904_s1 + $0x818] sm:$0xff]  ;;  %v1025_v18 = vld [vmem:[%s7906_s3 + $0x4e0] sm:$0xff]  ;;  %v926_v2 = vld [vmem:[%s7906_s3 + $0x1c8] sm:$0xff] }
  0xd5   :  { %852 = vmatpush.msra.mxu3 %v334_v34  ;;  %785 = vmatmul.f32.vlgmr.msra.gmra.mxu0 %v4319_v3  ;;  %v989_v3 = vld [vmem:[%s7906_s3 + $0x3c0] sm:$0xff] }
  0xd6   :  { %831 = vmatmul.f32.vlgmr.msra.gmra.mxu2 %v4324_v4  ;;  %1135 = vmatpush.msrb.mxu0 %v929_v35  ;;  %v917_v4 = vld [vmem:[%s7906_s3 + $0x180] sm:$0xff] }
  0xd7   :  { %807 = vmatpush.msra.mxu1 %v202_v36  ;;  %853 = vmatpush.msra.mxu3 %v330_v37  ;;  %v945_v20 = vld [vmem:[%s7906_s3 + $0x260] sm:$0xff]  ;;  %v922_v37 = vld [vmem:[%s7906_s3 + $0x1a8] sm:$0xff] }
  0xd8   :  { %808 = vmatmul.f32.vlgmr.msra.gmra.mxu1 %v4290_v59  ;;  %854 = vmatmul.f32.vlgmr.msra.gmra.mxu3 %v4402_v26  ;;  %v4982_v59 = vld [vmem:[%s7905_s2] sm:$0xf] }
  0xd9   :  { %1136 = vmatpush.msrb.mxu0 %v925_v38  ;;  %1158 = vmatpush.msrb.mxu1 %v993_v39  ;;  %v913_v26 = vld [vmem:[%s7906_s3 + $0x160] sm:$0xff]  ;;  %v393_v45 = vperm.slane %v4982_v59, 0 }
  0xda   :  { %v869_v23 = vld [vmem:[%s7906_s3] sm:$0xff] }
  0xdb   :  { %1137 = vmatpush.msrb.mxu0 %v921_v40  ;;  %1159 = vmatpush.msrb.mxu1 %v989_v3  ;;  %v418_v42 = vpop.f32.mrf.mxu0  ;;  %v1021_v28 = vld [vmem:[%s7906_s3 + $0x4c0] sm:$0xff]  ;;  %v994_v40 = vld [vmem:[%s7906_s3 + $0x3e8] sm:$0xff] }
  0xdc   :  { %v941_v30 = vld [vmem:[%s7906_s3 + $0x240] sm:$0xff] }
  0xdd   :  { %1138 = vmatpush.msrb.mxu0 %v917_v4  ;;  %1160 = vmatpush.msrb.mxu1 %v985_v41  ;;  %v937_v34 = vld [vmem:[%s7906_s3 + $0x220] sm:$0xff]  ;;  %v918_v4 = vld [vmem:[%s7906_s3 + $0x188] sm:$0xff] }
  0xde   :  { %788 = vmatmul.f32.gmra.mxu0 %v4392_v24  ;;  %834 = vmatmul.f32.gmra.mxu2 %v4397_v25  ;;  %v905_v24 = vld [vmem:[%s7906_s3 + $0x120] sm:$0xff]  ;;  %v990_v41 = vld [vmem:[%s7906_s3 + $0x3c8] sm:$0xff] }
  0xdf   :  { %1139 = vmatpush.msrb.mxu0 %v913_v26  ;;  %v1057_v25 = vld [vmem:[%s7906_s3 + $0x5e0] sm:$0xff]  ;;  %1161 = vmatpush.msrb.mxu1 %v981_v47  ;;  %v914_v47 = vld [vmem:[%s7906_s3 + $0x168] sm:$0xff] }
  0xe0   :  { %811 = vmatmul.f32.gmra.mxu1 %v4374_v19  ;;  %857 = vmatmul.f32.gmra.mxu3 %v4458_v43  ;;  %v419_v19 = vadd.f32 %v418_v42, %v393_v45  ;;  %v973_v43 = vld [vmem:[%s7906_s3 + $0x340] sm:$0xff] }
  0xe1   :  { %1140 = vmatpush.msrb.mxu0 %v909_v44  ;;  %1181 = vmatpush.msrb.mxu2 %v1057_v25  ;;  %v1017_v36 = vld [vmem:[%s7906_s3 + $0x4a0] sm:$0xff] }
  0xe2   :  { %1162 = vmatpush.msrb.mxu1 %v977_v48  ;;  %v933_v38 = vld [vmem:[%s7906_s3 + $0x200] sm:$0xff] }
  0xe3   :  { %1141 = vmatpush.msrb.mxu0 %v905_v24  ;;  %1182 = vmatpush.msrb.mxu2 %v1053_v50  ;;  %v421_v60 = vpop.f32.mrf.mxu0  ;;  %v1013_v3 = vld [vmem:[%s7906_s3 + $0x480] sm:$0xff]  ;;  %v986_v24 = vld [vmem:[%s7906_s3 + $0x3a8] sm:$0xff] }
  0xe4   :  { %1163 = vmatpush.msrb.mxu1 %v973_v43  ;;  %v422_v12 = vadd.f32 %v421_v60, %v393_v45  ;;  %v1009_v45 = vld [vmem:[%s7906_s3 + $0x460] sm:$0xff]  ;;  %v982_v50 = vld [vmem:[%s7906_s3 + $0x388] sm:$0xff] }
  0xe5   :  { %1142 = vmatpush.msrb.mxu0 %v901_v49  ;;  %v441_v54 = vpop.f32.mrf.mxu1  ;;  %1183 = vmatpush.msrb.mxu2 %v1049_v52  ;;  %v1005_v48 = vld [vmem:[%s7906_s3 + $0x440] sm:$0xff]  ;;  %v910_v49 = vld [vmem:[%s7906_s3 + $0x148] sm:$0xff] }
  0xe6   :  { %v442_v56 = vadd.f32 %v441_v54, %v419_v19  ;;  %1164 = vmatpush.msrb.mxu1 %v969_v53  ;;  %v394_v19 = vperm.slane %v4982_v59, 1  ;;  %v1001_v43 = vld [vmem:[%s7906_s3 + $0x420] sm:$0xff]  ;;  %v978_v52 = vld [vmem:[%s7906_s3 + $0x368] sm:$0xff] }
  0xe7   :  { %1143 = vmatpush.msrb.mxu0 %v897_v51  ;;  %1184 = vmatpush.msrb.mxu2 %v1045_v57  ;;  %v906_v51 = vld [vmem:[%s7906_s3 + $0x128] sm:$0xff]  ;;  %v997_v53 = vld [vmem:[%s7906_s3 + $0x400] sm:$0xff] }
  0xe8   :  { %1165 = vmatpush.msrb.mxu1 %v965_v58  ;;  %v465_v5 = vadd.f32 %v464_v61, %v442_v56  ;;  %v1058_v54 = vld [vmem:[%s7906_s3 + $0x5e8] sm:$0xff]  ;;  %v1121_v58 = vld [vmem:[%s7906_s3 + $0x7e0] sm:$0xff] }
  0xe9   :  { %1144 = vmatpush.msrb.mxu0 %v893_v55  ;;  %1185 = vmatpush.msrb.mxu2 %v1041_v63  ;;  %v902_v55 = vld [vmem:[%s7906_s3 + $0x108] sm:$0xff] }
  0xea   :  { %1166 = vmatpush.msrb.mxu1 %v961_v0  ;;  %v974_v57 = vld [vmem:[%s7906_s3 + $0x348] sm:$0xff]  ;;  %1204 = vmatpush.msrb.mxu3 %v1121_v58  ;;  %v1081_v58 = vld [vmem:[%s7906_s3 + $0x6a0] sm:$0xff] }
  0xeb   :  { %1145 = vmatpush.msrb.mxu0 %v889_v62  ;;  %v487_v9 = vpop.f32.mrf.mxu3  ;;  %1186 = vmatpush.msrb.mxu2 %v1037_v6  ;;  %v1054_v60 = vld [vmem:[%s7906_s3 + $0x5c8] sm:$0xff] }
  0xec   :  { %1167 = vmatpush.msrb.mxu1 %v957_v7  ;;  %v488_v46 = vadd.f32 %v487_v9, %v465_v5  ;;  %v898_v61 = vld [vmem:[%s7906_s3 + $0xe8] sm:$0xff]  ;;  %v1113_v9 = vld [vmem:[%s7906_s3 + $0x7a0] sm:$0xff] }
  0xed   :  { %1146 = vmatpush.msrb.mxu0 %v885_v1  ;;  %1187 = vmatpush.msrb.mxu2 %v1033_v10  ;;  %v970_v63 = vld [vmem:[%s7906_s3 + $0x328] sm:$0xff]  ;;  %v1117_v1 = vld [vmem:[%s7906_s3 + $0x7c0] sm:$0xff] }
  0xee   :  { %1168 = vmatpush.msrb.mxu1 %v953_v11  ;;  %v1050_v5 = vld [vmem:[%s7906_s3 + $0x5a8] sm:$0xff]  ;;  %1205 = vmatpush.msrb.mxu3 %v1117_v1  ;;  %v987_v1 = vld [vmem:[%s7906_s3 + $0x3b0] sm:$0xff] }
  0xef   :  { %1147 = vmatpush.msrb.mxu0 %v881_v8  ;;  %v444_v17 = vpop.f32.mrf.mxu1  ;;  %1188 = vmatpush.msrb.mxu2 %v1029_v14  ;;  %v894_v6 = vld [vmem:[%s7906_s3 + $0xc8] sm:$0xff]  ;;  %v1109_v14 = vld [vmem:[%s7906_s3 + $0x780] sm:$0xff] }
  0xf0   :  { %v445_v21 = vadd.f32 %v444_v17, %v422_v12  ;;  %v510_v22 = vpop.f32.mrf.mxu0  ;;  %1169 = vmatpush.msrb.mxu1 %v949_v15  ;;  %v966_v8 = vld [vmem:[%s7906_s3 + $0x308] sm:$0xff]  ;;  %1206 = vmatpush.msrb.mxu3 %v1113_v9  ;;  %v1073_v9 = vld [vmem:[%s7906_s3 + $0x660] sm:$0xff] }
  0xf1   :  { %1148 = vmatpush.msrb.mxu0 %v877_v13  ;;  %v511_v27 = vadd.f32 %v510_v22, %v488_v46  ;;  %1189 = vmatpush.msrb.mxu2 %v1025_v18  ;;  %v1046_v10 = vld [vmem:[%s7906_s3 + $0x588] sm:$0xff] }
  0xf2   :  { %1170 = vmatpush.msrb.mxu1 %v945_v20  ;;  %v890_v11 = vld [vmem:[%s7906_s3 + $0xa8] sm:$0xff]  ;;  %1207 = vmatpush.msrb.mxu3 %v1109_v14  ;;  %v1105_v20 = vld [vmem:[%s7906_s3 + $0x760] sm:$0xff]  ;;  %v975_v14 = vld [vmem:[%s7906_s3 + $0x350] sm:$0xff] }
  0xf3   :  { %1149 = vmatpush.msrb.mxu0 %v873_v16  ;;  %v467_v31 = vpop.f32.mrf.mxu2  ;;  %v5094_v32 = vmax.f32 %v511_v27, 0.0  ;;  %1190 = vmatpush.msrb.mxu2 %v1021_v28  ;;  %v962_v13 = vld [vmem:[%s7906_s3 + $0x2e8] sm:$0xff] }
  0xf4   :  { %v468_v33 = vadd.f32 %v467_v31, %v445_v21  ;;  %1171 = vmatpush.msrb.mxu1 %v941_v30  ;;  %v1042_v15 = vld [vmem:[%s7906_s3 + $0x568] sm:$0xff]  ;;  %1208 = vmatpush.msrb.mxu3 %v1105_v20 }
  0xf5   :  { %1150 = vmatpush.msrb.mxu0 %v869_v23  ;;  %1191 = vmatpush.msrb.mxu2 %v1017_v36  ;;  %v886_v16 = vld [vmem:[%s7906_s3 + $0x88] sm:$0xff]  ;;  %v1097_v36 = vld [vmem:[%s7906_s3 + $0x720] sm:$0xff] }
  0xf6   :  { %v490_v35 = vpop.f32.mrf.mxu3  ;;  %1151 = vmatmul.f32.vlgmr.msrb.gmra.mxu0 %v5094_v32  ;;  %1172 = vmatpush.msrb.mxu1 %v937_v34  ;;  %v958_v17 = vld [vmem:[%s7906_s3 + $0x2c8] sm:$0xff] }
  0xf7   :  { %1227 = vmatpush.msra.mxu0 %v930_v29  ;;  %v491_v39 = vadd.f32 %v490_v35, %v468_v33  ;;  %1192 = vmatpush.msrb.mxu2 %v1013_v3  ;;  %v1038_v21 = vld [vmem:[%s7906_s3 + $0x548] sm:$0xff]  ;;  %v1101_v29 = vld [vmem:[%s7906_s3 + $0x740] sm:$0xff] }
  0xf8   :  { %1173 = vmatpush.msrb.mxu1 %v933_v38  ;;  %v882_v22 = vld [vmem:[%s7906_s3 + $0x68] sm:$0xff]  ;;  %1209 = vmatpush.msrb.mxu3 %v1101_v29  ;;  %v891_v29 = vld [vmem:[%s7906_s3 + $0xb0] sm:$0xff] }
  0xf9   :  { %1228 = vmatpush.msra.mxu0 %v926_v2  ;;  %v513_v26 = vpop.f32.mrf.mxu0  ;;  %v533_v44 = vpop.f32.mrf.mxu1  ;;  %1193 = vmatpush.msrb.mxu2 %v1009_v45  ;;  %v954_v28 = vld [vmem:[%s7906_s3 + $0x2a8] sm:$0xff] }
  0xfa   :  { %v514_v42 = vadd.f32 %v513_v26, %v491_v39  ;;  %1250 = vmatpush.msra.mxu1 %v994_v40  ;;  %v534_v56 = vadd.f32 %v533_v44, %v394_v19  ;;  %v1034_v30 = vld [vmem:[%s7906_s3 + $0x528] sm:$0xff]  ;;  %1210 = vmatpush.msrb.mxu3 %v1097_v36 }
  0xfb   :  { %1229 = vmatpush.msra.mxu0 %v922_v37  ;;  %1194 = vmatpush.msrb.mxu2 %v1005_v48  ;;  %v878_v31 = vld [vmem:[%s7906_s3 + $0x48] sm:$0xff] }
  0xfc   :  { %v5133_v25 = vmax.f32 %v514_v42, 0.0  ;;  %1251 = vmatpush.msra.mxu1 %v990_v41  ;;  %v950_v2 = vld [vmem:[%s7906_s3 + $0x288] sm:$0xff] }
  0xfd   :  { %1230 = vmatpush.msra.mxu0 %v918_v4  ;;  %1195 = vmatpush.msrb.mxu2 %v1001_v43  ;;  %v1030_v37 = vld [vmem:[%s7906_s3 + $0x508] sm:$0xff]  ;;  %v1093_v4 = vld [vmem:[%s7906_s3 + $0x700] sm:$0xff] }
  0xfe   :  { %1252 = vmatpush.msra.mxu1 %v986_v24  ;;  %1154 = vmatmul.f32.gmra.mxu0 %v5133_v25  ;;  %v874_v38 = vld [vmem:[%s7906_s3 + $0x28] sm:$0xff]  ;;  %v1089_v24 = vld [vmem:[%s7906_s3 + $0x6e0] sm:$0xff] }
  0xff   :  { %1231 = vmatpush.msra.mxu0 %v914_v47  ;;  %1196 = vmatpush.msrb.mxu2 %v997_v53  ;;  %v946_v40 = vld [vmem:[%s7906_s3 + $0x268] sm:$0xff]  ;;  %v931_v47 = vld [vmem:[%s7906_s3 + $0x1f0] sm:$0xff]  ;;  %v1085_v53 = vld [vmem:[%s7906_s3 + $0x6c0] sm:$0xff] }
 0x100   :  { %1253 = vmatpush.msra.mxu1 %v982_v50  ;;  %v870_v26 = vld [vmem:[%s7906_s3 + $0x8] sm:$0xff]  ;;  %1211 = vmatpush.msrb.mxu3 %v1093_v4  ;;  %v927_v50 = vld [vmem:[%s7906_s3 + $0x1d0] sm:$0xff] }
 0x101   :  { %1232 = vmatpush.msra.mxu0 %v910_v49  ;;  %1273 = vmatpush.msra.mxu2 %v1058_v54  ;;  %v1026_v42 = vld [vmem:[%s7906_s3 + $0x4e8] sm:$0xff]  ;;  %v879_v4 = vld [vmem:[%s7906_s3 + $0x50] sm:$0xff] }
 0x102   :  { %1254 = vmatpush.msra.mxu1 %v978_v52  ;;  %v942_v44 = vld [vmem:[%s7906_s3 + $0x248] sm:$0xff]  ;;  %1212 = vmatpush.msrb.mxu3 %v1089_v24 }
 0x103   :  { %1233 = vmatpush.msra.mxu0 %v906_v51  ;;  %v536_v62 = vpop.f32.mrf.mxu1  ;;  %1274 = vmatpush.msra.mxu2 %v1054_v60  ;;  %v938_v48 = vld [vmem:[%s7906_s3 + $0x228] sm:$0xff]  ;;  %v919_v60 = vld [vmem:[%s7906_s3 + $0x190] sm:$0xff] }
 0x104   :  { %v556_v0 = vpop.f32.mrf.mxu2  ;;  %1255 = vmatpush.msra.mxu1 %v974_v57  ;;  %v537_v23 = vadd.f32 %v536_v62, %v394_v19  ;;  %v1022_v19 = vld [vmem:[%s7906_s3 + $0x4c8] sm:$0xff]  ;;  %1213 = vmatpush.msrb.mxu3 %v1085_v53 }
 0x105   :  { %1234 = vmatpush.msra.mxu0 %v902_v55  ;;  %v557_v7 = vadd.f32 %v556_v0, %v534_v56  ;;  %1275 = vmatpush.msra.mxu2 %v1050_v5  ;;  %v934_v51 = vld [vmem:[%s7906_s3 + $0x208] sm:$0xff]  ;;  %v923_v55 = vld [vmem:[%s7906_s3 + $0x1b0] sm:$0xff]  ;;  %v1077_v5 = vld [vmem:[%s7906_s3 + $0x680] sm:$0xff] }
 0x106   :  { %1256 = vmatpush.msra.mxu1 %v970_v63  ;;  %v1018_v54 = vld [vmem:[%s7906_s3 + $0x4a8] sm:$0xff]  ;;  %v995_v56 = vld [vmem:[%s7906_s3 + $0x3f0] sm:$0xff]  ;;  %1214 = vmatpush.msrb.mxu3 %v1081_v58 }
 0x107   :  { %1235 = vmatpush.msra.mxu0 %v898_v61  ;;  %v579_v12 = vpop.f32.mrf.mxu3  ;;  %1276 = vmatpush.msra.mxu2 %v1046_v10  ;;  %v991_v61 = vld [vmem:[%s7906_s3 + $0x3d0] sm:$0xff]  ;;  %v1014_v63 = vld [vmem:[%s7906_s3 + $0x488] sm:$0xff] }
 0x108   :  { %v580_v46 = vadd.f32 %v579_v12, %v557_v7  ;;  %1257 = vmatpush.msra.mxu1 %v966_v8  ;;  %v915_v0 = vld [vmem:[%s7906_s3 + $0x170] sm:$0xff]  ;;  %v1006_v10 = vld [vmem:[%s7906_s3 + $0x448] sm:$0xff]  ;;  %1215 = vmatpush.msrb.mxu3 %v1077_v5 }
 0x109   :  { %1236 = vmatpush.msra.mxu0 %v894_v6  ;;  %1277 = vmatpush.msra.mxu2 %v1042_v15  ;;  %v1010_v6 = vld [vmem:[%s7906_s3 + $0x468] sm:$0xff]  ;;  %v911_v7 = vld [vmem:[%s7906_s3 + $0x150] sm:$0xff] }
 0x10a   :  { %v602_v18 = vpop.f32.mrf.mxu0  ;;  %1258 = vmatpush.msra.mxu1 %v962_v13  ;;  %v983_v8 = vld [vmem:[%s7906_s3 + $0x390] sm:$0xff]  ;;  %v1069_v13 = vld [vmem:[%s7906_s3 + $0x640] sm:$0xff]  ;;  %1216 = vmatpush.msrb.mxu3 %v1073_v9  ;;  %v1002_v15 = vld [vmem:[%s7906_s3 + $0x428] sm:$0xff] }
 0x10b   :  { %1237 = vmatpush.msra.mxu0 %v890_v11  ;;  %v603_v27 = vadd.f32 %v602_v18, %v580_v46  ;;  %1278 = vmatpush.msra.mxu2 %v1038_v21  ;;  %v907_v11 = vld [vmem:[%s7906_s3 + $0x130] sm:$0xff]  ;;  %v998_v21 = vld [vmem:[%s7906_s3 + $0x408] sm:$0xff] }
 0x10c   :  { %1259 = vmatpush.msra.mxu1 %v958_v17  ;;  %v979_v12 = vld [vmem:[%s7906_s3 + $0x370] sm:$0xff]  ;;  %1217 = vmatpush.msrb.mxu3 %v1069_v13  ;;  %v1102_v24 = vld [vmem:[%s7906_s3 + $0x748] sm:$0xff] }
 0x10d   :  { %1238 = vmatpush.msra.mxu0 %v886_v16  ;;  %v625_v33 = vpop.f32.mrf.mxu1  ;;  %v559_v35 = vpop.f32.mrf.mxu2  ;;  %1279 = vmatpush.msra.mxu2 %v1034_v30  ;;  %v903_v46 = vld [vmem:[%s7906_s3 + $0x110] sm:$0xff]  ;;  %v1065_v16 = vld [vmem:[%s7906_s3 + $0x620] sm:$0xff]  ;;  %v395_v30 = vperm.slane %v4982_v59, 2 }
 0x10e   :  { %v626_v34 = vadd.f32 %v625_v33, %v603_v27  ;;  %1260 = vmatpush.msra.mxu1 %v954_v28  ;;  %v560_v39 = vadd.f32 %v559_v35, %v537_v23  ;;  %v899_v17 = vld [vmem:[%s7906_s3 + $0xf0] sm:$0xff]  ;;  %1218 = vmatpush.msrb.mxu3 %v1065_v16  ;;  %v1122_v28 = vld [vmem:[%s7906_s3 + $0x7e8] sm:$0xff] }
 0x10f   :  { %1239 = vmatpush.msra.mxu0 %v882_v22  ;;  %1280 = vmatpush.msra.mxu2 %v1030_v37  ;;  %v971_v18 = vld [vmem:[%s7906_s3 + $0x330] sm:$0xff]  ;;  %v1061_v22 = vld [vmem:[%s7906_s3 + $0x600] sm:$0xff]  ;;  %v1118_v33 = vld [vmem:[%s7906_s3 + $0x7c8] sm:$0xff] }
 0x110   :  { %v5251_v3 = vmax.f32 %v626_v34, 0.0  ;;  %1261 = vmatpush.msra.mxu1 %v950_v2  ;;  %v582_v41 = vpop.f32.mrf.mxu3  ;;  %v895_v23 = vld [vmem:[%s7906_s3 + $0xd0] sm:$0xff]  ;;  %1219 = vmatpush.msrb.mxu3 %v1061_v22  ;;  %v1114_v35 = vld [vmem:[%s7906_s3 + $0x7a8] sm:$0xff] }
 0x111   :  { %1240 = vmatpush.msra.mxu0 %v878_v31  ;;  %v583_v45 = vadd.f32 %v582_v41, %v560_v39  ;;  %1281 = vmatpush.msra.mxu2 %v1026_v42  ;;  %v967_v27 = vld [vmem:[%s7906_s3 + $0x310] sm:$0xff]  ;;  %v1106_v42 = vld [vmem:[%s7906_s3 + $0x768] sm:$0xff] }
 0x112   :  { %1174 = vmatmul.f32.vlgmr.msrb.gmra.mxu1 %v5251_v3  ;;  %v963_v31 = vld [vmem:[%s7906_s3 + $0x2f0] sm:$0xff]  ;;  %1296 = vmatpush.msra.mxu3 %v1122_v28  ;;  %v1086_v16 = vld [vmem:[%s7906_s3 + $0x6c8] sm:$0xff]  ;;  %v908_v28 = vld [vmem:[%s7906_s3 + $0x138] sm:$0xff] }
 0x113   :  { %1241 = vmatpush.msra.mxu0 %v874_v38  ;;  %1262 = vmatpush.msra.mxu1 %v946_v40  ;;  %v605_v49 = vpop.f32.mrf.mxu0  ;;  %v887_v2 = vld [vmem:[%s7906_s3 + $0x90] sm:$0xff]  ;;  %v1110_v40 = vld [vmem:[%s7906_s3 + $0x788] sm:$0xff] }
 0x114   :  { %v606_v43 = vadd.f32 %v605_v49, %v583_v45  ;;  %1282 = vmatpush.msra.mxu2 %v1022_v19  ;;  %v959_v34 = vld [vmem:[%s7906_s3 + $0x2d0] sm:$0xff]  ;;  %1297 = vmatpush.msra.mxu3 %v1118_v33  ;;  %v904_v33 = vld [vmem:[%s7906_s3 + $0x118] sm:$0xff] }
 0x115   :  { %1242 = vmatpush.msra.mxu0 %v870_v26  ;;  %1263 = vmatpush.msra.mxu1 %v942_v44  ;;  %v883_v37 = vld [vmem:[%s7906_s3 + $0x70] sm:$0xff] }
 0x116   :  { %1243 = vmatmul.f32.vlgmr.msra.gmra.mxu0 %v5094_v32  ;;  %v628_v52 = vpop.f32.mrf.mxu1  ;;  %1283 = vmatpush.msra.mxu2 %v1018_v54  ;;  %v955_v38 = vld [vmem:[%s7906_s3 + $0x2b0] sm:$0xff] }
 0x117   :  { %1319 = vmatpush.msrb.mxu0 %v931_v47  ;;  %1264 = vmatpush.msra.mxu1 %v938_v48  ;;  %v629_v57 = vadd.f32 %v628_v52, %v606_v43  ;;  %v951_v26 = vld [vmem:[%s7906_s3 + $0x290] sm:$0xff]  ;;  %v1098_v43 = vld [vmem:[%s7906_s3 + $0x728] sm:$0xff] }
 0x118   :  { %1284 = vmatpush.msra.mxu2 %v1014_v63  ;;  %1298 = vmatpush.msra.mxu3 %v1114_v35  ;;  %v875_v44 = vld [vmem:[%s7906_s3 + $0x30] sm:$0xff]  ;;  %v1090_v63 = vld [vmem:[%s7906_s3 + $0x6e8] sm:$0xff]  ;;  %v972_v35 = vld [vmem:[%s7906_s3 + $0x338] sm:$0xff] }
 0x119   :  { %1320 = vmatpush.msrb.mxu0 %v927_v50  ;;  %1265 = vmatpush.msra.mxu1 %v934_v51  ;;  %v5306_v62 = vmax.f32 %v629_v57, 0.0  ;;  %v947_v47 = vld [vmem:[%s7906_s3 + $0x270] sm:$0xff]  ;;  %v932_v51 = vld [vmem:[%s7906_s3 + $0x1f8] sm:$0xff] }
 0x11a   :  { %1285 = vmatpush.msra.mxu2 %v1010_v6  ;;  %1299 = vmatpush.msra.mxu3 %v1110_v40  ;;  %v871_v48 = vld [vmem:[%s7906_s3 + $0x10] sm:$0xff]  ;;  %v928_v57 = vld [vmem:[%s7906_s3 + $0x1d8] sm:$0xff] }
 0x11b   :  { %1321 = vmatpush.msrb.mxu0 %v923_v55  ;;  %1342 = vmatpush.msrb.mxu1 %v995_v56  ;;  %v943_v19 = vld [vmem:[%s7906_s3 + $0x250] sm:$0xff]  ;;  %v1094_v56 = vld [vmem:[%s7906_s3 + $0x708] sm:$0xff]  ;;  %v896_v40 = vld [vmem:[%s7906_s3 + $0xd8] sm:$0xff] }
 0x11c   :  { %1177 = vmatmul.f32.gmra.mxu1 %v5306_v62  ;;  %1286 = vmatpush.msra.mxu2 %v1006_v10  ;;  %v939_v52 = vld [vmem:[%s7906_s3 + $0x230] sm:$0xff] }
 0x11d   :  { %1322 = vmatpush.msrb.mxu0 %v919_v60  ;;  %1343 = vmatpush.msrb.mxu1 %v991_v61  ;;  %v935_v60 = vld [vmem:[%s7906_s3 + $0x210] sm:$0xff]  ;;  %v996_v61 = vld [vmem:[%s7906_s3 + $0x3f8] sm:$0xff] }
 0x11e   :  { %1246 = vmatmul.f32.gmra.mxu0 %v5133_v25  ;;  %1287 = vmatpush.msra.mxu2 %v1002_v15  ;;  %v1059_v10 = vld [vmem:[%s7906_s3 + $0x5f0] sm:$0xff]  ;;  %v984_v15 = vld [vmem:[%s7906_s3 + $0x398] sm:$0xff] }
 0x11f   :  { %1323 = vmatpush.msrb.mxu0 %v915_v0  ;;  %1344 = vmatpush.msrb.mxu1 %v987_v1  ;;  %v924_v0 = vld [vmem:[%s7906_s3 + $0x1b8] sm:$0xff] }
 0x120   :  { %1288 = vmatpush.msra.mxu2 %v998_v21  ;;  %1300 = vmatpush.msra.mxu3 %v1106_v42  ;;  %v892_v42 = vld [vmem:[%s7906_s3 + $0xb8] sm:$0xff] }
 0x121   :  { %1324 = vmatpush.msrb.mxu0 %v911_v7  ;;  %1345 = vmatpush.msrb.mxu1 %v983_v8  ;;  %v992_v7 = vld [vmem:[%s7906_s3 + $0x3d8] sm:$0xff] }
 0x122   :  { %v648_v20 = vpop.f32.mrf.mxu2  ;;  %1301 = vmatpush.msra.mxu3 %v1102_v24  ;;  %v920_v8 = vld [vmem:[%s7906_s3 + $0x198] sm:$0xff] }
 0x123   :  { %1325 = vmatpush.msrb.mxu0 %v907_v11  ;;  %1346 = vmatpush.msrb.mxu1 %v979_v12  ;;  %v649_v36 = vadd.f32 %v648_v20, %v395_v30  ;;  %v988_v11 = vld [vmem:[%s7906_s3 + $0x3b8] sm:$0xff]  ;;  %v1051_v20 = vld [vmem:[%s7906_s3 + $0x5b0] sm:$0xff] }
 0x124   :  { %1266 = vmatmul.f32.vlgmr.msra.gmra.mxu1 %v5251_v3  ;;  %1302 = vmatpush.msra.mxu3 %v1098_v43  ;;  %v916_v12 = vld [vmem:[%s7906_s3 + $0x178] sm:$0xff]  ;;  %v1066_v43 = vld [vmem:[%s7906_s3 + $0x628] sm:$0xff] }
 0x125   :  { %1326 = vmatpush.msrb.mxu0 %v903_v46  ;;  %1347 = vmatpush.msrb.mxu1 %v975_v14  ;;  %v1055_v46 = vld [vmem:[%s7906_s3 + $0x5d0] sm:$0xff]  ;;  %v888_v24 = vld [vmem:[%s7906_s3 + $0x98] sm:$0xff] }
 0x126   :  { %1303 = vmatpush.msra.mxu3 %v1094_v56  ;;  %v1019_v56 = vld [vmem:[%s7906_s3 + $0x4b0] sm:$0xff] }
 0x127   :  { %1327 = vmatpush.msrb.mxu0 %v899_v17  ;;  %1348 = vmatpush.msrb.mxu1 %v971_v18  ;;  %v912_v17 = vld [vmem:[%s7906_s3 + $0x158] sm:$0xff] }
 0x128   :  { %1304 = vmatpush.msra.mxu3 %v1090_v63 }
 0x129   :  { %1328 = vmatpush.msrb.mxu0 %v895_v23  ;;  %1349 = vmatpush.msrb.mxu1 %v967_v27  ;;  %v980_v23 = vld [vmem:[%s7906_s3 + $0x378] sm:$0xff]  ;;  %v1082_v27 = vld [vmem:[%s7906_s3 + $0x6a8] sm:$0xff] }
 0x12a   :  { %1305 = vmatpush.msra.mxu3 %v1086_v16 }
 0x12b   :  { %1329 = vmatpush.msrb.mxu0 %v891_v29  ;;  %1350 = vmatpush.msrb.mxu1 %v963_v31  ;;  %v651_v39 = vpop.f32.mrf.mxu2  ;;  %v976_v31 = vld [vmem:[%s7906_s3 + $0x358] sm:$0xff] }
 0x12c   :  { %1269 = vmatmul.f32.gmra.mxu1 %v5306_v62  ;;  %v652_v53 = vadd.f32 %v651_v39, %v395_v30  ;;  %v1047_v30 = vld [vmem:[%s7906_s3 + $0x590] sm:$0xff]  ;;  %1306 = vmatpush.msra.mxu3 %v1082_v27  ;;  %v968_v39 = vld [vmem:[%s7906_s3 + $0x318] sm:$0xff] }
 0x12d   :  { %1330 = vmatpush.msrb.mxu0 %v887_v2  ;;  %1351 = vmatpush.msrb.mxu1 %v959_v34  ;;  %v1043_v34 = vld [vmem:[%s7906_s3 + $0x570] sm:$0xff] }
 0x12e   :  { %v671_v41 = vpop.f32.mrf.mxu3 }
 0x12f   :  { %1331 = vmatpush.msrb.mxu0 %v883_v37  ;;  %1352 = vmatpush.msrb.mxu1 %v955_v38  ;;  %v672_v45 = vadd.f32 %v671_v41, %v649_v36  ;;  %v900_v36 = vld [vmem:[%s7906_s3 + $0xf8] sm:$0xff]  ;;  %v1078_v37 = vld [vmem:[%s7906_s3 + $0x688] sm:$0xff]  ;;  %v1039_v38 = vld [vmem:[%s7906_s3 + $0x550] sm:$0xff] }
 0x130   :  { %v694_v49 = vpop.f32.mrf.mxu0  ;;  %v964_v41 = vld [vmem:[%s7906_s3 + $0x2f8] sm:$0xff]  ;;  %1307 = vmatpush.msra.mxu3 %v1078_v37 }
 0x131   :  { %1332 = vmatpush.msrb.mxu0 %v879_v4  ;;  %1353 = vmatpush.msrb.mxu1 %v951_v26  ;;  %v695_v50 = vadd.f32 %v694_v49, %v672_v45  ;;  %v1074_v4 = vld [vmem:[%s7906_s3 + $0x668] sm:$0xff]  ;;  %v1035_v26 = vld [vmem:[%s7906_s3 + $0x530] sm:$0xff] }
 0x132   :  { %v1031_v45 = vld [vmem:[%s7906_s3 + $0x510] sm:$0xff]  ;;  %1308 = vmatpush.msra.mxu3 %v1074_v4 }
 0x133   :  { %1333 = vmatpush.msrb.mxu0 %v875_v44  ;;  %1354 = vmatpush.msrb.mxu1 %v947_v47  ;;  %v717_v54 = vpop.f32.mrf.mxu1  ;;  %v1070_v44 = vld [vmem:[%s7906_s3 + $0x648] sm:$0xff]  ;;  %v960_v47 = vld [vmem:[%s7906_s3 + $0x2d8] sm:$0xff]  ;;  %v1027_v49 = vld [vmem:[%s7906_s3 + $0x4f0] sm:$0xff] }
 0x134   :  { %v740_v55 = vpop.f32.mrf.mxu2  ;;  %v718_v58 = vadd.f32 %v717_v54, %v695_v50  ;;  %1309 = vmatpush.msra.mxu3 %v1070_v44  ;;  %v884_v50 = vld [vmem:[%s7906_s3 + $0x78] sm:$0xff]  ;;  %v1062_v54 = vld [vmem:[%s7906_s3 + $0x608] sm:$0xff]  ;;  %v1107_v4 = vld [vmem:[%s7906_s3 + $0x770] sm:$0xff] }
 0x135   :  { %1334 = vmatpush.msrb.mxu0 %v871_v48  ;;  %1355 = vmatpush.msrb.mxu1 %v943_v19  ;;  %v956_v19 = vld [vmem:[%s7906_s3 + $0x2b8] sm:$0xff]  ;;  %v1099_v44 = vld [vmem:[%s7906_s3 + $0x730] sm:$0xff] }
 0x136   :  { %1335 = vmatmul.f32.vlgmr.msrb.gmra.mxu0 %v5094_v32  ;;  %v741_v1 = vadd.f32 %v740_v55, %v718_v58  ;;  %v396_v55 = vperm.slane %v4982_v59, 3  ;;  %1310 = vmatpush.msra.mxu3 %v1066_v43  ;;  %v876_v58 = vld [vmem:[%s7906_s3 + $0x38] sm:$0xff]  ;;  %v1015_v59 = vld [vmem:[%s7906_s3 + $0x490] sm:$0xff] }
 0x137   :  { %1411 = vmatpush.msra.mxu0 %v932_v51  ;;  %1356 = vmatpush.msrb.mxu1 %v939_v52  ;;  %v674_v5 = vpop.f32.mrf.mxu3  ;;  %v1023_v51 = vld [vmem:[%s7906_s3 + $0x4d0] sm:$0xff]  ;;  %v952_v52 = vld [vmem:[%s7906_s3 + $0x298] sm:$0xff] }
 0x138   :  { %v675_v6 = vadd.f32 %v674_v5, %v652_v53  ;;  %v5467_v9 = vmax.f32 %v741_v1, 0.0  ;;  %v880_v53 = vld [vmem:[%s7906_s3 + $0x58] sm:$0xff]  ;;  %1311 = vmatpush.msra.mxu3 %v1062_v54  ;;  %v1083_v43 = vld [vmem:[%s7906_s3 + $0x6b0] sm:$0xff] }
 0x139   :  { %1412 = vmatpush.msra.mxu0 %v928_v57  ;;  %1357 = vmatpush.msrb.mxu1 %v935_v60  ;;  %v948_v57 = vld [vmem:[%s7906_s3 + $0x278] sm:$0xff]  ;;  %v1075_v54 = vld [vmem:[%s7906_s3 + $0x670] sm:$0xff] }
 0x13a   :  { %1358 = vmatmul.f32.vlgmr.msrb.gmra.mxu1 %v5251_v3  ;;  %v697_v13 = vpop.f32.mrf.mxu0  ;;  %1197 = vmatmul.f32.vlgmr.msrb.gmra.mxu2 %v5467_v9  ;;  %v944_v60 = vld [vmem:[%s7906_s3 + $0x258] sm:$0xff] }
 0x13b   :  { %1434 = vmatpush.msra.mxu1 %v996_v61  ;;  %1413 = vmatpush.msra.mxu0 %v924_v0  ;;  %v698_v14 = vadd.f32 %v697_v13, %v675_v6  ;;  %v872_v61 = vld [vmem:[%s7906_s3 + $0x18] sm:$0xff]  ;;  %v1011_v0 = vld [vmem:[%s7906_s3 + $0x470] sm:$0xff] }
 0x13c   :  { %1365 = vmatpush.msrb.mxu2 %v1059_v10  ;;  %v940_v6 = vld [vmem:[%s7906_s3 + $0x238] sm:$0xff] }
 0x13d   :  { %1435 = vmatpush.msra.mxu1 %v992_v7  ;;  %1414 = vmatpush.msra.mxu0 %v920_v8  ;;  %v720_v18 = vpop.f32.mrf.mxu1  ;;  %v1007_v8 = vld [vmem:[%s7906_s3 + $0x450] sm:$0xff] }
 0x13e   :  { %1338 = vmatmul.f32.gmra.mxu0 %v5133_v25  ;;  %v721_v21 = vadd.f32 %v720_v18, %v698_v14  ;;  %1366 = vmatpush.msrb.mxu2 %v1055_v46  ;;  %v743_v22 = vpop.f32.mrf.mxu2  ;;  %v999_v46 = vld [vmem:[%s7906_s3 + $0x410] sm:$0xff]  ;;  %v1056_v18 = vld [vmem:[%s7906_s3 + $0x5d8] sm:$0xff] }
 0x13f   :  { %1436 = vmatpush.msra.mxu1 %v988_v11  ;;  %1415 = vmatpush.msra.mxu0 %v916_v12  ;;  %v936_v11 = vld [vmem:[%s7906_s3 + $0x218] sm:$0xff]  ;;  %v1003_v12 = vld [vmem:[%s7906_s3 + $0x430] sm:$0xff] }
 0x140   :  { %v744_v29 = vadd.f32 %v743_v22, %v721_v21  ;;  %1367 = vmatpush.msrb.mxu2 %v1051_v20 }
 0x141   :  { %1437 = vmatpush.msra.mxu1 %v984_v15  ;;  %1416 = vmatpush.msra.mxu0 %v912_v17 }
 0x142   :  { %v5514_v2 = vmax.f32 %v744_v29, 0.0  ;;  %1361 = vmatmul.f32.gmra.mxu1 %v5306_v62  ;;  %1368 = vmatpush.msrb.mxu2 %v1047_v30  ;;  %v1048_v29 = vld [vmem:[%s7906_s3 + $0x598] sm:$0xff] }
 0x143   :  { %1438 = vmatpush.msra.mxu1 %v980_v23  ;;  %1417 = vmatpush.msra.mxu0 %v908_v28  ;;  %v1052_v23 = vld [vmem:[%s7906_s3 + $0x5b8] sm:$0xff]  ;;  %v1123_v28 = vld [vmem:[%s7906_s3 + $0x7f0] sm:$0xff] }
 0x144   :  { %1200 = vmatmul.f32.gmra.mxu2 %v5514_v2 }
 0x145   :  { %1439 = vmatpush.msra.mxu1 %v976_v31  ;;  %1418 = vmatpush.msra.mxu0 %v904_v33  ;;  %v1119_v31 = vld [vmem:[%s7906_s3 + $0x7d0] sm:$0xff]  ;;  %v1044_v33 = vld [vmem:[%s7906_s3 + $0x578] sm:$0xff] }
 0x146   :  { %1369 = vmatpush.msrb.mxu2 %v1043_v34 }
 0x147   :  { %1440 = vmatpush.msra.mxu1 %v972_v35  ;;  %1419 = vmatpush.msra.mxu0 %v900_v36  ;;  %v1115_v35 = vld [vmem:[%s7906_s3 + $0x7b0] sm:$0xff]  ;;  %v1040_v36 = vld [vmem:[%s7906_s3 + $0x558] sm:$0xff] }
 0x148   :  { %1370 = vmatpush.msrb.mxu2 %v1039_v38 }
 0x149   :  { %1441 = vmatpush.msra.mxu1 %v968_v39  ;;  %1420 = vmatpush.msra.mxu0 %v896_v40  ;;  %v1036_v39 = vld [vmem:[%s7906_s3 + $0x538] sm:$0xff] }
 0x14a   :  { %1371 = vmatpush.msrb.mxu2 %v1035_v26  ;;  %v763_v48 = vpop.f32.mrf.mxu3  ;;  %v1032_v26 = vld [vmem:[%s7906_s3 + $0x518] sm:$0xff] }
 0x14b   :  { %1442 = vmatpush.msra.mxu1 %v964_v41  ;;  %1421 = vmatpush.msra.mxu0 %v892_v42  ;;  %v764_v63 = vadd.f32 %v763_v48, %v396_v55  ;;  %v1103_v41 = vld [vmem:[%s7906_s3 + $0x750] sm:$0xff]  ;;  %v1028_v42 = vld [vmem:[%s7906_s3 + $0x4f8] sm:$0xff] }
 0x14c   :  { %1372 = vmatpush.msrb.mxu2 %v1031_v45  ;;  %v1024_v45 = vld [vmem:[%s7906_s3 + $0x4d8] sm:$0xff]  ;;  %v1091_v48 = vld [vmem:[%s7906_s3 + $0x6f0] sm:$0xff] }
 0x14d   :  { %1443 = vmatpush.msra.mxu1 %v960_v47  ;;  %1422 = vmatpush.msra.mxu0 %v888_v24  ;;  %v1095_v47 = vld [vmem:[%s7906_s3 + $0x710] sm:$0xff]  ;;  %v1020_v24 = vld [vmem:[%s7906_s3 + $0x4b8] sm:$0xff] }
 0x14e   :  { %1289 = vmatmul.f32.vlgmr.msra.gmra.mxu2 %v5467_v9 }
 0x14f   :  { %1373 = vmatpush.msrb.mxu2 %v1027_v49  ;;  %1444 = vmatpush.msra.mxu1 %v956_v19  ;;  %v1016_v49 = vld [vmem:[%s7906_s3 + $0x498] sm:$0xff]  ;;  %v1087_v19 = vld [vmem:[%s7906_s3 + $0x6d0] sm:$0xff] }
 0x150   :  { %1423 = vmatpush.msra.mxu0 %v884_v50  ;;  %v1012_v50 = vld [vmem:[%s7906_s3 + $0x478] sm:$0xff] }
 0x151   :  { %1374 = vmatpush.msrb.mxu2 %v1023_v51  ;;  %1445 = vmatpush.msra.mxu1 %v952_v52  ;;  %v1008_v51 = vld [vmem:[%s7906_s3 + $0x458] sm:$0xff]  ;;  %v1079_v52 = vld [vmem:[%s7906_s3 + $0x690] sm:$0xff] }
 0x152   :  { %1424 = vmatpush.msra.mxu0 %v880_v53  ;;  %v766_v1 = vpop.f32.mrf.mxu3  ;;  %v786_v5 = vpop.f32.mrf.mxu0  ;;  %v1004_v53 = vld [vmem:[%s7906_s3 + $0x438] sm:$0xff] }
 0x153   :  { %1375 = vmatpush.msrb.mxu2 %v1019_v56  ;;  %1446 = vmatpush.msra.mxu1 %v948_v57  ;;  %v787_v7 = vadd.f32 %v786_v5, %v764_v63  ;;  %v767_v15 = vadd.f32 %v766_v1, %v396_v55  ;;  %v1000_v55 = vld [vmem:[%s7906_s3 + $0x418] sm:$0xff]  ;;  %v1071_v56 = vld [vmem:[%s7906_s3 + $0x650] sm:$0xff]  ;;  %v1571_v1 = vld [vmem:[%s7908_s5 + $0x1e0] sm:$0xff] }
 0x154   :  { %1425 = vmatpush.msra.mxu0 %v876_v58  ;;  %v1067_v57 = vld [vmem:[%s7906_s3 + $0x630] sm:$0xff]  ;;  %v1108_v63 = vld [vmem:[%s7906_s3 + $0x778] sm:$0xff] }
 0x155   :  { %1376 = vmatpush.msrb.mxu2 %v1015_v59  ;;  %1447 = vmatpush.msra.mxu1 %v944_v60  ;;  %v809_v10 = vpop.f32.mrf.mxu1  ;;  %v1063_v58 = vld [vmem:[%s7906_s3 + $0x610] sm:$0xff]  ;;  %v1124_v59 = vld [vmem:[%s7906_s3 + $0x7f8] sm:$0xff] }
 0x156   :  { %1426 = vmatpush.msra.mxu0 %v872_v61  ;;  %1292 = vmatmul.f32.gmra.mxu2 %v5514_v2  ;;  %v810_v13 = vadd.f32 %v809_v10, %v787_v7  ;;  %v1120_v60 = vld [vmem:[%s7906_s3 + $0x7d8] sm:$0xff] }
 0x157   :  { %1427 = vmatmul.f32.vlgmr.msra.gmra.mxu0 %v5094_v32  ;;  %1377 = vmatpush.msrb.mxu2 %v1011_v0  ;;  %v1060_v32 = vld [vmem:[%s7906_s3 + $0x5f8] sm:$0xff] }
 0x158   :  { %1448 = vmatpush.msra.mxu1 %v940_v6  ;;  %v1112_v61 = vld [vmem:[%s7906_s3 + $0x798] sm:$0xff]  ;;  %1777 = vmatpush.msrb.mxu0 %v1571_v1  ;;  %v1563_v6 = vld [vmem:[%s7908_s5 + $0x1a0] sm:$0xff]  ;;  %v1532_v1 = vld [vmem:[%s7908_s5 + $0xa8] sm:$0xff] }
 0x159   :  { %1378 = vmatpush.msrb.mxu2 %v1007_v8  ;;  %v832_v14 = vpop.f32.mrf.mxu2  ;;  %v1104_v0 = vld [vmem:[%s7906_s3 + $0x758] sm:$0xff] }
 0x15a   :  { %1449 = vmatpush.msra.mxu1 %v936_v11  ;;  %v833_v16 = vadd.f32 %v832_v14, %v810_v13  ;;  %v1100_v5 = vld [vmem:[%s7906_s3 + $0x738] sm:$0xff]  ;;  %v1555_v13 = vld [vmem:[%s7908_s5 + $0x160] sm:$0xff] }
 0x15b   :  { %1450 = vmatmul.f32.vlgmr.msra.gmra.mxu1 %v5251_v3  ;;  %1379 = vmatpush.msrb.mxu2 %v1003_v12  ;;  %v789_v17 = vpop.f32.mrf.mxu0  ;;  %v855_v21 = vpop.f32.mrf.mxu3  ;;  %v1096_v7 = vld [vmem:[%s7906_s3 + $0x718] sm:$0xff]  ;;  %v1559_v12 = vld [vmem:[%s7908_s5 + $0x180] sm:$0xff] }
 0x15c   :  { %v790_v20 = vadd.f32 %v789_v17, %v767_v15  ;;  %v856_v22 = vadd.f32 %v855_v21, %v833_v16  ;;  %v1092_v8 = vld [vmem:[%s7906_s3 + $0x6f8] sm:$0xff]  ;;  %v1551_v14 = vld [vmem:[%s7908_s5 + $0x140] sm:$0xff] }
 0x15d   :  { %1380 = vmatpush.msrb.mxu2 %v999_v46  ;;  %v812_v3 = vpop.f32.mrf.mxu1  ;;  %v1088_v10 = vld [vmem:[%s7906_s3 + $0x6d8] sm:$0xff]  ;;  %v1547_v15 = vld [vmem:[%s7908_s5 + $0x120] sm:$0xff] }
 0x15e   :  { %1381 = vmatmul.f32.vlgmr.msrb.gmra.mxu2 %v5467_v9  ;;  %v5639_v27 = vmax.f32 %v856_v22, 0.0  ;;  %v1084_v11 = vld [vmem:[%s7906_s3 + $0x6b8] sm:$0xff]  ;;  %v1635_v21 = vld [vmem:[%s7908_s5 + $0x3e0] sm:$0xff] }
 0x15f   :  { %1457 = vmatpush.msra.mxu2 %v1060_v32  ;;  %1430 = vmatmul.f32.gmra.mxu0 %v5133_v25  ;;  %v813_v25 = vadd.f32 %v812_v3, %v790_v20  ;;  %v1080_v46 = vld [vmem:[%s7906_s3 + $0x698] sm:$0xff]  ;;  %v1539_v20 = vld [vmem:[%s7908_s5 + $0xe0] sm:$0xff] }
 0x160   :  { %1220 = vmatmul.f32.vlgmr.msrb.gmra.mxu3 %v5639_v27  ;;  %v1076_v32 = vld [vmem:[%s7906_s3 + $0x678] sm:$0xff]  ;;  %1800 = vmatpush.msrb.mxu1 %v1635_v21  ;;  %v1535_v3 = vld [vmem:[%s7908_s5 + $0xc0] sm:$0xff] }
 0x161   :  { %1458 = vmatpush.msra.mxu2 %v1056_v18  ;;  %v835_v30 = vpop.f32.mrf.mxu2  ;;  %1388 = vmatpush.msrb.mxu3 %v1123_v28  ;;  %v1072_v16 = vld [vmem:[%s7906_s3 + $0x658] sm:$0xff]  ;;  %v1543_v18 = vld [vmem:[%s7908_s5 + $0x100] sm:$0xff] }
 0x162   :  { %v836_v34 = vadd.f32 %v835_v30, %v813_v25  ;;  %v1068_v17 = vld [vmem:[%s7906_s3 + $0x638] sm:$0xff]  ;;  %v1627_v28 = vld [vmem:[%s7908_s5 + $0x3a0] sm:$0xff] }
 0x163   :  { %1459 = vmatpush.msra.mxu2 %v1052_v23  ;;  %1453 = vmatmul.f32.gmra.mxu1 %v5306_v62  ;;  %v858_v37 = vpop.f32.mrf.mxu3  ;;  %v1111_v62 = vld [vmem:[%s7906_s3 + $0x790] sm:$0xff]  ;;  %v1064_v22 = vld [vmem:[%s7906_s3 + $0x618] sm:$0xff]  ;;  %v1631_v23 = vld [vmem:[%s7908_s5 + $0x3c0] sm:$0xff] }
 0x164   :  { %1389 = vmatpush.msrb.mxu3 %v1119_v31  ;;  %v859_v38 = vadd.f32 %v858_v37, %v836_v34  ;;  %1801 = vmatpush.msrb.mxu1 %v1631_v23  ;;  %v1623_v25 = vld [vmem:[%s7908_s5 + $0x380] sm:$0xff] }
 0x165   :  { %1460 = vmatpush.msra.mxu2 %v1048_v29  ;;  %v1531_v29 = vld [vmem:[%s7908_s5 + $0xa0] sm:$0xff] }
 0x166   :  { %1384 = vmatmul.f32.gmra.mxu2 %v5514_v2  ;;  %1390 = vmatpush.msrb.mxu3 %v1115_v35  ;;  %v5668_v40 = vmax.f32 %v859_v38, 0.0  ;;  %v1527_v30 = vld [vmem:[%s7908_s5 + $0x80] sm:$0xff] }
 0x167   :  { %1461 = vmatpush.msra.mxu2 %v1044_v33  ;;  %1802 = vmatpush.msrb.mxu1 %v1627_v28  ;;  %v1619_v31 = vld [vmem:[%s7908_s5 + $0x360] sm:$0xff]  ;;  %v1600_v28 = vld [vmem:[%s7908_s5 + $0x2c8] sm:$0xff] }
 0x168   :  { %1391 = vmatpush.msrb.mxu3 %v1111_v62  ;;  %v1523_v33 = vld [vmem:[%s7908_s5 + $0x60] sm:$0xff] }
 0x169   :  { %1462 = vmatpush.msra.mxu2 %v1040_v36  ;;  %1223 = vmatmul.f32.gmra.mxu3 %v5668_v40  ;;  %v1519_v34 = vld [vmem:[%s7908_s5 + $0x40] sm:$0xff] }
 0x16a   :  { %1392 = vmatpush.msrb.mxu3 %v1107_v4  ;;  %1803 = vmatpush.msrb.mxu1 %v1623_v25  ;;  %v1611_v35 = vld [vmem:[%s7908_s5 + $0x320] sm:$0xff] }
 0x16b   :  { %1463 = vmatpush.msra.mxu2 %v1036_v39  ;;  %v1515_v36 = vld [vmem:[%s7908_s5 + $0x20] sm:$0xff]  ;;  %v1572_v39 = vld [vmem:[%s7908_s5 + $0x1e8] sm:$0xff] }
 0x16c   :  { %1393 = vmatpush.msrb.mxu3 %v1103_v41  ;;  %1804 = vmatpush.msrb.mxu1 %v1619_v31  ;;  %v1607_v37 = vld [vmem:[%s7908_s5 + $0x300] sm:$0xff]  ;;  %v1568_v41 = vld [vmem:[%s7908_s5 + $0x1c8] sm:$0xff] }
 0x16d   :  { %1464 = vmatpush.msra.mxu2 %v1032_v26  ;;  %v1511_v38 = vld [vmem:[%s7908_s5] sm:$0xff]  ;;  %v1692_v31 = vld [vmem:[%s7908_s5 + $0x5a8] sm:$0xff] }
 0x16e   :  { %1394 = vmatpush.msrb.mxu3 %v1099_v44  ;;  %v1699_v62 = vld [vmem:[%s7908_s5 + $0x5e0] sm:$0xff]  ;;  %v1564_v44 = vld [vmem:[%s7908_s5 + $0x1a8] sm:$0xff] }
 0x16f   :  { %1465 = vmatpush.msra.mxu2 %v1028_v42  ;;  %v1603_v4 = vld [vmem:[%s7908_s5 + $0x2e0] sm:$0xff] }
 0x170   :  { %1395 = vmatpush.msrb.mxu3 %v1095_v47  ;;  %v1691_v26 = vld [vmem:[%s7908_s5 + $0x5a0] sm:$0xff]  ;;  %v1560_v47 = vld [vmem:[%s7908_s5 + $0x188] sm:$0xff] }
 0x171   :  { %1466 = vmatpush.msra.mxu2 %v1024_v45  ;;  %1312 = vmatmul.f32.vlgmr.msra.gmra.mxu3 %v5639_v27  ;;  %v1599_v42 = vld [vmem:[%s7908_s5 + $0x2c0] sm:$0xff] }
 0x172   :  { %1396 = vmatpush.msrb.mxu3 %v1091_v48  ;;  %v1595_v45 = vld [vmem:[%s7908_s5 + $0x2a0] sm:$0xff] }
 0x173   :  { %1467 = vmatpush.msra.mxu2 %v1020_v24  ;;  %v1591_v24 = vld [vmem:[%s7908_s5 + $0x280] sm:$0xff] }
 0x174   :  { %1397 = vmatpush.msrb.mxu3 %v1087_v19  ;;  %v1687_v48 = vld [vmem:[%s7908_s5 + $0x580] sm:$0xff] }
 0x175   :  { %1468 = vmatpush.msra.mxu2 %v1016_v49  ;;  %v1556_v49 = vld [vmem:[%s7908_s5 + $0x168] sm:$0xff]  ;;  %v1587_v19 = vld [vmem:[%s7908_s5 + $0x260] sm:$0xff] }
 0x176   :  { %1398 = vmatpush.msrb.mxu3 %v1083_v43  ;;  %v1552_v43 = vld [vmem:[%s7908_s5 + $0x148] sm:$0xff]  ;;  %v1763_v21 = vld [vmem:[%s7908_s5 + $0x7e0] sm:$0xff] }
 0x177   :  { %1469 = vmatpush.msra.mxu2 %v1012_v50  ;;  %v1683_v50 = vld [vmem:[%s7908_s5 + $0x560] sm:$0xff] }
 0x178   :  { %1399 = vmatpush.msrb.mxu3 %v1079_v52  ;;  %v1679_v52 = vld [vmem:[%s7908_s5 + $0x540] sm:$0xff] }
 0x179   :  { %1470 = vmatpush.msra.mxu2 %v1008_v51  ;;  %1315 = vmatmul.f32.gmra.mxu3 %v5668_v40  ;;  %v1583_v51 = vld [vmem:[%s7908_s5 + $0x240] sm:$0xff] }
 0x17a   :  { %1400 = vmatpush.msrb.mxu3 %v1075_v54  ;;  %v1579_v54 = vld [vmem:[%s7908_s5 + $0x220] sm:$0xff] }
 0x17b   :  { %1471 = vmatpush.msra.mxu2 %v1004_v53  ;;  %v1548_v53 = vld [vmem:[%s7908_s5 + $0x128] sm:$0xff]  ;;  %v1759_v23 = vld [vmem:[%s7908_s5 + $0x7c0] sm:$0xff] }
 0x17c   :  { %1401 = vmatpush.msrb.mxu3 %v1071_v56  ;;  %v1544_v56 = vld [vmem:[%s7908_s5 + $0x108] sm:$0xff]  ;;  %v1755_v25 = vld [vmem:[%s7908_s5 + $0x7a0] sm:$0xff] }
 0x17d   :  { %1472 = vmatpush.msra.mxu2 %v1000_v55  ;;  %v1675_v55 = vld [vmem:[%s7908_s5 + $0x520] sm:$0xff] }
 0x17e   :  { %1473 = vmatmul.f32.vlgmr.msra.gmra.mxu2 %v5467_v9  ;;  %1402 = vmatpush.msrb.mxu3 %v1067_v57  ;;  %v1116_v9 = vld [vmem:[%s7906_s3 + $0x7b8] sm:$0xff]  ;;  %v1575_v57 = vld [vmem:[%s7908_s5 + $0x200] sm:$0xff] }
 0x17f   :  { %1823 = vmatpush.msrb.mxu2 %v1699_v62  ;;  %v1152_v62 = vpop.f32.mrf.mxu0 }
 0x180   :  { %1403 = vmatpush.msrb.mxu3 %v1063_v58  ;;  %v1671_v58 = vld [vmem:[%s7908_s5 + $0x500] sm:$0xff] }
 0x181   :  { %1404 = vmatmul.f32.vlgmr.msrb.gmra.mxu3 %v5639_v27 }
 0x182   :  { %1480 = vmatpush.msra.mxu3 %v1124_v59  ;;  %v1540_v59 = vld [vmem:[%s7908_s5 + $0xe8] sm:$0xff] }
 0x184   :  { %1481 = vmatpush.msra.mxu3 %v1120_v60  ;;  %v1636_v60 = vld [vmem:[%s7908_s5 + $0x3e8] sm:$0xff] }
 0x186   :  { %1476 = vmatmul.f32.gmra.mxu2 %v5514_v2  ;;  %1482 = vmatpush.msra.mxu3 %v1116_v9  ;;  %v1567_v2 = vld [vmem:[%s7908_s5 + $0x1c0] sm:$0xff] }
 0x187   :  { %1778 = vmatpush.msrb.mxu0 %v1567_v2  ;;  %v1667_v9 = vld [vmem:[%s7908_s5 + $0x4e0] sm:$0xff]  ;;  %v1628_v2 = vld [vmem:[%s7908_s5 + $0x3a8] sm:$0xff] }
 0x188   :  { %1483 = vmatpush.msra.mxu3 %v1112_v61  ;;  %v1536_v61 = vld [vmem:[%s7908_s5 + $0xc8] sm:$0xff] }
 0x189   :  { %1407 = vmatmul.f32.gmra.mxu3 %v5668_v40  ;;  %1779 = vmatpush.msrb.mxu0 %v1563_v6  ;;  %v1528_v6 = vld [vmem:[%s7908_s5 + $0x88] sm:$0xff] }
 0x18a   :  { %1484 = vmatpush.msra.mxu3 %v1108_v63  ;;  %v1632_v63 = vld [vmem:[%s7908_s5 + $0x3c8] sm:$0xff] }
 0x18b   :  { %1780 = vmatpush.msrb.mxu0 %v1559_v12  ;;  %v1651_v12 = vld [vmem:[%s7908_s5 + $0x460] sm:$0xff] }
 0x18c   :  { %1485 = vmatpush.msra.mxu3 %v1104_v0  ;;  %v1663_v0 = vld [vmem:[%s7908_s5 + $0x4c0] sm:$0xff] }
 0x18d   :  { %1781 = vmatpush.msrb.mxu0 %v1555_v13  ;;  %v1520_v13 = vld [vmem:[%s7908_s5 + $0x48] sm:$0xff] }
 0x18e   :  { %1486 = vmatpush.msra.mxu3 %v1100_v5  ;;  %v1659_v5 = vld [vmem:[%s7908_s5 + $0x4a0] sm:$0xff] }
 0x18f   :  { %1782 = vmatpush.msrb.mxu0 %v1551_v14  ;;  %v1647_v14 = vld [vmem:[%s7908_s5 + $0x440] sm:$0xff] }
 0x190   :  { %1487 = vmatpush.msra.mxu3 %v1096_v7  ;;  %v1624_v7 = vld [vmem:[%s7908_s5 + $0x388] sm:$0xff] }
 0x191   :  { %1783 = vmatpush.msrb.mxu0 %v1547_v15  ;;  %v1612_v15 = vld [vmem:[%s7908_s5 + $0x328] sm:$0xff] }
 0x192   :  { %1488 = vmatpush.msra.mxu3 %v1092_v8  ;;  %v1655_v8 = vld [vmem:[%s7908_s5 + $0x480] sm:$0xff] }
 0x193   :  { %1784 = vmatpush.msrb.mxu0 %v1543_v18  ;;  %v1608_v18 = vld [vmem:[%s7908_s5 + $0x308] sm:$0xff] }
 0x194   :  { %1489 = vmatpush.msra.mxu3 %v1088_v10  ;;  %v1524_v10 = vld [vmem:[%s7908_s5 + $0x68] sm:$0xff] }
 0x195   :  { %1785 = vmatpush.msrb.mxu0 %v1539_v20  ;;  %v1639_v20 = vld [vmem:[%s7908_s5 + $0x400] sm:$0xff] }
 0x196   :  { %1490 = vmatpush.msra.mxu3 %v1084_v11  ;;  %v1620_v11 = vld [vmem:[%s7908_s5 + $0x368] sm:$0xff] }
 0x197   :  { %1786 = vmatpush.msrb.mxu0 %v1535_v3  ;;  %v1700_v3 = vld [vmem:[%s7908_s5 + $0x5e8] sm:$0xff] }
 0x198   :  { %1491 = vmatpush.msra.mxu3 %v1080_v46  ;;  %v1616_v46 = vld [vmem:[%s7908_s5 + $0x348] sm:$0xff] }
 0x199   :  { %1787 = vmatpush.msrb.mxu0 %v1531_v29  ;;  %v1696_v29 = vld [vmem:[%s7908_s5 + $0x5c8] sm:$0xff] }
 0x19a   :  { %1492 = vmatpush.msra.mxu3 %v1076_v32  ;;  %v1516_v32 = vld [vmem:[%s7908_s5 + $0x28] sm:$0xff] }
 0x19b   :  { %1788 = vmatpush.msrb.mxu0 %v1527_v30  ;;  %v1596_v30 = vld [vmem:[%s7908_s5 + $0x2a8] sm:$0xff] }
 0x19c   :  { %1493 = vmatpush.msra.mxu3 %v1072_v16  ;;  %v1643_v16 = vld [vmem:[%s7908_s5 + $0x420] sm:$0xff] }
 0x19d   :  { %1789 = vmatpush.msrb.mxu0 %v1523_v33  ;;  %v1751_v33 = vld [vmem:[%s7908_s5 + $0x780] sm:$0xff] }
 0x19e   :  { %1494 = vmatpush.msra.mxu3 %v1068_v17  ;;  %v1512_v17 = vld [vmem:[%s7908_s5 + $0x8] sm:$0xff] }
 0x19f   :  { %1790 = vmatpush.msrb.mxu0 %v1519_v34  ;;  %v1688_v34 = vld [vmem:[%s7908_s5 + $0x588] sm:$0xff] }
 0x1a0   :  { %1495 = vmatpush.msra.mxu3 %v1064_v22  ;;  %v1604_v22 = vld [vmem:[%s7908_s5 + $0x2e8] sm:$0xff] }
 0x1a1   :  { %1496 = vmatmul.f32.vlgmr.msra.gmra.mxu3 %v5639_v27  ;;  %v1615_v27 = vld [vmem:[%s7908_s5 + $0x340] sm:$0xff]  ;;  %1791 = vmatpush.msrb.mxu0 %v1515_v36  ;;  %v1588_v36 = vld [vmem:[%s7908_s5 + $0x268] sm:$0xff] }
 0x1a2   :  { %1805 = vmatpush.msrb.mxu1 %v1615_v27  ;;  %1846 = vmatpush.msrb.mxu3 %v1763_v21  ;;  %v1592_v27 = vld [vmem:[%s7908_s5 + $0x288] sm:$0xff]  ;;  %v1565_v21 = vld [vmem:[%s7908_s5 + $0x1b0] sm:$0xff] }
 0x1a3   :  { %1792 = vmatpush.msrb.mxu0 %v1511_v38  ;;  %v1743_v38 = vld [vmem:[%s7908_s5 + $0x740] sm:$0xff] }
 0x1a4   :  { %1806 = vmatpush.msrb.mxu1 %v1611_v35  ;;  %1847 = vmatpush.msrb.mxu3 %v1759_v23  ;;  %v1747_v35 = vld [vmem:[%s7908_s5 + $0x760] sm:$0xff] }
 0x1a5   :  { %1869 = vmatpush.msra.mxu0 %v1572_v39  ;;  %v1175_v39 = vpop.f32.mrf.mxu1 }
 0x1a6   :  { %1807 = vmatpush.msrb.mxu1 %v1607_v37  ;;  %1848 = vmatpush.msrb.mxu3 %v1755_v25  ;;  %v1684_v37 = vld [vmem:[%s7908_s5 + $0x568] sm:$0xff] }
 0x1a7   :  { %1870 = vmatpush.msra.mxu0 %v1568_v41 }
 0x1a8   :  { %1808 = vmatpush.msrb.mxu1 %v1603_v4  ;;  %1849 = vmatpush.msrb.mxu3 %v1751_v33  ;;  %v1584_v4 = vld [vmem:[%s7908_s5 + $0x248] sm:$0xff] }
 0x1a9   :  { %1499 = vmatmul.f32.gmra.mxu3 %v5668_v40  ;;  %v1695_v40 = vld [vmem:[%s7908_s5 + $0x5c0] sm:$0xff]  ;;  %1871 = vmatpush.msra.mxu0 %v1564_v44  ;;  %v1676_v44 = vld [vmem:[%s7908_s5 + $0x528] sm:$0xff] }
 0x1aa   :  { %1824 = vmatpush.msrb.mxu2 %v1695_v40  ;;  %1809 = vmatpush.msrb.mxu1 %v1599_v42  ;;  %v1680_v40 = vld [vmem:[%s7908_s5 + $0x548] sm:$0xff] }
 0x1ab   :  { %1872 = vmatpush.msra.mxu0 %v1560_v47  ;;  %1850 = vmatpush.msrb.mxu3 %v1747_v35  ;;  %v1580_v42 = vld [vmem:[%s7908_s5 + $0x228] sm:$0xff]  ;;  %v6075_v47 = vld [vmem:[%s7907_s4] sm:$0xf] }
 0x1ac   :  { %1825 = vmatpush.msrb.mxu2 %v1691_v26  ;;  %1810 = vmatpush.msrb.mxu1 %v1595_v45  ;;  %v1739_v26 = vld [vmem:[%s7908_s5 + $0x720] sm:$0xff]  ;;  %v1752_v33 = vld [vmem:[%s7908_s5 + $0x788] sm:$0xff] }
 0x1ad   :  { %1873 = vmatpush.msra.mxu0 %v1556_v49  ;;  %1851 = vmatpush.msrb.mxu3 %v1743_v38  ;;  %v1735_v45 = vld [vmem:[%s7908_s5 + $0x700] sm:$0xff]  ;;  %v1748_v35 = vld [vmem:[%s7908_s5 + $0x768] sm:$0xff] }
 0x1ae   :  { %1811 = vmatpush.msrb.mxu1 %v1591_v24  ;;  %1826 = vmatpush.msrb.mxu2 %v1687_v48  ;;  %v1576_v24 = vld [vmem:[%s7908_s5 + $0x208] sm:$0xff]  ;;  %v1731_v49 = vld [vmem:[%s7908_s5 + $0x6e0] sm:$0xff] }
 0x1af   :  { %1874 = vmatpush.msra.mxu0 %v1552_v43  ;;  %1852 = vmatpush.msrb.mxu3 %v1739_v26  ;;  %v1672_v48 = vld [vmem:[%s7908_s5 + $0x508] sm:$0xff]  ;;  %v1127_v43 = vperm.slane %v6075_v47, 0 }
 0x1b0   :  { %1812 = vmatpush.msrb.mxu1 %v1587_v19  ;;  %1827 = vmatpush.msrb.mxu2 %v1683_v50  ;;  %v1668_v19 = vld [vmem:[%s7908_s5 + $0x4e8] sm:$0xff]  ;;  %v1727_v50 = vld [vmem:[%s7908_s5 + $0x6c0] sm:$0xff] }
 0x1b1   :  { %1875 = vmatpush.msra.mxu0 %v1548_v53  ;;  %1853 = vmatpush.msrb.mxu3 %v1735_v45  ;;  %v1153_v53 = vadd.f32 %v1152_v62, %v1127_v43  ;;  %v1549_v62 = vld [vmem:[%s7908_s5 + $0x130] sm:$0xff] }
 0x1b2   :  { %1813 = vmatpush.msrb.mxu1 %v1583_v51  ;;  %1828 = vmatpush.msrb.mxu2 %v1679_v52  ;;  %v1664_v51 = vld [vmem:[%s7908_s5 + $0x4c8] sm:$0xff]  ;;  %v1723_v52 = vld [vmem:[%s7908_s5 + $0x6a0] sm:$0xff] }
 0x1b3   :  { %1876 = vmatpush.msra.mxu0 %v1544_v56  ;;  %1854 = vmatpush.msrb.mxu3 %v1731_v49  ;;  %v1660_v56 = vld [vmem:[%s7908_s5 + $0x4a8] sm:$0xff] }
 0x1b4   :  { %1814 = vmatpush.msrb.mxu1 %v1579_v54  ;;  %1829 = vmatpush.msrb.mxu2 %v1675_v55  ;;  %v1155_v54 = vpop.f32.mrf.mxu0  ;;  %v1178_v55 = vpop.f32.mrf.mxu1  ;;  %v1736_v49 = vld [vmem:[%s7908_s5 + $0x708] sm:$0xff] }
 0x1b5   :  { %1877 = vmatpush.msra.mxu0 %v1540_v59  ;;  %1855 = vmatpush.msrb.mxu3 %v1727_v50  ;;  %v1176_v59 = vadd.f32 %v1175_v39, %v1153_v53  ;;  %v1537_v50 = vld [vmem:[%s7908_s5 + $0xd0] sm:$0xff] }
 0x1b6   :  { %1815 = vmatpush.msrb.mxu1 %v1575_v57  ;;  %1830 = vmatpush.msrb.mxu2 %v1671_v58  ;;  %v1719_v57 = vld [vmem:[%s7908_s5 + $0x680] sm:$0xff]  ;;  %v1656_v58 = vld [vmem:[%s7908_s5 + $0x488] sm:$0xff] }
 0x1b7   :  { %1878 = vmatpush.msra.mxu0 %v1536_v61  ;;  %1856 = vmatpush.msrb.mxu3 %v1723_v52  ;;  %v1652_v61 = vld [vmem:[%s7908_s5 + $0x468] sm:$0xff] }
 0x1b8   :  { %1892 = vmatpush.msra.mxu1 %v1636_v60  ;;  %1831 = vmatpush.msrb.mxu2 %v1667_v9  ;;  %v1715_v9 = vld [vmem:[%s7908_s5 + $0x660] sm:$0xff] }
 0x1b9   :  { %1879 = vmatpush.msra.mxu0 %v1532_v1  ;;  %1857 = vmatpush.msrb.mxu3 %v1719_v57 }
 0x1ba   :  { %1893 = vmatpush.msra.mxu1 %v1632_v63  ;;  %1832 = vmatpush.msrb.mxu2 %v1663_v0  ;;  %v1711_v63 = vld [vmem:[%s7908_s5 + $0x640] sm:$0xff] }
 0x1bb   :  { %1880 = vmatpush.msra.mxu0 %v1528_v6  ;;  %1858 = vmatpush.msrb.mxu3 %v1715_v9  ;;  %v1707_v6 = vld [vmem:[%s7908_s5 + $0x620] sm:$0xff]  ;;  %v1625_v9 = vld [vmem:[%s7908_s5 + $0x390] sm:$0xff] }
 0x1bc   :  { %1894 = vmatpush.msra.mxu1 %v1628_v2  ;;  %1833 = vmatpush.msrb.mxu2 %v1659_v5  ;;  %v1648_v5 = vld [vmem:[%s7908_s5 + $0x448] sm:$0xff] }
 0x1bd   :  { %1881 = vmatpush.msra.mxu0 %v1524_v10  ;;  %v1198_v41 = vpop.f32.mrf.mxu2  ;;  %1859 = vmatpush.msrb.mxu3 %v1711_v63  ;;  %v1573_v10 = vld [vmem:[%s7908_s5 + $0x1f0] sm:$0xff] }
 0x1be   :  { %1895 = vmatpush.msra.mxu1 %v1624_v7  ;;  %1834 = vmatpush.msrb.mxu2 %v1655_v8  ;;  %v1199_v0 = vadd.f32 %v1198_v41, %v1176_v59  ;;  %v1156_v7 = vadd.f32 %v1155_v54, %v1127_v43  ;;  %v1545_v41 = vld [vmem:[%s7908_s5 + $0x110] sm:$0xff] }
 0x1bf   :  { %1882 = vmatpush.msra.mxu0 %v1520_v13  ;;  %1860 = vmatpush.msrb.mxu3 %v1707_v6  ;;  %v1244_v13 = vpop.f32.mrf.mxu0  ;;  %v1633_v43 = vld [vmem:[%s7908_s5 + $0x3d0] sm:$0xff]  ;;  %v1724_v6 = vld [vmem:[%s7908_s5 + $0x6a8] sm:$0xff] }
 0x1c0   :  { %1896 = vmatpush.msra.mxu1 %v1620_v11  ;;  %1835 = vmatpush.msrb.mxu2 %v1651_v12  ;;  %v1644_v11 = vld [vmem:[%s7908_s5 + $0x428] sm:$0xff]  ;;  %v1703_v12 = vld [vmem:[%s7908_s5 + $0x600] sm:$0xff]  ;;  %v1533_v54 = vld [vmem:[%s7908_s5 + $0xb0] sm:$0xff] }
 0x1c1   :  { %1883 = vmatpush.msra.mxu0 %v1516_v32  ;;  %v1569_v32 = vld [vmem:[%s7908_s5 + $0x1d0] sm:$0xff]  ;;  %1861 = vmatpush.msrb.mxu3 %v1703_v12  ;;  %v1720_v12 = vld [vmem:[%s7908_s5 + $0x688] sm:$0xff] }
 0x1c2   :  { %1897 = vmatpush.msra.mxu1 %v1616_v46  ;;  %1836 = vmatpush.msrb.mxu2 %v1647_v14  ;;  %v1179_v46 = vadd.f32 %v1178_v55, %v1156_v7  ;;  %v1267_v14 = vpop.f32.mrf.mxu1  ;;  %v1629_v55 = vld [vmem:[%s7908_s5 + $0x3b0] sm:$0xff] }
 0x1c3   :  { %1884 = vmatpush.msra.mxu0 %v1512_v17  ;;  %v1128_v17 = vperm.slane %v6075_v47, 1  ;;  %v1521_v7 = vld [vmem:[%s7908_s5 + $0x50] sm:$0xff] }
 0x1c4   :  { %1898 = vmatpush.msra.mxu1 %v1612_v15  ;;  %1837 = vmatpush.msrb.mxu2 %v1643_v16  ;;  %v1640_v15 = vld [vmem:[%s7908_s5 + $0x408] sm:$0xff] }
 0x1c5   :  { %v1764_v16 = vld [vmem:[%s7908_s5 + $0x7e8] sm:$0xff]  ;;  %v1245_v25 = vadd.f32 %v1244_v13, %v1128_v17  ;;  %v1517_v13 = vld [vmem:[%s7908_s5 + $0x30] sm:$0xff] }
 0x1c6   :  { %1899 = vmatpush.msra.mxu1 %v1608_v18  ;;  %1838 = vmatpush.msrb.mxu2 %v1639_v20 }
 0x1c7   :  { %v1201_v60 = vpop.f32.mrf.mxu2  ;;  %1938 = vmatpush.msra.mxu3 %v1764_v16 }
 0x1c8   :  { %1900 = vmatpush.msra.mxu1 %v1604_v22  ;;  %1915 = vmatpush.msra.mxu2 %v1700_v3  ;;  %v1202_v18 = vadd.f32 %v1201_v60, %v1179_v46  ;;  %v1760_v22 = vld [vmem:[%s7908_s5 + $0x7c8] sm:$0xff]  ;;  %v1529_v60 = vld [vmem:[%s7908_s5 + $0x90] sm:$0xff] }
 0x1c9   :  { %1939 = vmatpush.msra.mxu3 %v1760_v22  ;;  %v1613_v46 = vld [vmem:[%s7908_s5 + $0x330] sm:$0xff] }
 0x1ca   :  { %1901 = vmatpush.msra.mxu1 %v1600_v28  ;;  %1916 = vmatpush.msra.mxu2 %v1696_v29  ;;  %v1561_v28 = vld [vmem:[%s7908_s5 + $0x190] sm:$0xff]  ;;  %v1756_v29 = vld [vmem:[%s7908_s5 + $0x7a8] sm:$0xff] }
 0x1cb   :  { %1940 = vmatpush.msra.mxu3 %v1756_v29  ;;  %v1701_v29 = vld [vmem:[%s7908_s5 + $0x5f0] sm:$0xff] }
 0x1cc   :  { %1902 = vmatpush.msra.mxu1 %v1596_v30  ;;  %1917 = vmatpush.msra.mxu2 %v1692_v31  ;;  %v1557_v31 = vld [vmem:[%s7908_s5 + $0x170] sm:$0xff] }
 0x1cd   :  { %1941 = vmatpush.msra.mxu3 %v1752_v33  ;;  %v1712_v33 = vld [vmem:[%s7908_s5 + $0x648] sm:$0xff] }
 0x1ce   :  { %1903 = vmatpush.msra.mxu1 %v1592_v27  ;;  %1918 = vmatpush.msra.mxu2 %v1688_v34  ;;  %v1268_v27 = vadd.f32 %v1267_v14, %v1245_v25  ;;  %v1553_v34 = vld [vmem:[%s7908_s5 + $0x150] sm:$0xff] }
 0x1cf   :  { %1942 = vmatpush.msra.mxu3 %v1748_v35  ;;  %v1697_v35 = vld [vmem:[%s7908_s5 + $0x5d0] sm:$0xff] }
 0x1d0   :  { %1904 = vmatpush.msra.mxu1 %v1588_v36  ;;  %1919 = vmatpush.msra.mxu2 %v1684_v37  ;;  %v1247_v36 = vpop.f32.mrf.mxu0  ;;  %v1270_v37 = vpop.f32.mrf.mxu1 }
 0x1d1   :  { %v1290_v20 = vpop.f32.mrf.mxu2 }
 0x1d2   :  { %1905 = vmatpush.msra.mxu1 %v1584_v4  ;;  %1920 = vmatpush.msra.mxu2 %v1680_v40  ;;  %v1291_v38 = vadd.f32 %v1290_v20, %v1268_v27  ;;  %v1744_v4 = vld [vmem:[%s7908_s5 + $0x748] sm:$0xff] }
 0x1d3   :  { %1943 = vmatpush.msra.mxu3 %v1744_v4 }
 0x1d4   :  { %1906 = vmatpush.msra.mxu1 %v1580_v42  ;;  %1921 = vmatpush.msra.mxu2 %v1676_v44  ;;  %v1740_v42 = vld [vmem:[%s7908_s5 + $0x728] sm:$0xff]  ;;  %v1248_v44 = vadd.f32 %v1247_v36, %v1128_v17  ;;  %v1513_v17 = vld [vmem:[%s7908_s5 + $0x10] sm:$0xff]  ;;  %v1566_v36 = vld [vmem:[%s7908_s5 + $0x1b8] sm:$0xff] }
 0x1d5   :  { %1944 = vmatpush.msra.mxu3 %v1740_v42  ;;  %v1593_v42 = vld [vmem:[%s7908_s5 + $0x290] sm:$0xff] }
 0x1d6   :  { %1907 = vmatpush.msra.mxu1 %v1576_v24  ;;  %1922 = vmatpush.msra.mxu2 %v1672_v48  ;;  %v1541_v24 = vld [vmem:[%s7908_s5 + $0xf0] sm:$0xff] }
 0x1d7   :  { %v1637_v48 = vld [vmem:[%s7908_s5 + $0x3f0] sm:$0xff]  ;;  %1945 = vmatpush.msra.mxu3 %v1736_v49 }
 0x1d8   :  { %1923 = vmatpush.msra.mxu2 %v1668_v19  ;;  %v1271_v19 = vadd.f32 %v1270_v37, %v1248_v44  ;;  %v1336_v52 = vpop.f32.mrf.mxu0  ;;  %v1708_v37 = vld [vmem:[%s7908_s5 + $0x628] sm:$0xff]  ;;  %v1689_v44 = vld [vmem:[%s7908_s5 + $0x590] sm:$0xff] }
 0x1d9   :  { %v1293_v40 = vpop.f32.mrf.mxu2  ;;  %v1589_v49 = vld [vmem:[%s7908_s5 + $0x270] sm:$0xff] }
 0x1da   :  { %1924 = vmatpush.msra.mxu2 %v1664_v51  ;;  %v1732_v51 = vld [vmem:[%s7908_s5 + $0x6e8] sm:$0xff]  ;;  %v1294_v53 = vadd.f32 %v1293_v40, %v1271_v19  ;;  %v1562_v40 = vld [vmem:[%s7908_s5 + $0x198] sm:$0xff]  ;;  %v1685_v19 = vld [vmem:[%s7908_s5 + $0x570] sm:$0xff] }
 0x1db   :  { %1946 = vmatpush.msra.mxu3 %v1732_v51  ;;  %v1681_v51 = vld [vmem:[%s7908_s5 + $0x550] sm:$0xff] }
 0x1dc   :  { %1925 = vmatpush.msra.mxu2 %v1660_v56  ;;  %v1129_v56 = vperm.slane %v6075_v47, 2 }
 0x1de   :  { %1926 = vmatpush.msra.mxu2 %v1656_v58  ;;  %v1359_v58 = vpop.f32.mrf.mxu1 }
 0x1e0   :  { %1927 = vmatpush.msra.mxu2 %v1652_v61  ;;  %v1728_v61 = vld [vmem:[%s7908_s5 + $0x6c8] sm:$0xff] }
 0x1e1   :  { %v1382_v63 = vpop.f32.mrf.mxu2  ;;  %1947 = vmatpush.msra.mxu3 %v1728_v61  ;;  %v1669_v61 = vld [vmem:[%s7908_s5 + $0x4f0] sm:$0xff] }
 0x1e2   :  { %1928 = vmatpush.msra.mxu2 %v1648_v5  ;;  %v1337_v5 = vadd.f32 %v1336_v52, %v1129_v56  ;;  %v1550_v52 = vld [vmem:[%s7908_s5 + $0x138] sm:$0xff] }
 0x1e3   :  { %v1221_v1 = vpop.f32.mrf.mxu3  ;;  %1948 = vmatpush.msra.mxu3 %v1724_v6 }
 0x1e4   :  { %v1222_v2 = vadd.f32 %v1221_v1, %v1199_v0  ;;  %1929 = vmatpush.msra.mxu2 %v1644_v11  ;;  %v1525_v1 = vld [vmem:[%s7908_s5 + $0x70] sm:$0xff]  ;;  %v1360_v11 = vadd.f32 %v1359_v58, %v1337_v5  ;;  %v1542_v58 = vld [vmem:[%s7908_s5 + $0xf8] sm:$0xff] }
 0x1e5   :  { %1949 = vmatpush.msra.mxu3 %v1720_v12  ;;  %v1534_v5 = vld [vmem:[%s7908_s5 + $0xb8] sm:$0xff] }
 0x1e6   :  { %v6123_v8 = vmax.f32 %v1222_v2, 0.0  ;;  %1930 = vmatpush.msra.mxu2 %v1640_v15  ;;  %v1621_v2 = vld [vmem:[%s7908_s5 + $0x370] sm:$0xff]  ;;  %v1383_v14 = vadd.f32 %v1382_v63, %v1360_v11  ;;  %v1339_v15 = vpop.f32.mrf.mxu0  ;;  %v1362_v22 = vpop.f32.mrf.mxu1  ;;  %v1538_v63 = vld [vmem:[%s7908_s5 + $0xd8] sm:$0xff] }
 0x1e7   :  { %v1661_v11 = vld [vmem:[%s7908_s5 + $0x4b0] sm:$0xff]  ;;  %v1530_v12 = vld [vmem:[%s7908_s5 + $0x98] sm:$0xff] }
 0x1e8   :  { %1793 = vmatmul.f32.vlgmr.msrb.gmra.mxu0 %v6123_v8 }
 0x1e9   :  { %1961 = vmatpush.msrb.mxu0 %v1573_v10  ;;  %v1617_v10 = vld [vmem:[%s7908_s5 + $0x350] sm:$0xff]  ;;  %v1385_v25 = vpop.f32.mrf.mxu2 }
 0x1eb   :  { %1962 = vmatpush.msrb.mxu0 %v1569_v32  ;;  %v1716_v32 = vld [vmem:[%s7908_s5 + $0x668] sm:$0xff] }
 0x1ec   :  { %v1224_v3 = vpop.f32.mrf.mxu3  ;;  %1950 = vmatpush.msra.mxu3 %v1716_v32  ;;  %v1526_v32 = vld [vmem:[%s7908_s5 + $0x78] sm:$0xff] }
 0x1ed   :  { %v1225_v23 = vadd.f32 %v1224_v3, %v1202_v18  ;;  %1963 = vmatpush.msrb.mxu0 %v1565_v21  ;;  %v1609_v18 = vld [vmem:[%s7908_s5 + $0x310] sm:$0xff]  ;;  %v1574_v21 = vld [vmem:[%s7908_s5 + $0x1f8] sm:$0xff]  ;;  %v1340_v3 = vadd.f32 %v1339_v15, %v1129_v56 }
 0x1ee   :  { %1951 = vmatpush.msra.mxu3 %v1712_v33  ;;  %v1577_v56 = vld [vmem:[%s7908_s5 + $0x210] sm:$0xff]  ;;  %v1622_v15 = vld [vmem:[%s7908_s5 + $0x378] sm:$0xff] }
 0x1ef   :  { %v6157_v30 = vmax.f32 %v1225_v23, 0.0  ;;  %1964 = vmatpush.msrb.mxu0 %v1561_v28  ;;  %v1605_v28 = vld [vmem:[%s7908_s5 + $0x2f0] sm:$0xff]  ;;  %v1363_v27 = vadd.f32 %v1362_v22, %v1340_v3  ;;  %v1618_v22 = vld [vmem:[%s7908_s5 + $0x358] sm:$0xff] }
 0x1f0   :  { %1952 = vmatpush.msra.mxu3 %v1708_v37  ;;  %v1610_v37 = vld [vmem:[%s7908_s5 + $0x318] sm:$0xff] }
 0x1f1   :  { %1796 = vmatmul.f32.gmra.mxu0 %v6157_v30 }
 0x1f2   :  { %1965 = vmatpush.msrb.mxu0 %v1557_v31  ;;  %v1570_v31 = vld [vmem:[%s7908_s5 + $0x1d8] sm:$0xff] }
 0x1f4   :  { %1966 = vmatpush.msrb.mxu0 %v1553_v34  ;;  %v1313_v39 = vpop.f32.mrf.mxu3  ;;  %v1601_v34 = vld [vmem:[%s7908_s5 + $0x2d0] sm:$0xff] }
 0x1f5   :  { %v1314_v26 = vadd.f32 %v1313_v39, %v1291_v38  ;;  %v1386_v38 = vadd.f32 %v1385_v25, %v1363_v27  ;;  %v1693_v39 = vld [vmem:[%s7908_s5 + $0x5b0] sm:$0xff]  ;;  %v1518_v25 = vld [vmem:[%s7908_s5 + $0x38] sm:$0xff] }
 0x1f6   :  { %1967 = vmatpush.msrb.mxu0 %v1549_v62  ;;  %v1597_v62 = vld [vmem:[%s7908_s5 + $0x2b0] sm:$0xff] }
 0x1f7   :  { %v6184_v45 = vmax.f32 %v1314_v26, 0.0  ;;  %v1704_v26 = vld [vmem:[%s7908_s5 + $0x608] sm:$0xff] }
 0x1f8   :  { %1968 = vmatpush.msrb.mxu0 %v1545_v41  ;;  %1953 = vmatpush.msra.mxu3 %v1704_v26  ;;  %v1702_v26 = vld [vmem:[%s7908_s5 + $0x5f8] sm:$0xff] }
 0x1f9   :  { %1816 = vmatmul.f32.vlgmr.msrb.gmra.mxu1 %v6184_v45  ;;  %1885 = vmatmul.f32.vlgmr.msra.gmra.mxu0 %v6123_v8 }
 0x1fa   :  { %1969 = vmatpush.msrb.mxu0 %v1541_v24  ;;  %1984 = vmatpush.msrb.mxu1 %v1637_v48  ;;  %v1558_v24 = vld [vmem:[%s7908_s5 + $0x178] sm:$0xff] }
 0x1fc   :  { %1970 = vmatpush.msrb.mxu0 %v1537_v50  ;;  %1985 = vmatpush.msrb.mxu1 %v1633_v43  ;;  %v1316_v57 = vpop.f32.mrf.mxu3  ;;  %v1554_v50 = vld [vmem:[%s7908_s5 + $0x158] sm:$0xff]  ;;  %v1585_v43 = vld [vmem:[%s7908_s5 + $0x250] sm:$0xff] }
 0x1fd   :  { %v1317_v59 = vadd.f32 %v1316_v57, %v1294_v53  ;;  %v1581_v53 = vld [vmem:[%s7908_s5 + $0x230] sm:$0xff] }
 0x1fe   :  { %1971 = vmatpush.msrb.mxu0 %v1533_v54  ;;  %1986 = vmatpush.msrb.mxu1 %v1629_v55  ;;  %v1677_v54 = vld [vmem:[%s7908_s5 + $0x530] sm:$0xff]  ;;  %v1546_v55 = vld [vmem:[%s7908_s5 + $0x118] sm:$0xff] }
 0x1ff   :  { %v6222_v0 = vmax.f32 %v1317_v59, 0.0  ;;  %v1673_v57 = vld [vmem:[%s7908_s5 + $0x510] sm:$0xff]  ;;  %v1638_v59 = vld [vmem:[%s7908_s5 + $0x3f8] sm:$0xff] }
 0x200   :  { %1972 = vmatpush.msrb.mxu0 %v1529_v60  ;;  %1987 = vmatpush.msrb.mxu1 %v1625_v9  ;;  %v1428_v60 = vpop.f32.mrf.mxu0  ;;  %v1130_v9 = vperm.slane %v6075_v47, 3  ;;  %v1665_v47 = vld [vmem:[%s7908_s5 + $0x4d0] sm:$0xff] }
 0x201   :  { %1819 = vmatmul.f32.gmra.mxu1 %v6222_v0  ;;  %1888 = vmatmul.f32.gmra.mxu0 %v6157_v30  ;;  %v1474_v6 = vpop.f32.mrf.mxu2 }
 0x202   :  { %1973 = vmatpush.msrb.mxu0 %v1525_v1  ;;  %1988 = vmatpush.msrb.mxu1 %v1621_v2  ;;  %v1451_v1 = vpop.f32.mrf.mxu1  ;;  %v1634_v2 = vld [vmem:[%s7908_s5 + $0x3d8] sm:$0xff] }
 0x204   :  { %1974 = vmatpush.msrb.mxu0 %v1521_v7  ;;  %1989 = vmatpush.msrb.mxu1 %v1617_v10  ;;  %v1405_v16 = vpop.f32.mrf.mxu3  ;;  %v1630_v7 = vld [vmem:[%s7908_s5 + $0x3b8] sm:$0xff]  ;;  %v1429_v10 = vadd.f32 %v1428_v60, %v1130_v9  ;;  %v1741_v60 = vld [vmem:[%s7908_s5 + $0x730] sm:$0xff] }
 0x205   :  { %v1406_v20 = vadd.f32 %v1405_v16, %v1383_v14  ;;  %v1657_v14 = vld [vmem:[%s7908_s5 + $0x490] sm:$0xff] }
 0x206   :  { %1975 = vmatpush.msrb.mxu0 %v1517_v13  ;;  %1990 = vmatpush.msrb.mxu1 %v1613_v46  ;;  %v1626_v13 = vld [vmem:[%s7908_s5 + $0x398] sm:$0xff]  ;;  %v1452_v46 = vadd.f32 %v1451_v1, %v1429_v10 }
 0x207   :  { %v6262_v23 = vmax.f32 %v1406_v20, 0.0  ;;  %v1674_v1 = vld [vmem:[%s7908_s5 + $0x518] sm:$0xff] }
 0x208   :  { %1976 = vmatpush.msrb.mxu0 %v1513_v17  ;;  %1991 = vmatpush.msrb.mxu1 %v1609_v18  ;;  %v1475_v16 = vadd.f32 %v1474_v6, %v1452_v46  ;;  %v1653_v17 = vld [vmem:[%s7908_s5 + $0x470] sm:$0xff]  ;;  %v1431_v18 = vpop.f32.mrf.mxu0  ;;  %v1666_v6 = vld [vmem:[%s7908_s5 + $0x4d8] sm:$0xff] }
 0x209   :  { %1908 = vmatmul.f32.vlgmr.msra.gmra.mxu1 %v6184_v45  ;;  %1839 = vmatmul.f32.vlgmr.msrb.gmra.mxu2 %v6262_v23  ;;  %v1432_v33 = vadd.f32 %v1431_v18, %v1130_v9  ;;  %v1582_v9 = vld [vmem:[%s7908_s5 + $0x238] sm:$0xff]  ;;  %v1713_v46 = vld [vmem:[%s7908_s5 + $0x650] sm:$0xff] }
 0x20a   :  { %2053 = vmatpush.msra.mxu0 %v1574_v21  ;;  %1992 = vmatpush.msrb.mxu1 %v1605_v28  ;;  %v1522_v21 = vld [vmem:[%s7908_s5 + $0x58] sm:$0xff]  ;;  %v1649_v28 = vld [vmem:[%s7908_s5 + $0x450] sm:$0xff] }
 0x20b   :  { %1977 = vmatmul.f32.vlgmr.msrb.gmra.mxu0 %v6123_v8  ;;  %2007 = vmatpush.msrb.mxu2 %v1701_v29  ;;  %v1454_v29 = vpop.f32.mrf.mxu1  ;;  %v1662_v10 = vld [vmem:[%s7908_s5 + $0x4b8] sm:$0xff] }
 0x20c   :  { %2054 = vmatpush.msra.mxu0 %v1570_v31  ;;  %1993 = vmatpush.msrb.mxu1 %v1601_v34  ;;  %v1408_v4 = vpop.f32.mrf.mxu3  ;;  %v1614_v31 = vld [vmem:[%s7908_s5 + $0x338] sm:$0xff]  ;;  %v1645_v34 = vld [vmem:[%s7908_s5 + $0x430] sm:$0xff] }
 0x20d   :  { %2008 = vmatpush.msrb.mxu2 %v1697_v35  ;;  %v1409_v41 = vadd.f32 %v1408_v4, %v1386_v38  ;;  %v1477_v35 = vpop.f32.mrf.mxu2  ;;  %v1455_v38 = vadd.f32 %v1454_v29, %v1432_v33  ;;  %v1606_v4 = vld [vmem:[%s7908_s5 + $0x2f8] sm:$0xff] }
 0x20e   :  { %2055 = vmatpush.msra.mxu0 %v1566_v36  ;;  %1994 = vmatpush.msrb.mxu1 %v1597_v62  ;;  %v1514_v36 = vld [vmem:[%s7908_s5 + $0x18] sm:$0xff]  ;;  %v1641_v62 = vld [vmem:[%s7908_s5 + $0x410] sm:$0xff] }
 0x20f   :  { %2009 = vmatpush.msrb.mxu2 %v1693_v39  ;;  %v6312_v48 = vmax.f32 %v1409_v41, 0.0  ;;  %v1765_v39 = vld [vmem:[%s7908_s5 + $0x7f0] sm:$0xff]  ;;  %v1762_v18 = vld [vmem:[%s7908_s5 + $0x7d8] sm:$0xff] }
 0x210   :  { %2056 = vmatpush.msra.mxu0 %v1562_v40  ;;  %1995 = vmatpush.msrb.mxu1 %v1593_v42  ;;  %v1478_v40 = vadd.f32 %v1477_v35, %v1455_v38  ;;  %v1761_v41 = vld [vmem:[%s7908_s5 + $0x7d0] sm:$0xff]  ;;  %v1742_v29 = vld [vmem:[%s7908_s5 + $0x738] sm:$0xff]  ;;  %v2189_v38 = vld [vmem:[%s7910_s7 + $0x120] sm:$0xff] }
 0x211   :  { %2010 = vmatpush.msrb.mxu2 %v1689_v44  ;;  %1911 = vmatmul.f32.gmra.mxu1 %v6222_v0  ;;  %v1602_v44 = vld [vmem:[%s7908_s5 + $0x2d8] sm:$0xff] }
 0x212   :  { %2057 = vmatpush.msra.mxu0 %v1558_v24  ;;  %1842 = vmatmul.f32.gmra.mxu2 %v6312_v48  ;;  %v1734_v33 = vld [vmem:[%s7908_s5 + $0x6f8] sm:$0xff] }
 0x213   :  { %1980 = vmatmul.f32.gmra.mxu0 %v6157_v30  ;;  %1996 = vmatpush.msrb.mxu1 %v1589_v49  ;;  %v1698_v49 = vld [vmem:[%s7908_s5 + $0x5d8] sm:$0xff] }
 0x214   :  { %2011 = vmatpush.msrb.mxu2 %v1685_v19  ;;  %2058 = vmatpush.msra.mxu0 %v1554_v50  ;;  %v1757_v19 = vld [vmem:[%s7908_s5 + $0x7b0] sm:$0xff]  ;;  %v1598_v50 = vld [vmem:[%s7908_s5 + $0x2b8] sm:$0xff] }
 0x215   :  { %1997 = vmatpush.msrb.mxu1 %v1585_v43  ;;  %v1730_v35 = vld [vmem:[%s7908_s5 + $0x6d8] sm:$0xff] }
 0x216   :  { %2012 = vmatpush.msrb.mxu2 %v1681_v51  ;;  %2059 = vmatpush.msra.mxu0 %v1550_v52  ;;  %v1753_v51 = vld [vmem:[%s7908_s5 + $0x790] sm:$0xff]  ;;  %v1594_v52 = vld [vmem:[%s7908_s5 + $0x298] sm:$0xff] }
 0x217   :  { %1998 = vmatpush.msrb.mxu1 %v1581_v53  ;;  %v1690_v53 = vld [vmem:[%s7908_s5 + $0x598] sm:$0xff] }
 0x218   :  { %2013 = vmatpush.msrb.mxu2 %v1677_v54  ;;  %2060 = vmatpush.msra.mxu0 %v1546_v55  ;;  %v1749_v54 = vld [vmem:[%s7908_s5 + $0x770] sm:$0xff]  ;;  %v1590_v55 = vld [vmem:[%s7908_s5 + $0x278] sm:$0xff] }
 0x219   :  { %1999 = vmatpush.msrb.mxu1 %v1577_v56  ;;  %v1686_v56 = vld [vmem:[%s7908_s5 + $0x578] sm:$0xff] }
 0x21a   :  { %2014 = vmatpush.msrb.mxu2 %v1673_v57  ;;  %2061 = vmatpush.msra.mxu0 %v1542_v58  ;;  %v1745_v57 = vld [vmem:[%s7908_s5 + $0x750] sm:$0xff]  ;;  %v1586_v58 = vld [vmem:[%s7908_s5 + $0x258] sm:$0xff] }
 0x21b   :  { %2076 = vmatpush.msra.mxu1 %v1638_v59  ;;  %1931 = vmatmul.f32.vlgmr.msra.gmra.mxu2 %v6262_v23  ;;  %v1682_v59 = vld [vmem:[%s7908_s5 + $0x558] sm:$0xff] }
 0x21c   :  { %2000 = vmatmul.f32.vlgmr.msrb.gmra.mxu1 %v6184_v45  ;;  %2015 = vmatpush.msrb.mxu2 %v1669_v61  ;;  %v1737_v61 = vld [vmem:[%s7908_s5 + $0x710] sm:$0xff] }
 0x21d   :  { %2062 = vmatpush.msra.mxu0 %v1538_v63  ;;  %2077 = vmatpush.msra.mxu1 %v1634_v2  ;;  %v1578_v63 = vld [vmem:[%s7908_s5 + $0x218] sm:$0xff]  ;;  %v1733_v2 = vld [vmem:[%s7908_s5 + $0x6f0] sm:$0xff] }
 0x21e   :  { %2016 = vmatpush.msrb.mxu2 %v1665_v47  ;;  %v1670_v47 = vld [vmem:[%s7908_s5 + $0x4f8] sm:$0xff] }
 0x21f   :  { %2063 = vmatpush.msra.mxu0 %v1534_v5  ;;  %2078 = vmatpush.msra.mxu1 %v1630_v7  ;;  %v1729_v5 = vld [vmem:[%s7908_s5 + $0x6d0] sm:$0xff] }
 0x220   :  { %2017 = vmatpush.msrb.mxu2 %v1661_v11  ;;  %v1725_v7 = vld [vmem:[%s7908_s5 + $0x6b0] sm:$0xff] }
 0x221   :  { %2064 = vmatpush.msra.mxu0 %v1530_v12  ;;  %2079 = vmatpush.msra.mxu1 %v1626_v13  ;;  %v1721_v11 = vld [vmem:[%s7908_s5 + $0x690] sm:$0xff]  ;;  %v1654_v13 = vld [vmem:[%s7908_s5 + $0x478] sm:$0xff] }
 0x222   :  { %2018 = vmatpush.msrb.mxu2 %v1657_v14  ;;  %v1717_v12 = vld [vmem:[%s7908_s5 + $0x670] sm:$0xff]  ;;  %v1650_v14 = vld [vmem:[%s7908_s5 + $0x458] sm:$0xff] }
 0x223   :  { %2065 = vmatpush.msra.mxu0 %v1526_v32  ;;  %2080 = vmatpush.msra.mxu1 %v1622_v15  ;;  %v1709_v32 = vld [vmem:[%s7908_s5 + $0x630] sm:$0xff]  ;;  %v1646_v15 = vld [vmem:[%s7908_s5 + $0x438] sm:$0xff] }
 0x224   :  { %v1497_v20 = vpop.f32.mrf.mxu3  ;;  %1934 = vmatmul.f32.gmra.mxu2 %v6312_v48  ;;  %2003 = vmatmul.f32.gmra.mxu1 %v6222_v0 }
 0x225   :  { %v1498_v3 = vadd.f32 %v1497_v20, %v1475_v16  ;;  %2019 = vmatpush.msrb.mxu2 %v1653_v17  ;;  %2066 = vmatpush.msra.mxu0 %v1522_v21  ;;  %v1705_v16 = vld [vmem:[%s7908_s5 + $0x610] sm:$0xff]  ;;  %v1642_v17 = vld [vmem:[%s7908_s5 + $0x418] sm:$0xff] }
 0x226   :  { %2081 = vmatpush.msra.mxu1 %v1618_v22  ;;  %v1758_v20 = vld [vmem:[%s7908_s5 + $0x7b8] sm:$0xff] }
 0x227   :  { %v6415_v27 = vmax.f32 %v1498_v3, 0.0  ;;  %2020 = vmatpush.msrb.mxu2 %v1649_v28  ;;  %2067 = vmatpush.msra.mxu0 %v1518_v25  ;;  %v1754_v21 = vld [vmem:[%s7908_s5 + $0x798] sm:$0xff]  ;;  %v2213_v28 = vld [vmem:[%s7910_s7 + $0x1e0] sm:$0xff] }
 0x228   :  { %2082 = vmatpush.msra.mxu1 %v1614_v31  ;;  %v1750_v22 = vld [vmem:[%s7908_s5 + $0x778] sm:$0xff]  ;;  %v2205_v25 = vld [vmem:[%s7910_s7 + $0x1a0] sm:$0xff] }
 0x229   :  { %2021 = vmatpush.msrb.mxu2 %v1645_v34  ;;  %1862 = vmatmul.f32.vlgmr.msrb.gmra.mxu3 %v6415_v27  ;;  %v1746_v3 = vld [vmem:[%s7908_s5 + $0x758] sm:$0xff]  ;;  %v2197_v34 = vld [vmem:[%s7910_s7 + $0x160] sm:$0xff] }
 0x22a   :  { %2068 = vmatpush.msra.mxu0 %v1514_v36  ;;  %2083 = vmatpush.msra.mxu1 %v1610_v37  ;;  %v1738_v31 = vld [vmem:[%s7908_s5 + $0x718] sm:$0xff]  ;;  %v2193_v36 = vld [vmem:[%s7910_s7 + $0x140] sm:$0xff] }
 0x22b   :  { %2022 = vmatpush.msrb.mxu2 %v1641_v62  ;;  %2030 = vmatpush.msrb.mxu3 %v1765_v39  ;;  %v1726_v37 = vld [vmem:[%s7908_s5 + $0x6b8] sm:$0xff] }
 0x22c   :  { %v1500_v42 = vpop.f32.mrf.mxu3  ;;  %2069 = vmatmul.f32.vlgmr.msra.gmra.mxu0 %v6123_v8  ;;  %2084 = vmatpush.msra.mxu1 %v1606_v4  ;;  %v1694_v8 = vld [vmem:[%s7908_s5 + $0x5b8] sm:$0xff]  ;;  %v2185_v4 = vld [vmem:[%s7910_s7 + $0x100] sm:$0xff] }
 0x22d   :  { %v1501_v24 = vadd.f32 %v1500_v42, %v1478_v40  ;;  %2099 = vmatpush.msra.mxu2 %v1702_v26  ;;  %2031 = vmatpush.msrb.mxu3 %v1761_v41  ;;  %v1722_v62 = vld [vmem:[%s7908_s5 + $0x698] sm:$0xff]  ;;  %v2277_v40 = vld [vmem:[%s7910_s7 + $0x3e0] sm:$0xff] }
 0x22e   :  { %2023 = vmatmul.f32.vlgmr.msrb.gmra.mxu2 %v6262_v23  ;;  %2085 = vmatpush.msra.mxu1 %v1602_v44  ;;  %v1718_v39 = vld [vmem:[%s7908_s5 + $0x678] sm:$0xff]  ;;  %v2181_v26 = vld [vmem:[%s7910_s7 + $0xe0] sm:$0xff] }
 0x22f   :  { %v6456_v43 = vmax.f32 %v1501_v24, 0.0  ;;  %2100 = vmatpush.msra.mxu2 %v1698_v49  ;;  %2032 = vmatpush.msrb.mxu3 %v1757_v19  ;;  %v2273_v41 = vld [vmem:[%s7910_s7 + $0x3c0] sm:$0xff]  ;;  %v1714_v42 = vld [vmem:[%s7908_s5 + $0x658] sm:$0xff] }
 0x230   :  { %2086 = vmatpush.msra.mxu1 %v1598_v50  ;;  %2419 = vmatpush.msrb.mxu0 %v2213_v28  ;;  %v2269_v44 = vld [vmem:[%s7910_s7 + $0x3a0] sm:$0xff]  ;;  %v1710_v49 = vld [vmem:[%s7908_s5 + $0x638] sm:$0xff]  ;;  %v2174_v28 = vld [vmem:[%s7910_s7 + $0xa8] sm:$0xff] }
 0x231   :  { %2101 = vmatpush.msra.mxu2 %v1694_v8  ;;  %2033 = vmatpush.msrb.mxu3 %v1753_v51  ;;  %v2177_v24 = vld [vmem:[%s7910_s7 + $0xc0] sm:$0xff]  ;;  %v1706_v50 = vld [vmem:[%s7908_s5 + $0x618] sm:$0xff] }
 0x232   :  { %2087 = vmatpush.msra.mxu1 %v1594_v52  ;;  %1865 = vmatmul.f32.gmra.mxu3 %v6456_v43  ;;  %v2173_v19 = vld [vmem:[%s7910_s7 + $0xa0] sm:$0xff] }
 0x233   :  { %2102 = vmatpush.msra.mxu2 %v1690_v53  ;;  %2034 = vmatpush.msrb.mxu3 %v1749_v54  ;;  %v2169_v8 = vld [vmem:[%s7910_s7 + $0x80] sm:$0xff] }
 0x234   :  { %2072 = vmatmul.f32.gmra.mxu0 %v6157_v30  ;;  %2088 = vmatpush.msra.mxu1 %v1590_v55  ;;  %v1678_v30 = vld [vmem:[%s7908_s5 + $0x538] sm:$0xff]  ;;  %v2265_v51 = vld [vmem:[%s7910_s7 + $0x380] sm:$0xff] }
 0x235   :  { %2103 = vmatpush.msra.mxu2 %v1686_v56  ;;  %2035 = vmatpush.msrb.mxu3 %v1745_v57  ;;  %v2165_v52 = vld [vmem:[%s7910_s7 + $0x60] sm:$0xff] }
 0x236   :  { %2026 = vmatmul.f32.gmra.mxu2 %v6312_v48  ;;  %2089 = vmatpush.msra.mxu1 %v1586_v58  ;;  %v2261_v53 = vld [vmem:[%s7910_s7 + $0x360] sm:$0xff] }
 0x237   :  { %2104 = vmatpush.msra.mxu2 %v1682_v59  ;;  %2036 = vmatpush.msrb.mxu3 %v1741_v60  ;;  %v2161_v54 = vld [vmem:[%s7910_s7 + $0x40] sm:$0xff]  ;;  %v2214_v59 = vld [vmem:[%s7910_s7 + $0x1e8] sm:$0xff] }
 0x238   :  { %2090 = vmatpush.msra.mxu1 %v1582_v9  ;;  %v2257_v55 = vld [vmem:[%s7910_s7 + $0x340] sm:$0xff]  ;;  %v2210_v9 = vld [vmem:[%s7910_s7 + $0x1c8] sm:$0xff] }
 0x239   :  { %2105 = vmatpush.msra.mxu2 %v1678_v30  ;;  %2037 = vmatpush.msrb.mxu3 %v1737_v61  ;;  %v2253_v56 = vld [vmem:[%s7910_s7 + $0x320] sm:$0xff] }
 0x23a   :  { %2091 = vmatpush.msra.mxu1 %v1578_v63  ;;  %1954 = vmatmul.f32.vlgmr.msra.gmra.mxu3 %v6415_v27  ;;  %v2153_v57 = vld [vmem:[%s7910_s7] sm:$0xff]  ;;  %v2206_v63 = vld [vmem:[%s7910_s7 + $0x1a8] sm:$0xff] }
 0x23b   :  { %2106 = vmatpush.msra.mxu2 %v1674_v1  ;;  %2038 = vmatpush.msrb.mxu3 %v1733_v2  ;;  %v2249_v58 = vld [vmem:[%s7910_s7 + $0x300] sm:$0xff] }
 0x23c   :  { %2092 = vmatmul.f32.vlgmr.msra.gmra.mxu1 %v6184_v45  ;;  %v1658_v45 = vld [vmem:[%s7908_s5 + $0x498] sm:$0xff]  ;;  %v2245_v60 = vld [vmem:[%s7910_s7 + $0x2e0] sm:$0xff] }
 0x23d   :  { %2107 = vmatpush.msra.mxu2 %v1670_v47  ;;  %2039 = vmatpush.msrb.mxu3 %v1729_v5  ;;  %v2241_v30 = vld [vmem:[%s7910_s7 + $0x2c0] sm:$0xff]  ;;  %v2202_v47 = vld [vmem:[%s7910_s7 + $0x188] sm:$0xff] }
 0x23e   :  { %2442 = vmatpush.msrb.mxu1 %v2277_v40  ;;  %v2337_v61 = vld [vmem:[%s7910_s7 + $0x5c0] sm:$0xff]  ;;  %v2154_v40 = vld [vmem:[%s7910_s7 + $0x8] sm:$0xff] }
 0x23f   :  { %2108 = vmatpush.msra.mxu2 %v1666_v6  ;;  %2040 = vmatpush.msrb.mxu3 %v1725_v7  ;;  %v2237_v1 = vld [vmem:[%s7910_s7 + $0x2a0] sm:$0xff]  ;;  %v2198_v7 = vld [vmem:[%s7910_s7 + $0x168] sm:$0xff] }
 0x240   :  { %2443 = vmatpush.msrb.mxu1 %v2273_v41  ;;  %v2333_v2 = vld [vmem:[%s7910_s7 + $0x5a0] sm:$0xff] }
 0x241   :  { %2109 = vmatpush.msra.mxu2 %v1662_v10  ;;  %2041 = vmatpush.msrb.mxu3 %v1721_v11  ;;  %v2233_v5 = vld [vmem:[%s7910_s7 + $0x280] sm:$0xff] }
 0x242   :  { %1957 = vmatmul.f32.gmra.mxu3 %v6456_v43  ;;  %2444 = vmatpush.msrb.mxu1 %v2269_v44  ;;  %v2329_v6 = vld [vmem:[%s7910_s7 + $0x580] sm:$0xff]  ;;  %v2246_v44 = vld [vmem:[%s7910_s7 + $0x2e8] sm:$0xff] }
 0x243   :  { %2110 = vmatpush.msra.mxu2 %v1658_v45  ;;  %2042 = vmatpush.msrb.mxu3 %v1717_v12  ;;  %v2229_v10 = vld [vmem:[%s7910_s7 + $0x260] sm:$0xff]  ;;  %v2194_v45 = vld [vmem:[%s7910_s7 + $0x148] sm:$0xff] }
 0x244   :  { %2095 = vmatmul.f32.gmra.mxu1 %v6222_v0  ;;  %v1766_v0 = vld [vmem:[%s7908_s5 + $0x7f8] sm:$0xff]  ;;  %v2325_v11 = vld [vmem:[%s7910_s7 + $0x560] sm:$0xff]  ;;  %s3765_s5 = sshll.u32 %s7916_s13, 4  ;;  %s3766_s5 = int_to_ptr.hbm [resolvable:$true] %s3765_s5 }
 0x245   :  { %2111 = vmatpush.msra.mxu2 %v1654_v13  ;;  %2043 = vmatpush.msrb.mxu3 %v1713_v46  ;;  %v2225_v12 = vld [vmem:[%s7910_s7 + $0x240] sm:$0xff]  ;;  %v2190_v46 = vld [vmem:[%s7910_s7 + $0x128] sm:$0xff] }
 0x246   :  { %2445 = vmatpush.msrb.mxu1 %v2265_v51  ;;  %v2321_v13 = vld [vmem:[%s7910_s7 + $0x540] sm:$0xff]  ;;  %v2238_v51 = vld [vmem:[%s7910_s7 + $0x2a8] sm:$0xff] }
 0x247   :  { %2112 = vmatpush.msra.mxu2 %v1650_v14  ;;  %2044 = vmatpush.msrb.mxu3 %v1709_v32  ;;  %v2221_v14 = vld [vmem:[%s7910_s7 + $0x220] sm:$0xff] }
 0x248   :  { %2446 = vmatpush.msrb.mxu1 %v2261_v53  ;;  %v2317_v32 = vld [vmem:[%s7910_s7 + $0x520] sm:$0xff] }
 0x249   :  { %2113 = vmatpush.msra.mxu2 %v1646_v15  ;;  %2045 = vmatpush.msrb.mxu3 %v1705_v16  ;;  %v2186_v15 = vld [vmem:[%s7910_s7 + $0x108] sm:$0xff]  ;;  %v2217_v16 = vld [vmem:[%s7910_s7 + $0x200] sm:$0xff] }
 0x24a   :  { %2046 = vmatmul.f32.vlgmr.msrb.gmra.mxu3 %v6415_v27  ;;  %2447 = vmatpush.msrb.mxu1 %v2257_v55  ;;  %v2281_v41 = vld [vmem:[%s7910_s7 + $0x400] sm:$0xff]  ;;  %v2330_v55 = vld [vmem:[%s7910_s7 + $0x588] sm:$0xff] }
 0x24b   :  { %2122 = vmatpush.msra.mxu3 %v1766_v0  ;;  %2114 = vmatpush.msra.mxu2 %v1642_v17  ;;  %v2313_v0 = vld [vmem:[%s7910_s7 + $0x500] sm:$0xff]  ;;  %v2182_v17 = vld [vmem:[%s7910_s7 + $0xe8] sm:$0xff] }
 0x24c   :  { %2115 = vmatmul.f32.vlgmr.msra.gmra.mxu2 %v6262_v23  ;;  %v2209_v23 = vld [vmem:[%s7910_s7 + $0x1c0] sm:$0xff]  ;;  %2448 = vmatpush.msrb.mxu1 %v2253_v56  ;;  %v2230_v56 = vld [vmem:[%s7910_s7 + $0x268] sm:$0xff] }
 0x24d   :  { %2123 = vmatpush.msra.mxu3 %v1762_v18  ;;  %2420 = vmatpush.msrb.mxu0 %v2209_v23  ;;  %v2278_v18 = vld [vmem:[%s7910_s7 + $0x3e8] sm:$0xff]  ;;  %v2393_v53 = vld [vmem:[%s7910_s7 + $0x780] sm:$0xff] }
 0x24e   :  { %2449 = vmatpush.msrb.mxu1 %v2249_v58  ;;  %v2270_v23 = vld [vmem:[%s7910_s7 + $0x3a8] sm:$0xff] }
 0x24f   :  { %2124 = vmatpush.msra.mxu3 %v1758_v20  ;;  %2421 = vmatpush.msrb.mxu0 %v2205_v25  ;;  %v2309_v20 = vld [vmem:[%s7910_s7 + $0x4e0] sm:$0xff]  ;;  %v2170_v25 = vld [vmem:[%s7910_s7 + $0x88] sm:$0xff] }
 0x250   :  { %2450 = vmatpush.msrb.mxu1 %v2245_v60 }
 0x251   :  { %2125 = vmatpush.msra.mxu3 %v1754_v21  ;;  %v2178_v21 = vld [vmem:[%s7910_s7 + $0xc8] sm:$0xff] }
 0x252   :  { %2049 = vmatmul.f32.gmra.mxu3 %v6456_v43  ;;  %2451 = vmatpush.msrb.mxu1 %v2241_v30  ;;  %v2381_v30 = vld [vmem:[%s7910_s7 + $0x720] sm:$0xff] }
 0x253   :  { %2126 = vmatpush.msra.mxu3 %v1750_v22  ;;  %v2274_v22 = vld [vmem:[%s7910_s7 + $0x3c8] sm:$0xff] }
 0x254   :  { %2118 = vmatmul.f32.gmra.mxu2 %v6312_v48  ;;  %v2201_v48 = vld [vmem:[%s7910_s7 + $0x180] sm:$0xff]  ;;  %2452 = vmatpush.msrb.mxu1 %v2237_v1  ;;  %v2222_v1 = vld [vmem:[%s7910_s7 + $0x228] sm:$0xff] }
 0x255   :  { %2127 = vmatpush.msra.mxu3 %v1746_v3  ;;  %2422 = vmatpush.msrb.mxu0 %v2201_v48  ;;  %v2305_v3 = vld [vmem:[%s7910_s7 + $0x4c0] sm:$0xff]  ;;  %v2166_v48 = vld [vmem:[%s7910_s7 + $0x68] sm:$0xff] }
 0x256   :  { %2453 = vmatpush.msrb.mxu1 %v2233_v5  ;;  %v2218_v5 = vld [vmem:[%s7910_s7 + $0x208] sm:$0xff] }
 0x257   :  { %2128 = vmatpush.msra.mxu3 %v1742_v29  ;;  %2423 = vmatpush.msrb.mxu0 %v2197_v34  ;;  %v2301_v29 = vld [vmem:[%s7910_s7 + $0x4a0] sm:$0xff]  ;;  %v2262_v34 = vld [vmem:[%s7910_s7 + $0x368] sm:$0xff] }
 0x258   :  { %2454 = vmatpush.msrb.mxu1 %v2229_v10 }
 0x259   :  { %2129 = vmatpush.msra.mxu3 %v1738_v31  ;;  %2424 = vmatpush.msrb.mxu0 %v2193_v36  ;;  %v2266_v31 = vld [vmem:[%s7910_s7 + $0x388] sm:$0xff] }
 0x25a   :  { %2455 = vmatpush.msrb.mxu1 %v2225_v12  ;;  %v2162_v36 = vld [vmem:[%s7910_s7 + $0x48] sm:$0xff] }
 0x25b   :  { %2130 = vmatpush.msra.mxu3 %v1734_v33  ;;  %2425 = vmatpush.msrb.mxu0 %v2189_v38  ;;  %v2297_v33 = vld [vmem:[%s7910_s7 + $0x480] sm:$0xff] }
 0x25c   :  { %2456 = vmatpush.msrb.mxu1 %v2221_v14  ;;  %v2289_v38 = vld [vmem:[%s7910_s7 + $0x440] sm:$0xff] }
 0x25d   :  { %2131 = vmatpush.msra.mxu3 %v1730_v35  ;;  %2426 = vmatpush.msrb.mxu0 %v2185_v4  ;;  %v2293_v35 = vld [vmem:[%s7910_s7 + $0x460] sm:$0xff] }
 0x25e   :  { %2457 = vmatpush.msrb.mxu1 %v2217_v16  ;;  %v2285_v4 = vld [vmem:[%s7910_s7 + $0x420] sm:$0xff] }
 0x25f   :  { %2132 = vmatpush.msra.mxu3 %v1726_v37  ;;  %2427 = vmatpush.msrb.mxu0 %v2181_v26  ;;  %v2258_v37 = vld [vmem:[%s7910_s7 + $0x348] sm:$0xff]  ;;  %v2365_v14 = vld [vmem:[%s7910_s7 + $0x6a0] sm:$0xff] }
 0x260   :  { %2534 = vmatpush.msra.mxu1 %v2278_v18  ;;  %v2250_v26 = vld [vmem:[%s7910_s7 + $0x308] sm:$0xff]  ;;  %v2361_v16 = vld [vmem:[%s7910_s7 + $0x680] sm:$0xff] }
 0x261   :  { %2133 = vmatpush.msra.mxu3 %v1722_v62  ;;  %2428 = vmatpush.msrb.mxu0 %v2177_v24  ;;  %v2158_v62 = vld [vmem:[%s7910_s7 + $0x28] sm:$0xff] }
 0x262   :  { %2535 = vmatpush.msra.mxu1 %v2274_v22  ;;  %v2342_v24 = vld [vmem:[%s7910_s7 + $0x5e8] sm:$0xff] }
 0x263   :  { %2134 = vmatpush.msra.mxu3 %v1718_v39  ;;  %2429 = vmatpush.msrb.mxu0 %v2173_v19  ;;  %v2254_v39 = vld [vmem:[%s7910_s7 + $0x328] sm:$0xff] }
 0x264   :  { %2536 = vmatpush.msra.mxu1 %v2270_v23  ;;  %v2242_v19 = vld [vmem:[%s7910_s7 + $0x2c8] sm:$0xff] }
 0x265   :  { %2135 = vmatpush.msra.mxu3 %v1714_v42  ;;  %2430 = vmatpush.msrb.mxu0 %v2169_v8  ;;  %v2405_v42 = vld [vmem:[%s7910_s7 + $0x7e0] sm:$0xff]  ;;  %v1794_v58 = vpop.f32.mrf.mxu0  ;;  %v2294_v22 = vld [vmem:[%s7910_s7 + $0x468] sm:$0xff] }
 0x266   :  { %2537 = vmatpush.msra.mxu1 %v2266_v31  ;;  %v2397_v8 = vld [vmem:[%s7910_s7 + $0x7a0] sm:$0xff]  ;;  %v2215_v31 = vld [vmem:[%s7910_s7 + $0x1f0] sm:$0xff] }
 0x267   :  { %2136 = vmatpush.msra.mxu3 %v1710_v49  ;;  %2431 = vmatpush.msrb.mxu0 %v2165_v52  ;;  %v2401_v49 = vld [vmem:[%s7910_s7 + $0x7c0] sm:$0xff]  ;;  %v2334_v52 = vld [vmem:[%s7910_s7 + $0x5a8] sm:$0xff] }
 0x268   :  { %2538 = vmatpush.msra.mxu1 %v2262_v34 }
 0x269   :  { %2137 = vmatpush.msra.mxu3 %v1706_v50  ;;  %2432 = vmatpush.msrb.mxu0 %v2161_v54  ;;  %v2338_v50 = vld [vmem:[%s7910_s7 + $0x5c8] sm:$0xff] }
 0x26a   :  { %2138 = vmatmul.f32.vlgmr.msra.gmra.mxu3 %v6415_v27  ;;  %v2157_v27 = vld [vmem:[%s7910_s7 + $0x20] sm:$0xff]  ;;  %2539 = vmatpush.msra.mxu1 %v2258_v37  ;;  %v2234_v54 = vld [vmem:[%s7910_s7 + $0x288] sm:$0xff] }
 0x26b   :  { %2433 = vmatpush.msrb.mxu0 %v2157_v27  ;;  %2488 = vmatpush.msrb.mxu3 %v2405_v42  ;;  %v2389_v27 = vld [vmem:[%s7910_s7 + $0x760] sm:$0xff] }
 0x26c   :  { %2540 = vmatpush.msra.mxu1 %v2254_v39  ;;  %v2345_v37 = vld [vmem:[%s7910_s7 + $0x600] sm:$0xff]  ;;  %v2282_v39 = vld [vmem:[%s7910_s7 + $0x408] sm:$0xff] }
 0x26d   :  { %2434 = vmatpush.msrb.mxu0 %v2153_v57  ;;  %2489 = vmatpush.msrb.mxu3 %v2401_v49  ;;  %v2326_v57 = vld [vmem:[%s7910_s7 + $0x568] sm:$0xff]  ;;  %v2203_v49 = vld [vmem:[%s7910_s7 + $0x190] sm:$0xff] }
 0x26e   :  { %2541 = vmatpush.msra.mxu1 %v2250_v26  ;;  %v1797_v12 = vpop.f32.mrf.mxu0 }
 0x26f   :  { %2511 = vmatpush.msra.mxu0 %v2214_v59  ;;  %2490 = vmatpush.msrb.mxu3 %v2397_v8  ;;  %v2385_v59 = vld [vmem:[%s7910_s7 + $0x740] sm:$0xff] }
 0x270   :  { %2542 = vmatpush.msra.mxu1 %v2246_v44  ;;  %v2402_v44 = vld [vmem:[%s7910_s7 + $0x7c8] sm:$0xff] }
 0x271   :  { %2512 = vmatpush.msra.mxu0 %v2210_v9  ;;  %2491 = vmatpush.msrb.mxu3 %v2393_v53  ;;  %v2322_v9 = vld [vmem:[%s7910_s7 + $0x548] sm:$0xff] }
 0x272   :  { %2141 = vmatmul.f32.gmra.mxu3 %v6456_v43  ;;  %v2341_v43 = vld [vmem:[%s7910_s7 + $0x5e0] sm:$0xff]  ;;  %2543 = vmatpush.msra.mxu1 %v2242_v19  ;;  %v2394_v53 = vld [vmem:[%s7910_s7 + $0x788] sm:$0xff] }
 0x273   :  { %2465 = vmatpush.msrb.mxu2 %v2341_v43  ;;  %2513 = vmatpush.msra.mxu0 %v2206_v63  ;;  %v2226_v43 = vld [vmem:[%s7910_s7 + $0x248] sm:$0xff] }
 0x274   :  { %2544 = vmatpush.msra.mxu1 %v2238_v51  ;;  %2492 = vmatpush.msrb.mxu3 %v2389_v27  ;;  %v2195_v27 = vld [vmem:[%s7910_s7 + $0x150] sm:$0xff] }
 0x275   :  { %2466 = vmatpush.msrb.mxu2 %v2337_v61  ;;  %2514 = vmatpush.msra.mxu0 %v2202_v47  ;;  %v6891_v61 = vld [vmem:[%s7909_s6] sm:$0xf] }
 0x276   :  { %2545 = vmatpush.msra.mxu1 %v2234_v54  ;;  %v1817_v60 = vpop.f32.mrf.mxu1  ;;  %2493 = vmatpush.msrb.mxu3 %v2385_v59  ;;  %v2377_v47 = vld [vmem:[%s7910_s7 + $0x700] sm:$0xff]  ;;  %v1769_v10 = vperm.slane %v6891_v61, 0  ;;  %v1886_v34 = vpop.f32.mrf.mxu0  ;;  %v1770_v26 = vperm.slane %v6891_v61, 1  ;;  %v2191_v59 = vld [vmem:[%s7910_s7 + $0x130] sm:$0xff] }
 0x277   :  { %2467 = vmatpush.msrb.mxu2 %v2333_v2  ;;  %2515 = vmatpush.msra.mxu0 %v2198_v7  ;;  %v2318_v2 = vld [vmem:[%s7910_s7 + $0x528] sm:$0xff]  ;;  %v2373_v7 = vld [vmem:[%s7910_s7 + $0x6e0] sm:$0xff] }
 0x278   :  { %2546 = vmatpush.msra.mxu1 %v2230_v56  ;;  %2494 = vmatpush.msrb.mxu3 %v2381_v30  ;;  %v1887_v8 = vadd.f32 %v1886_v34, %v1770_v26  ;;  %v2390_v56 = vld [vmem:[%s7910_s7 + $0x768] sm:$0xff] }
 0x279   :  { %2468 = vmatpush.msrb.mxu2 %v2329_v6  ;;  %2516 = vmatpush.msra.mxu0 %v2194_v45  ;;  %v2314_v6 = vld [vmem:[%s7910_s7 + $0x508] sm:$0xff]  ;;  %v2369_v45 = vld [vmem:[%s7910_s7 + $0x6c0] sm:$0xff] }
 0x27a   :  { %2547 = vmatpush.msra.mxu1 %v2226_v43  ;;  %2495 = vmatpush.msrb.mxu3 %v2377_v47  ;;  %v2386_v43 = vld [vmem:[%s7910_s7 + $0x748] sm:$0xff] }
 0x27b   :  { %2469 = vmatpush.msrb.mxu2 %v2325_v11  ;;  %2517 = vmatpush.msra.mxu0 %v2190_v46  ;;  %v2310_v11 = vld [vmem:[%s7910_s7 + $0x4e8] sm:$0xff]  ;;  %v1795_v46 = vadd.f32 %v1794_v58, %v1769_v10 }
 0x27c   :  { %2548 = vmatpush.msra.mxu1 %v2222_v1  ;;  %2496 = vmatpush.msrb.mxu3 %v2373_v7  ;;  %v2382_v1 = vld [vmem:[%s7910_s7 + $0x728] sm:$0xff] }
 0x27d   :  { %2470 = vmatpush.msrb.mxu2 %v2321_v13  ;;  %2518 = vmatpush.msra.mxu0 %v2186_v15  ;;  %v2306_v13 = vld [vmem:[%s7910_s7 + $0x4c8] sm:$0xff] }
 0x27e   :  { %2549 = vmatpush.msra.mxu1 %v2218_v5  ;;  %2497 = vmatpush.msrb.mxu3 %v2369_v45  ;;  %v2302_v15 = vld [vmem:[%s7910_s7 + $0x4a8] sm:$0xff]  ;;  %v1889_v54 = vpop.f32.mrf.mxu0  ;;  %v2183_v5 = vld [vmem:[%s7910_s7 + $0xf0] sm:$0xff] }
 0x27f   :  { %2471 = vmatpush.msrb.mxu2 %v2317_v32  ;;  %2519 = vmatpush.msra.mxu0 %v2182_v17  ;;  %v1820_v32 = vpop.f32.mrf.mxu1  ;;  %v2298_v17 = vld [vmem:[%s7910_s7 + $0x488] sm:$0xff]  ;;  %v2275_v45 = vld [vmem:[%s7910_s7 + $0x3d0] sm:$0xff] }
 0x280   :  { %2498 = vmatpush.msrb.mxu3 %v2365_v14  ;;  %v2378_v7 = vld [vmem:[%s7910_s7 + $0x708] sm:$0xff]  ;;  %v2175_v14 = vld [vmem:[%s7910_s7 + $0xb0] sm:$0xff] }
 0x281   :  { %2472 = vmatpush.msrb.mxu2 %v2313_v0  ;;  %2520 = vmatpush.msra.mxu0 %v2178_v21  ;;  %v1818_v0 = vadd.f32 %v1817_v60, %v1795_v46 }
 0x282   :  { %2499 = vmatpush.msrb.mxu3 %v2361_v16 }
 0x283   :  { %2473 = vmatpush.msrb.mxu2 %v2309_v20  ;;  %2521 = vmatpush.msra.mxu0 %v2174_v28  ;;  %v2357_v20 = vld [vmem:[%s7910_s7 + $0x660] sm:$0xff] }
 0x284   :  { %2500 = vmatpush.msrb.mxu3 %v2357_v20  ;;  %v2267_v20 = vld [vmem:[%s7910_s7 + $0x390] sm:$0xff] }
 0x285   :  { %2474 = vmatpush.msrb.mxu2 %v2305_v3  ;;  %2522 = vmatpush.msra.mxu0 %v2170_v25  ;;  %v2353_v3 = vld [vmem:[%s7910_s7 + $0x640] sm:$0xff] }
 0x286   :  { %2501 = vmatpush.msrb.mxu3 %v2353_v3 }
 0x287   :  { %2475 = vmatpush.msrb.mxu2 %v2301_v29  ;;  %2523 = vmatpush.msra.mxu0 %v2166_v48  ;;  %v2290_v29 = vld [vmem:[%s7910_s7 + $0x448] sm:$0xff]  ;;  %v1798_v48 = vadd.f32 %v1797_v12, %v1769_v10 }
 0x288   :  { %v2374_v12 = vld [vmem:[%s7910_s7 + $0x6e8] sm:$0xff] }
 0x289   :  { %2476 = vmatpush.msrb.mxu2 %v2297_v33  ;;  %2524 = vmatpush.msra.mxu0 %v2162_v36  ;;  %v2349_v33 = vld [vmem:[%s7910_s7 + $0x620] sm:$0xff]  ;;  %v2211_v36 = vld [vmem:[%s7910_s7 + $0x1d0] sm:$0xff] }
 0x28a   :  { %2502 = vmatpush.msrb.mxu3 %v2349_v33  ;;  %v2163_v33 = vld [vmem:[%s7910_s7 + $0x50] sm:$0xff] }
 0x28b   :  { %2477 = vmatpush.msrb.mxu2 %v2293_v35  ;;  %2525 = vmatpush.msra.mxu0 %v2158_v62  ;;  %v2286_v35 = vld [vmem:[%s7910_s7 + $0x428] sm:$0xff]  ;;  %v1909_v62 = vpop.f32.mrf.mxu1 }
 0x28c   :  { %v1840_v63 = vpop.f32.mrf.mxu2  ;;  %2503 = vmatpush.msrb.mxu3 %v2345_v37  ;;  %v2255_v37 = vld [vmem:[%s7910_s7 + $0x330] sm:$0xff] }
 0x28d   :  { %2478 = vmatpush.msrb.mxu2 %v2289_v38  ;;  %2526 = vmatpush.msra.mxu0 %v2154_v40  ;;  %v1841_v21 = vadd.f32 %v1840_v63, %v1818_v0  ;;  %v1821_v38 = vadd.f32 %v1820_v32, %v1798_v48  ;;  %v2207_v40 = vld [vmem:[%s7910_s7 + $0x1b0] sm:$0xff] }
 0x28e   :  { %v2187_v63 = vld [vmem:[%s7910_s7 + $0x110] sm:$0xff] }
 0x28f   :  { %2479 = vmatpush.msrb.mxu2 %v2285_v4  ;;  %v2406_v4 = vld [vmem:[%s7910_s7 + $0x7e8] sm:$0xff]  ;;  %v2271_v32 = vld [vmem:[%s7910_s7 + $0x3b0] sm:$0xff] }
 0x290   :  { %2580 = vmatpush.msra.mxu3 %v2406_v4  ;;  %v2259_v48 = vld [vmem:[%s7910_s7 + $0x350] sm:$0xff] }
 0x291   :  { %2480 = vmatpush.msrb.mxu2 %v2281_v41 }
 0x292   :  { %2581 = vmatpush.msra.mxu3 %v2402_v44 }
 0x293   :  { %2557 = vmatpush.msra.mxu2 %v2342_v24 }
 0x295   :  { %2558 = vmatpush.msra.mxu2 %v2338_v50  ;;  %v1843_v18 = vpop.f32.mrf.mxu2  ;;  %v2398_v50 = vld [vmem:[%s7910_s7 + $0x7a8] sm:$0xff] }
 0x296   :  { %v1844_v41 = vadd.f32 %v1843_v18, %v1821_v38  ;;  %2582 = vmatpush.msra.mxu3 %v2398_v50  ;;  %v2171_v18 = vld [vmem:[%s7910_s7 + $0x90] sm:$0xff] }
 0x297   :  { %2559 = vmatpush.msra.mxu2 %v2334_v52  ;;  %v2199_v52 = vld [vmem:[%s7910_s7 + $0x170] sm:$0xff] }
 0x298   :  { %2583 = vmatpush.msra.mxu3 %v2394_v53  ;;  %v2343_v50 = vld [vmem:[%s7910_s7 + $0x5f0] sm:$0xff]  ;;  %v2354_v53 = vld [vmem:[%s7910_s7 + $0x648] sm:$0xff] }
 0x299   :  { %2560 = vmatpush.msra.mxu2 %v2330_v55  ;;  %v1910_v55 = vadd.f32 %v1909_v62, %v1887_v8  ;;  %v2358_v62 = vld [vmem:[%s7910_s7 + $0x668] sm:$0xff] }
 0x29a   :  { %2584 = vmatpush.msra.mxu3 %v2390_v56  ;;  %v2208_v56 = vld [vmem:[%s7910_s7 + $0x1b8] sm:$0xff] }
 0x29b   :  { %2561 = vmatpush.msra.mxu2 %v2326_v57  ;;  %v1912_v57 = vpop.f32.mrf.mxu1 }
 0x29c   :  { %2585 = vmatpush.msra.mxu3 %v2386_v43 }
 0x29d   :  { %2562 = vmatpush.msra.mxu2 %v2322_v9 }
 0x29e   :  { %v1932_v42 = vpop.f32.mrf.mxu2  ;;  %2586 = vmatpush.msra.mxu3 %v2382_v1  ;;  %v2235_v1 = vld [vmem:[%s7910_s7 + $0x290] sm:$0xff] }
 0x29f   :  { %2563 = vmatpush.msra.mxu2 %v2318_v2  ;;  %v1933_v58 = vadd.f32 %v1932_v42, %v1910_v55  ;;  %v1890_v2 = vadd.f32 %v1889_v54, %v1770_v26  ;;  %v2251_v26 = vld [vmem:[%s7910_s7 + $0x310] sm:$0xff]  ;;  %v2216_v42 = vld [vmem:[%s7910_s7 + $0x1f8] sm:$0xff] }
 0x2a0   :  { %2587 = vmatpush.msra.mxu3 %v2378_v7  ;;  %v2243_v55 = vld [vmem:[%s7910_s7 + $0x2d0] sm:$0xff] }
 0x2a1   :  { %2564 = vmatpush.msra.mxu2 %v2314_v6  ;;  %v2279_v6 = vld [vmem:[%s7910_s7 + $0x3f0] sm:$0xff]  ;;  %v1913_v10 = vadd.f32 %v1912_v57, %v1890_v2  ;;  %v2350_v57 = vld [vmem:[%s7910_s7 + $0x628] sm:$0xff] }
 0x2a2   :  { %2588 = vmatpush.msra.mxu3 %v2374_v12  ;;  %v2331_v2 = vld [vmem:[%s7910_s7 + $0x590] sm:$0xff] }
 0x2a3   :  { %2565 = vmatpush.msra.mxu2 %v2310_v11  ;;  %v2179_v11 = vld [vmem:[%s7910_s7 + $0xd0] sm:$0xff]  ;;  %v2001_v0 = vpop.f32.mrf.mxu1 }
 0x2a4   :  { %v2231_v7 = vld [vmem:[%s7910_s7 + $0x270] sm:$0xff] }
 0x2a5   :  { %2566 = vmatpush.msra.mxu2 %v2306_v13  ;;  %v1978_v13 = vpop.f32.mrf.mxu0  ;;  %v2323_v12 = vld [vmem:[%s7910_s7 + $0x550] sm:$0xff] }
 0x2a7   :  { %2567 = vmatpush.msra.mxu2 %v2302_v15  ;;  %v1935_v9 = vpop.f32.mrf.mxu2  ;;  %v1771_v15 = vperm.slane %v6891_v61, 2 }
 0x2a8   :  { %v1936_v46 = vadd.f32 %v1935_v9, %v1913_v10  ;;  %v2204_v9 = vld [vmem:[%s7910_s7 + $0x198] sm:$0xff]  ;;  %v2327_v10 = vld [vmem:[%s7910_s7 + $0x570] sm:$0xff] }
 0x2a9   :  { %2568 = vmatpush.msra.mxu2 %v2298_v17 }
 0x2ab   :  { %2569 = vmatpush.msra.mxu2 %v2294_v22  ;;  %v2004_v44 = vpop.f32.mrf.mxu1 }
 0x2ac   :  { %v1863_v28 = vpop.f32.mrf.mxu3 }
 0x2ad   :  { %v1864_v23 = vadd.f32 %v1863_v28, %v1841_v21  ;;  %2570 = vmatpush.msra.mxu2 %v2290_v29  ;;  %v2370_v21 = vld [vmem:[%s7910_s7 + $0x6c8] sm:$0xff]  ;;  %v2167_v28 = vld [vmem:[%s7910_s7 + $0x70] sm:$0xff]  ;;  %v1979_v29 = vadd.f32 %v1978_v13, %v1771_v15  ;;  %v2192_v13 = vld [vmem:[%s7910_s7 + $0x138] sm:$0xff] }
 0x2ae   :  { %2589 = vmatpush.msra.mxu3 %v2370_v21  ;;  %v2311_v21 = vld [vmem:[%s7910_s7 + $0x4f0] sm:$0xff] }
 0x2af   :  { %v6945_v25 = vmax.f32 %v1864_v23, 0.0  ;;  %2571 = vmatpush.msra.mxu2 %v2286_v35  ;;  %v2263_v23 = vld [vmem:[%s7910_s7 + $0x370] sm:$0xff]  ;;  %v2002_v34 = vadd.f32 %v2001_v0, %v1979_v29  ;;  %v2362_v35 = vld [vmem:[%s7910_s7 + $0x688] sm:$0xff]  ;;  %v2184_v0 = vld [vmem:[%s7910_s7 + $0xf8] sm:$0xff] }
 0x2b0   :  { %v2176_v29 = vld [vmem:[%s7910_s7 + $0xb8] sm:$0xff] }
 0x2b1   :  { %2435 = vmatmul.f32.vlgmr.msrb.gmra.mxu0 %v6945_v25  ;;  %2572 = vmatpush.msra.mxu2 %v2282_v39  ;;  %v2024_v22 = vpop.f32.mrf.mxu2  ;;  %v1981_v39 = vpop.f32.mrf.mxu0 }
 0x2b2   :  { %2603 = vmatpush.msrb.mxu0 %v2215_v31  ;;  %v2366_v31 = vld [vmem:[%s7910_s7 + $0x6a8] sm:$0xff]  ;;  %v2025_v38 = vadd.f32 %v2024_v22, %v2002_v34  ;;  %v2180_v22 = vld [vmem:[%s7910_s7 + $0xd8] sm:$0xff]  ;;  %v2303_v34 = vld [vmem:[%s7910_s7 + $0x4b0] sm:$0xff] }
 0x2b3   :  { %2590 = vmatpush.msra.mxu3 %v2366_v31 }
 0x2b4   :  { %2604 = vmatpush.msrb.mxu0 %v2211_v36  ;;  %v2159_v36 = vld [vmem:[%s7910_s7 + $0x30] sm:$0xff] }
 0x2b5   :  { %v1866_v24 = vpop.f32.mrf.mxu3  ;;  %2591 = vmatpush.msra.mxu3 %v2362_v35  ;;  %v2172_v35 = vld [vmem:[%s7910_s7 + $0x98] sm:$0xff] }
 0x2b6   :  { %v1867_v19 = vadd.f32 %v1866_v24, %v1844_v41  ;;  %2605 = vmatpush.msrb.mxu0 %v2207_v40  ;;  %v2155_v40 = vld [vmem:[%s7910_s7 + $0x10] sm:$0xff]  ;;  %v1982_v24 = vadd.f32 %v1981_v39, %v1771_v15  ;;  %v2264_v39 = vld [vmem:[%s7910_s7 + $0x378] sm:$0xff] }
 0x2b7   :  { %2592 = vmatpush.msra.mxu3 %v2358_v62  ;;  %v2219_v15 = vld [vmem:[%s7910_s7 + $0x210] sm:$0xff]  ;;  %v2168_v62 = vld [vmem:[%s7910_s7 + $0x78] sm:$0xff] }
 0x2b8   :  { %v6982_v51 = vmax.f32 %v1867_v19, 0.0  ;;  %2606 = vmatpush.msrb.mxu0 %v2203_v49  ;;  %v2247_v19 = vld [vmem:[%s7910_s7 + $0x2f0] sm:$0xff]  ;;  %v2005_v54 = vadd.f32 %v2004_v44, %v1982_v24  ;;  %v2260_v44 = vld [vmem:[%s7910_s7 + $0x358] sm:$0xff] }
 0x2b9   :  { %v2027_v8 = vpop.f32.mrf.mxu2  ;;  %2593 = vmatpush.msra.mxu3 %v2354_v53 }
 0x2ba   :  { %2438 = vmatmul.f32.gmra.mxu0 %v6982_v51 }
 0x2bb   :  { %2607 = vmatpush.msrb.mxu0 %v2199_v52  ;;  %v2212_v52 = vld [vmem:[%s7910_s7 + $0x1d8] sm:$0xff]  ;;  %2594 = vmatpush.msra.mxu3 %v2350_v57 }
 0x2bc   :  { %v2252_v57 = vld [vmem:[%s7910_s7 + $0x318] sm:$0xff] }
 0x2bd   :  { %2608 = vmatpush.msrb.mxu0 %v2195_v27  ;;  %v1955_v60 = vpop.f32.mrf.mxu3  ;;  %v2339_v27 = vld [vmem:[%s7910_s7 + $0x5d0] sm:$0xff] }
 0x2be   :  { %v1956_v30 = vadd.f32 %v1955_v60, %v1933_v58  ;;  %v2028_v58 = vadd.f32 %v2027_v8, %v2005_v54  ;;  %v2335_v60 = vld [vmem:[%s7910_s7 + $0x5b0] sm:$0xff]  ;;  %v2160_v8 = vld [vmem:[%s7910_s7 + $0x38] sm:$0xff] }
 0x2bf   :  { %2609 = vmatpush.msrb.mxu0 %v2191_v59  ;;  %v2239_v59 = vld [vmem:[%s7910_s7 + $0x2b0] sm:$0xff] }
 0x2c0   :  { %v7009_v47 = vmax.f32 %v1956_v30, 0.0  ;;  %v2346_v30 = vld [vmem:[%s7910_s7 + $0x608] sm:$0xff] }
 0x2c1   :  { %2610 = vmatpush.msrb.mxu0 %v2187_v63  ;;  %2595 = vmatpush.msra.mxu3 %v2346_v30  ;;  %v2344_v30 = vld [vmem:[%s7910_s7 + $0x5f8] sm:$0xff] }
 0x2c2   :  { %2458 = vmatmul.f32.vlgmr.msrb.gmra.mxu1 %v7009_v47  ;;  %2527 = vmatmul.f32.vlgmr.msra.gmra.mxu0 %v6945_v25 }
 0x2c3   :  { %2611 = vmatpush.msrb.mxu0 %v2183_v5  ;;  %2626 = vmatpush.msrb.mxu1 %v2279_v6  ;;  %v2200_v5 = vld [vmem:[%s7910_s7 + $0x178] sm:$0xff] }
 0x2c5   :  { %2612 = vmatpush.msrb.mxu0 %v2179_v11  ;;  %2627 = vmatpush.msrb.mxu1 %v2275_v45  ;;  %v1958_v16 = vpop.f32.mrf.mxu3  ;;  %v2196_v11 = vld [vmem:[%s7910_s7 + $0x158] sm:$0xff]  ;;  %v2227_v45 = vld [vmem:[%s7910_s7 + $0x250] sm:$0xff] }
 0x2c6   :  { %v1959_v17 = vadd.f32 %v1958_v16, %v1936_v46  ;;  %v2223_v46 = vld [vmem:[%s7910_s7 + $0x230] sm:$0xff] }
 0x2c7   :  { %2613 = vmatpush.msrb.mxu0 %v2175_v14  ;;  %2628 = vmatpush.msrb.mxu1 %v2271_v32  ;;  %v2319_v14 = vld [vmem:[%s7910_s7 + $0x530] sm:$0xff]  ;;  %v2188_v32 = vld [vmem:[%s7910_s7 + $0x118] sm:$0xff] }
 0x2c8   :  { %v7047_v3 = vmax.f32 %v1959_v17, 0.0  ;;  %v2315_v16 = vld [vmem:[%s7910_s7 + $0x510] sm:$0xff]  ;;  %v2280_v17 = vld [vmem:[%s7910_s7 + $0x3f8] sm:$0xff] }
 0x2c9   :  { %2614 = vmatpush.msrb.mxu0 %v2171_v18  ;;  %2629 = vmatpush.msrb.mxu1 %v2267_v20  ;;  %v2070_v18 = vpop.f32.mrf.mxu0  ;;  %v1772_v20 = vperm.slane %v6891_v61, 3  ;;  %v2307_v61 = vld [vmem:[%s7910_s7 + $0x4d0] sm:$0xff] }
 0x2ca   :  { %2461 = vmatmul.f32.gmra.mxu1 %v7047_v3  ;;  %2530 = vmatmul.f32.gmra.mxu0 %v6982_v51 }
 0x2cb   :  { %2615 = vmatpush.msrb.mxu0 %v2167_v28  ;;  %2630 = vmatpush.msrb.mxu1 %v2263_v23  ;;  %v2093_v28 = vpop.f32.mrf.mxu1  ;;  %v2276_v23 = vld [vmem:[%s7910_s7 + $0x3d8] sm:$0xff] }
 0x2cd   :  { %2616 = vmatpush.msrb.mxu0 %v2163_v33  ;;  %2631 = vmatpush.msrb.mxu1 %v2259_v48  ;;  %v2047_v4 = vpop.f32.mrf.mxu3  ;;  %v2272_v33 = vld [vmem:[%s7910_s7 + $0x3b8] sm:$0xff]  ;;  %v2071_v48 = vadd.f32 %v2070_v18, %v1772_v20  ;;  %v2383_v18 = vld [vmem:[%s7910_s7 + $0x730] sm:$0xff] }
 0x2ce   :  { %v2048_v41 = vadd.f32 %v2047_v4, %v2025_v38  ;;  %v2299_v38 = vld [vmem:[%s7910_s7 + $0x490] sm:$0xff] }
 0x2cf   :  { %2617 = vmatpush.msrb.mxu0 %v2159_v36  ;;  %2632 = vmatpush.msrb.mxu1 %v2255_v37  ;;  %v2116_v31 = vpop.f32.mrf.mxu2  ;;  %v2268_v36 = vld [vmem:[%s7910_s7 + $0x398] sm:$0xff]  ;;  %v2094_v37 = vadd.f32 %v2093_v28, %v2071_v48 }
 0x2d0   :  { %v7087_v49 = vmax.f32 %v2048_v41, 0.0  ;;  %v2316_v28 = vld [vmem:[%s7910_s7 + $0x518] sm:$0xff] }
 0x2d1   :  { %2618 = vmatpush.msrb.mxu0 %v2155_v40  ;;  %2633 = vmatpush.msrb.mxu1 %v2251_v26  ;;  %v2117_v4 = vadd.f32 %v2116_v31, %v2094_v37  ;;  %v2295_v40 = vld [vmem:[%s7910_s7 + $0x470] sm:$0xff]  ;;  %v2073_v26 = vpop.f32.mrf.mxu0  ;;  %v2308_v31 = vld [vmem:[%s7910_s7 + $0x4d8] sm:$0xff] }
 0x2d2   :  { %2550 = vmatmul.f32.vlgmr.msra.gmra.mxu1 %v7009_v47  ;;  %2481 = vmatmul.f32.vlgmr.msrb.gmra.mxu2 %v7087_v49  ;;  %v2074_v53 = vadd.f32 %v2073_v26, %v1772_v20  ;;  %v2224_v20 = vld [vmem:[%s7910_s7 + $0x238] sm:$0xff]  ;;  %v2355_v37 = vld [vmem:[%s7910_s7 + $0x650] sm:$0xff] }
 0x2d3   :  { %2695 = vmatpush.msra.mxu0 %v2216_v42  ;;  %2634 = vmatpush.msrb.mxu1 %v2247_v19  ;;  %v2164_v42 = vld [vmem:[%s7910_s7 + $0x58] sm:$0xff]  ;;  %v2291_v19 = vld [vmem:[%s7910_s7 + $0x450] sm:$0xff] }
 0x2d4   :  { %2619 = vmatmul.f32.vlgmr.msrb.gmra.mxu0 %v6945_v25  ;;  %2649 = vmatpush.msrb.mxu2 %v2343_v50  ;;  %v2096_v50 = vpop.f32.mrf.mxu1  ;;  %v2304_v48 = vld [vmem:[%s7910_s7 + $0x4b8] sm:$0xff] }
 0x2d5   :  { %2696 = vmatpush.msra.mxu0 %v2212_v52  ;;  %2635 = vmatpush.msrb.mxu1 %v2243_v55  ;;  %v2050_v43 = vpop.f32.mrf.mxu3  ;;  %v2256_v52 = vld [vmem:[%s7910_s7 + $0x338] sm:$0xff]  ;;  %v2287_v55 = vld [vmem:[%s7910_s7 + $0x430] sm:$0xff] }
 0x2d6   :  { %2650 = vmatpush.msrb.mxu2 %v2339_v27  ;;  %v2051_v63 = vadd.f32 %v2050_v43, %v2028_v58  ;;  %v2097_v58 = vadd.f32 %v2096_v50, %v2074_v53  ;;  %v2248_v43 = vld [vmem:[%s7910_s7 + $0x2f8] sm:$0xff]  ;;  %v2851_v50 = vld [vmem:[#allocation2 + $0x1c0] sm:$0xff] }
 0x2d7   :  { %2697 = vmatpush.msra.mxu0 %v2208_v56  ;;  %2636 = vmatpush.msrb.mxu1 %v2239_v59  ;;  %v2119_v27 = vpop.f32.mrf.mxu2  ;;  %v2156_v56 = vld [vmem:[%s7910_s7 + $0x18] sm:$0xff]  ;;  %v2283_v59 = vld [vmem:[%s7910_s7 + $0x410] sm:$0xff] }
 0x2d8   :  { %2651 = vmatpush.msrb.mxu2 %v2335_v60  ;;  %v7137_v6 = vmax.f32 %v2051_v63, 0.0  ;;  %v2407_v60 = vld [vmem:[%s7910_s7 + $0x7f0] sm:$0xff]  ;;  %v2404_v26 = vld [vmem:[%s7910_s7 + $0x7d8] sm:$0xff] }
 0x2d9   :  { %2698 = vmatpush.msra.mxu0 %v2204_v9  ;;  %2637 = vmatpush.msrb.mxu1 %v2235_v1  ;;  %v2120_v9 = vadd.f32 %v2119_v27, %v2097_v58  ;;  %v2403_v63 = vld [vmem:[%s7910_s7 + $0x7d0] sm:$0xff]  ;;  %v2376_v53 = vld [vmem:[%s7910_s7 + $0x6f8] sm:$0xff]  ;;  %v2839_v27 = vld [vmem:[#allocation2 + $0x160] sm:$0xff] }
 0x2da   :  { %2652 = vmatpush.msrb.mxu2 %v2331_v2  ;;  %2553 = vmatmul.f32.gmra.mxu1 %v7047_v3  ;;  %v2244_v2 = vld [vmem:[%s7910_s7 + $0x2d8] sm:$0xff]  ;;  %v2831_v58 = vld [vmem:[#allocation2 + $0x120] sm:$0xff] }
 0x2db   :  { %2699 = vmatpush.msra.mxu0 %v2200_v5  ;;  %2484 = vmatmul.f32.gmra.mxu2 %v7137_v6 }
 0x2dc   :  { %2622 = vmatmul.f32.gmra.mxu0 %v6982_v51  ;;  %2638 = vmatpush.msrb.mxu1 %v2231_v7  ;;  %v2340_v7 = vld [vmem:[%s7910_s7 + $0x5d8] sm:$0xff] }
 0x2dd   :  { %2653 = vmatpush.msrb.mxu2 %v2327_v10  ;;  %2700 = vmatpush.msra.mxu0 %v2196_v11  ;;  %v2399_v10 = vld [vmem:[%s7910_s7 + $0x7b0] sm:$0xff]  ;;  %v2240_v11 = vld [vmem:[%s7910_s7 + $0x2b8] sm:$0xff] }
 0x2de   :  { %2639 = vmatpush.msrb.mxu1 %v2227_v45 }
 0x2df   :  { %2654 = vmatpush.msrb.mxu2 %v2323_v12  ;;  %2701 = vmatpush.msra.mxu0 %v2192_v13  ;;  %v2395_v12 = vld [vmem:[%s7910_s7 + $0x790] sm:$0xff]  ;;  %v2236_v13 = vld [vmem:[%s7910_s7 + $0x298] sm:$0xff] }
 0x2e0   :  { %2640 = vmatpush.msrb.mxu1 %v2223_v46  ;;  %v2332_v46 = vld [vmem:[%s7910_s7 + $0x598] sm:$0xff] }
 0x2e1   :  { %2655 = vmatpush.msrb.mxu2 %v2319_v14  ;;  %2702 = vmatpush.msra.mxu0 %v2188_v32  ;;  %v2391_v14 = vld [vmem:[%s7910_s7 + $0x770] sm:$0xff]  ;;  %v2232_v32 = vld [vmem:[%s7910_s7 + $0x278] sm:$0xff] }
 0x2e2   :  { %2641 = vmatpush.msrb.mxu1 %v2219_v15  ;;  %v2328_v15 = vld [vmem:[%s7910_s7 + $0x578] sm:$0xff] }
 0x2e3   :  { %2656 = vmatpush.msrb.mxu2 %v2315_v16  ;;  %2703 = vmatpush.msra.mxu0 %v2184_v0  ;;  %v2387_v16 = vld [vmem:[%s7910_s7 + $0x750] sm:$0xff]  ;;  %v2228_v0 = vld [vmem:[%s7910_s7 + $0x258] sm:$0xff] }
 0x2e4   :  { %2718 = vmatpush.msra.mxu1 %v2280_v17  ;;  %2573 = vmatmul.f32.vlgmr.msra.gmra.mxu2 %v7087_v49  ;;  %v2324_v17 = vld [vmem:[%s7910_s7 + $0x558] sm:$0xff] }
 0x2e5   :  { %2642 = vmatmul.f32.vlgmr.msrb.gmra.mxu1 %v7009_v47  ;;  %2657 = vmatpush.msrb.mxu2 %v2311_v21  ;;  %v2379_v21 = vld [vmem:[%s7910_s7 + $0x710] sm:$0xff] }
 0x2e6   :  { %2704 = vmatpush.msra.mxu0 %v2180_v22  ;;  %2719 = vmatpush.msra.mxu1 %v2276_v23  ;;  %v2220_v22 = vld [vmem:[%s7910_s7 + $0x218] sm:$0xff]  ;;  %v2375_v23 = vld [vmem:[%s7910_s7 + $0x6f0] sm:$0xff] }
 0x2e7   :  { %2658 = vmatpush.msrb.mxu2 %v2307_v61  ;;  %v2312_v61 = vld [vmem:[%s7910_s7 + $0x4f8] sm:$0xff] }
 0x2e8   :  { %2705 = vmatpush.msra.mxu0 %v2176_v29  ;;  %2720 = vmatpush.msra.mxu1 %v2272_v33  ;;  %v2371_v29 = vld [vmem:[%s7910_s7 + $0x6d0] sm:$0xff] }
 0x2e9   :  { %2659 = vmatpush.msrb.mxu2 %v2303_v34  ;;  %v2367_v33 = vld [vmem:[%s7910_s7 + $0x6b0] sm:$0xff] }
 0x2ea   :  { %2706 = vmatpush.msra.mxu0 %v2172_v35  ;;  %2721 = vmatpush.msra.mxu1 %v2268_v36  ;;  %v2363_v34 = vld [vmem:[%s7910_s7 + $0x690] sm:$0xff]  ;;  %v2296_v36 = vld [vmem:[%s7910_s7 + $0x478] sm:$0xff] }
 0x2eb   :  { %2660 = vmatpush.msrb.mxu2 %v2299_v38  ;;  %v2359_v35 = vld [vmem:[%s7910_s7 + $0x670] sm:$0xff]  ;;  %v2292_v38 = vld [vmem:[%s7910_s7 + $0x458] sm:$0xff] }
 0x2ec   :  { %2707 = vmatpush.msra.mxu0 %v2168_v62  ;;  %2722 = vmatpush.msra.mxu1 %v2264_v39  ;;  %v2351_v62 = vld [vmem:[%s7910_s7 + $0x630] sm:$0xff]  ;;  %v2288_v39 = vld [vmem:[%s7910_s7 + $0x438] sm:$0xff] }
 0x2ed   :  { %v2139_v41 = vpop.f32.mrf.mxu3  ;;  %2576 = vmatmul.f32.gmra.mxu2 %v7137_v6  ;;  %2645 = vmatmul.f32.gmra.mxu1 %v7047_v3 }
 0x2ee   :  { %v2140_v24 = vadd.f32 %v2139_v41, %v2117_v4  ;;  %2661 = vmatpush.msrb.mxu2 %v2295_v40  ;;  %2708 = vmatpush.msra.mxu0 %v2164_v42  ;;  %v2347_v4 = vld [vmem:[%s7910_s7 + $0x610] sm:$0xff]  ;;  %v2284_v40 = vld [vmem:[%s7910_s7 + $0x418] sm:$0xff] }
 0x2ef   :  { %2723 = vmatpush.msra.mxu1 %v2260_v44  ;;  %v2400_v41 = vld [vmem:[%s7910_s7 + $0x7b8] sm:$0xff] }
 0x2f0   :  { %v7240_v54 = vmax.f32 %v2140_v24, 0.0  ;;  %2662 = vmatpush.msrb.mxu2 %v2291_v19  ;;  %2709 = vmatpush.msra.mxu0 %v2160_v8  ;;  %v2396_v42 = vld [vmem:[%s7910_s7 + $0x798] sm:$0xff]  ;;  %v2855_v19 = vld [vmem:[#allocation2 + $0x1e0] sm:$0xff] }
 0x2f1   :  { %2724 = vmatpush.msra.mxu1 %v2256_v52  ;;  %v2392_v44 = vld [vmem:[%s7910_s7 + $0x778] sm:$0xff]  ;;  %v2847_v8 = vld [vmem:[#allocation2 + $0x1a0] sm:$0xff] }
 0x2f2   :  { %2663 = vmatpush.msrb.mxu2 %v2287_v55  ;;  %2504 = vmatmul.f32.vlgmr.msrb.gmra.mxu3 %v7240_v54  ;;  %v2388_v24 = vld [vmem:[%s7910_s7 + $0x758] sm:$0xff]  ;;  %v2843_v55 = vld [vmem:[#allocation2 + $0x180] sm:$0xff] }
 0x2f3   :  { %2710 = vmatpush.msra.mxu0 %v2156_v56  ;;  %2725 = vmatpush.msra.mxu1 %v2252_v57  ;;  %v2380_v52 = vld [vmem:[%s7910_s7 + $0x718] sm:$0xff]  ;;  %v2835_v56 = vld [vmem:[#allocation2 + $0x140] sm:$0xff] }
 0x2f4   :  { %2664 = vmatpush.msrb.mxu2 %v2283_v59  ;;  %2672 = vmatpush.msrb.mxu3 %v2407_v60  ;;  %v2368_v57 = vld [vmem:[%s7910_s7 + $0x6b8] sm:$0xff] }
 0x2f5   :  { %v2142_v1 = vpop.f32.mrf.mxu3  ;;  %2711 = vmatmul.f32.vlgmr.msra.gmra.mxu0 %v6945_v25  ;;  %2726 = vmatpush.msra.mxu1 %v2248_v43  ;;  %v2336_v25 = vld [vmem:[%s7910_s7 + $0x5b8] sm:$0xff]  ;;  %v2827_v43 = vld [vmem:[#allocation2 + $0x100] sm:$0xff] }
 0x2f6   :  { %v2143_v5 = vadd.f32 %v2142_v1, %v2120_v9  ;;  %2741 = vmatpush.msra.mxu2 %v2344_v30  ;;  %2673 = vmatpush.msrb.mxu3 %v2403_v63  ;;  %v2364_v59 = vld [vmem:[%s7910_s7 + $0x698] sm:$0xff]  ;;  %v2919_v9 = vld [vmem:[#allocation2 + $0x3e0] sm:$0xff] }
 0x2f7   :  { %2665 = vmatmul.f32.vlgmr.msrb.gmra.mxu2 %v7087_v49  ;;  %2727 = vmatpush.msra.mxu1 %v2244_v2  ;;  %v2360_v60 = vld [vmem:[%s7910_s7 + $0x678] sm:$0xff]  ;;  %v2823_v30 = vld [vmem:[#allocation2 + $0xe0] sm:$0xff] }
 0x2f8   :  { %v7281_v45 = vmax.f32 %v2143_v5, 0.0  ;;  %2742 = vmatpush.msra.mxu2 %v2340_v7  ;;  %2674 = vmatpush.msrb.mxu3 %v2399_v10  ;;  %v2915_v63 = vld [vmem:[#allocation2 + $0x3c0] sm:$0xff]  ;;  %v2356_v1 = vld [vmem:[%s7910_s7 + $0x658] sm:$0xff] }
 0x2f9   :  { %2728 = vmatpush.msra.mxu1 %v2240_v11  ;;  %3061 = vmatpush.msrb.mxu0 %v2855_v19  ;;  %v2911_v2 = vld [vmem:[#allocation2 + $0x3a0] sm:$0xff]  ;;  %v2352_v7 = vld [vmem:[%s7910_s7 + $0x638] sm:$0xff]  ;;  %v2816_v19 = vld [vmem:[#allocation2 + $0xa8] sm:$0xff] }
 0x2fa   :  { %2743 = vmatpush.msra.mxu2 %v2336_v25  ;;  %2675 = vmatpush.msrb.mxu3 %v2395_v12  ;;  %v2819_v5 = vld [vmem:[#allocation2 + $0xc0] sm:$0xff]  ;;  %v2348_v11 = vld [vmem:[%s7910_s7 + $0x618] sm:$0xff] }
 0x2fb   :  { %2729 = vmatpush.msra.mxu1 %v2236_v13  ;;  %2507 = vmatmul.f32.gmra.mxu3 %v7281_v45  ;;  %v2815_v10 = vld [vmem:[#allocation2 + $0xa0] sm:$0xff] }
 0x2fc   :  { %2744 = vmatpush.msra.mxu2 %v2332_v46  ;;  %2676 = vmatpush.msrb.mxu3 %v2391_v14  ;;  %v2811_v25 = vld [vmem:[#allocation2 + $0x80] sm:$0xff] }
 0x2fd   :  { %2714 = vmatmul.f32.gmra.mxu0 %v6982_v51  ;;  %2730 = vmatpush.msra.mxu1 %v2232_v32  ;;  %v2320_v51 = vld [vmem:[%s7910_s7 + $0x538] sm:$0xff]  ;;  %v2907_v12 = vld [vmem:[#allocation2 + $0x380] sm:$0xff] }
 0x2fe   :  { %2745 = vmatpush.msra.mxu2 %v2328_v15  ;;  %2677 = vmatpush.msrb.mxu3 %v2387_v16  ;;  %v2807_v13 = vld [vmem:[#allocation2 + $0x60] sm:$0xff] }
 0x2ff   :  { %2668 = vmatmul.f32.gmra.mxu2 %v7137_v6  ;;  %2731 = vmatpush.msra.mxu1 %v2228_v0  ;;  %v2903_v46 = vld [vmem:[#allocation2 + $0x360] sm:$0xff] }
 0x300   :  { %2746 = vmatpush.msra.mxu2 %v2324_v17  ;;  %2678 = vmatpush.msrb.mxu3 %v2383_v18  ;;  %v2803_v14 = vld [vmem:[#allocation2 + $0x40] sm:$0xff]  ;;  %v2856_v18 = vld [vmem:[#allocation2 + $0x1e8] sm:$0xff] }
 0x301   :  { %2732 = vmatpush.msra.mxu1 %v2224_v20  ;;  %3062 = vmatpush.msrb.mxu0 %v2851_v50  ;;  %v2899_v32 = vld [vmem:[#allocation2 + $0x340] sm:$0xff]  ;;  %v2912_v50 = vld [vmem:[#allocation2 + $0x3a8] sm:$0xff] }
 0x302   :  { %2747 = vmatpush.msra.mxu2 %v2320_v51  ;;  %2679 = vmatpush.msrb.mxu3 %v2379_v21  ;;  %v2799_v15 = vld [vmem:[#allocation2 + $0x20] sm:$0xff]  ;;  %v2852_v51 = vld [vmem:[#allocation2 + $0x1c8] sm:$0xff] }
 0x303   :  { %2733 = vmatpush.msra.mxu1 %v2220_v22  ;;  %2596 = vmatmul.f32.vlgmr.msra.gmra.mxu3 %v7240_v54  ;;  %v2895_v16 = vld [vmem:[#allocation2 + $0x320] sm:$0xff] }
 0x304   :  { %2748 = vmatpush.msra.mxu2 %v2316_v28  ;;  %2680 = vmatpush.msrb.mxu3 %v2375_v23  ;;  %v2795_v0 = vld [vmem:[#allocation2] sm:$0xff]  ;;  %v2848_v28 = vld [vmem:[#allocation2 + $0x1a8] sm:$0xff] }
 0x305   :  { %2734 = vmatmul.f32.vlgmr.msra.gmra.mxu1 %v7009_v47  ;;  %v2300_v47 = vld [vmem:[%s7910_s7 + $0x498] sm:$0xff]  ;;  %3063 = vmatpush.msrb.mxu0 %v2847_v8  ;;  %v2891_v17 = vld [vmem:[#allocation2 + $0x300] sm:$0xff]  ;;  %v2812_v8 = vld [vmem:[#allocation2 + $0x88] sm:$0xff] }
 0x306   :  { %2749 = vmatpush.msra.mxu2 %v2312_v61  ;;  %2681 = vmatpush.msrb.mxu3 %v2371_v29  ;;  %v2983_v20 = vld [vmem:[#allocation2 + $0x5e0] sm:$0xff] }
 0x307   :  { %3064 = vmatpush.msrb.mxu0 %v2843_v55  ;;  %3084 = vmatpush.msrb.mxu1 %v2919_v9  ;;  %v2883_v21 = vld [vmem:[#allocation2 + $0x2c0] sm:$0xff]  ;;  %v2808_v55 = vld [vmem:[#allocation2 + $0x68] sm:$0xff] }
 0x308   :  { %2750 = vmatpush.msra.mxu2 %v2308_v31  ;;  %2682 = vmatpush.msrb.mxu3 %v2367_v33  ;;  %v2979_v22 = vld [vmem:[#allocation2 + $0x5c0] sm:$0xff]  ;;  %v2840_v33 = vld [vmem:[#allocation2 + $0x168] sm:$0xff] }
 0x309   :  { %3065 = vmatpush.msrb.mxu0 %v2839_v27  ;;  %3085 = vmatpush.msrb.mxu1 %v2915_v63  ;;  %v2879_v23 = vld [vmem:[#allocation2 + $0x2a0] sm:$0xff]  ;;  %v2904_v27 = vld [vmem:[#allocation2 + $0x368] sm:$0xff] }
 0x30a   :  { %2751 = vmatpush.msra.mxu2 %v2304_v48  ;;  %2683 = vmatpush.msrb.mxu3 %v2363_v34  ;;  %v2975_v61 = vld [vmem:[#allocation2 + $0x5a0] sm:$0xff]  ;;  %v2796_v9 = vld [vmem:[#allocation2 + $0x8] sm:$0xff] }
 0x30b   :  { %2599 = vmatmul.f32.gmra.mxu3 %v7281_v45  ;;  %3066 = vmatpush.msrb.mxu0 %v2835_v56  ;;  %v2875_v29 = vld [vmem:[#allocation2 + $0x280] sm:$0xff]  ;;  %v2804_v56 = vld [vmem:[#allocation2 + $0x48] sm:$0xff] }
 0x30c   :  { %2752 = vmatpush.msra.mxu2 %v2300_v47  ;;  %2684 = vmatpush.msrb.mxu3 %v2359_v35  ;;  %v2971_v31 = vld [vmem:[#allocation2 + $0x580] sm:$0xff]  ;;  %v2836_v47 = vld [vmem:[#allocation2 + $0x148] sm:$0xff] }
 0x30d   :  { %2737 = vmatmul.f32.gmra.mxu1 %v7047_v3  ;;  %v2408_v3 = vld [vmem:[%s7910_s7 + $0x7f8] sm:$0xff]  ;;  %3067 = vmatpush.msrb.mxu0 %v2831_v58  ;;  %v2871_v48 = vld [vmem:[#allocation2 + $0x260] sm:$0xff] }
 0x30e   :  { %2753 = vmatpush.msra.mxu2 %v2296_v36  ;;  %2685 = vmatpush.msrb.mxu3 %v2355_v37  ;;  %v2967_v34 = vld [vmem:[#allocation2 + $0x560] sm:$0xff]  ;;  %v2832_v37 = vld [vmem:[#allocation2 + $0x128] sm:$0xff] }
 0x30f   :  { %3068 = vmatpush.msrb.mxu0 %v2827_v43  ;;  %3086 = vmatpush.msrb.mxu1 %v2911_v2  ;;  %v2867_v35 = vld [vmem:[#allocation2 + $0x240] sm:$0xff]  ;;  %v2888_v2 = vld [vmem:[#allocation2 + $0x2e8] sm:$0xff] }
 0x310   :  { %2754 = vmatpush.msra.mxu2 %v2292_v38  ;;  %2686 = vmatpush.msrb.mxu3 %v2351_v62  ;;  %v2963_v36 = vld [vmem:[#allocation2 + $0x540] sm:$0xff] }
 0x311   :  { %3069 = vmatpush.msrb.mxu0 %v2823_v30  ;;  %3087 = vmatpush.msrb.mxu1 %v2907_v12  ;;  %v2863_v38 = vld [vmem:[#allocation2 + $0x220] sm:$0xff]  ;;  %v2892_v30 = vld [vmem:[#allocation2 + $0x308] sm:$0xff] }
 0x312   :  { %2755 = vmatpush.msra.mxu2 %v2288_v39  ;;  %2687 = vmatpush.msrb.mxu3 %v2347_v4  ;;  %v2959_v62 = vld [vmem:[#allocation2 + $0x520] sm:$0xff]  ;;  %v2828_v39 = vld [vmem:[#allocation2 + $0x108] sm:$0xff] }
 0x313   :  { %2688 = vmatmul.f32.vlgmr.msrb.gmra.mxu3 %v7240_v54  ;;  %3070 = vmatpush.msrb.mxu0 %v2819_v5  ;;  %v2859_v4 = vld [vmem:[#allocation2 + $0x200] sm:$0xff]  ;;  %v2984_v5 = vld [vmem:[#allocation2 + $0x5e8] sm:$0xff] }
 0x314   :  { %2764 = vmatpush.msra.mxu3 %v2408_v3  ;;  %2756 = vmatpush.msra.mxu2 %v2284_v40  ;;  %v2955_v3 = vld [vmem:[#allocation2 + $0x500] sm:$0xff]  ;;  %v2824_v40 = vld [vmem:[#allocation2 + $0xe8] sm:$0xff] }
 0x315   :  { %2757 = vmatmul.f32.vlgmr.msra.gmra.mxu2 %v7087_v49  ;;  %v2384_v49 = vld [vmem:[%s7910_s7 + $0x738] sm:$0xff]  ;;  %3071 = vmatpush.msrb.mxu0 %v2815_v10  ;;  %v2931_v58 = vld [vmem:[#allocation2 + $0x440] sm:$0xff]  ;;  %v2884_v10 = vld [vmem:[#allocation2 + $0x2c8] sm:$0xff] }
 0x316   :  { %2765 = vmatpush.msra.mxu3 %v2404_v26  ;;  %3088 = vmatpush.msrb.mxu1 %v2903_v46  ;;  %v2920_v26 = vld [vmem:[#allocation2 + $0x3e8] sm:$0xff]  ;;  %v2927_v43 = vld [vmem:[#allocation2 + $0x420] sm:$0xff] }
 0x317   :  { %3072 = vmatpush.msrb.mxu0 %v2811_v25  ;;  %3107 = vmatpush.msrb.mxu2 %v2983_v20  ;;  %v2923_v63 = vld [vmem:[#allocation2 + $0x400] sm:$0xff]  ;;  %v2880_v12 = vld [vmem:[#allocation2 + $0x2a8] sm:$0xff] }
 0x318   :  { %2766 = vmatpush.msra.mxu3 %v2400_v41  ;;  %3089 = vmatpush.msrb.mxu1 %v2899_v32  ;;  %v2951_v41 = vld [vmem:[#allocation2 + $0x4e0] sm:$0xff]  ;;  %v2972_v32 = vld [vmem:[#allocation2 + $0x588] sm:$0xff] }
 0x319   :  { %3073 = vmatpush.msrb.mxu0 %v2807_v13  ;;  %3108 = vmatpush.msrb.mxu2 %v2979_v22  ;;  %v3039_v25 = vld [vmem:[#allocation2 + $0x7a0] sm:$0xff]  ;;  %v2976_v13 = vld [vmem:[#allocation2 + $0x5a8] sm:$0xff] }
 0x31a   :  { %2767 = vmatpush.msra.mxu3 %v2396_v42  ;;  %3090 = vmatpush.msrb.mxu1 %v2895_v16  ;;  %v2820_v42 = vld [vmem:[#allocation2 + $0xc8] sm:$0xff]  ;;  %v3035_v46 = vld [vmem:[#allocation2 + $0x780] sm:$0xff] }
 0x31b   :  { %2691 = vmatmul.f32.gmra.mxu3 %v7281_v45  ;;  %3074 = vmatpush.msrb.mxu0 %v2803_v14  ;;  %v2876_v14 = vld [vmem:[#allocation2 + $0x288] sm:$0xff]  ;;  %v7443_v22 = vld [vmem:[%s7911_s8] sm:$0xf] }
 0x31c   :  { %2768 = vmatpush.msra.mxu3 %v2392_v44  ;;  %3091 = vmatpush.msrb.mxu1 %v2891_v17  ;;  %v2916_v44 = vld [vmem:[#allocation2 + $0x3c8] sm:$0xff] }
 0x31d   :  { %2760 = vmatmul.f32.gmra.mxu2 %v7137_v6  ;;  %v2372_v6 = vld [vmem:[%s7910_s7 + $0x6d8] sm:$0xff]  ;;  %3075 = vmatpush.msrb.mxu0 %v2799_v15  ;;  %v3031_v15 = vld [vmem:[#allocation2 + $0x760] sm:$0xff]  ;;  %v2872_v16 = vld [vmem:[#allocation2 + $0x268] sm:$0xff] }
 0x31e   :  { %2769 = vmatpush.msra.mxu3 %v2388_v24  ;;  %3109 = vmatpush.msrb.mxu2 %v2975_v61  ;;  %v2947_v24 = vld [vmem:[#allocation2 + $0x4c0] sm:$0xff]  ;;  %v2868_v20 = vld [vmem:[#allocation2 + $0x248] sm:$0xff] }
 0x31f   :  { %3076 = vmatpush.msrb.mxu0 %v2795_v0  ;;  %v2968_v0 = vld [vmem:[#allocation2 + $0x568] sm:$0xff] }
 0x320   :  { %2770 = vmatpush.msra.mxu3 %v2384_v49  ;;  %3110 = vmatpush.msrb.mxu2 %v2971_v31  ;;  %v2943_v49 = vld [vmem:[#allocation2 + $0x4a0] sm:$0xff]  ;;  %v2960_v61 = vld [vmem:[#allocation2 + $0x528] sm:$0xff] }
 0x321   :  { %3153 = vmatpush.msra.mxu0 %v2856_v18  ;;  %v3027_v18 = vld [vmem:[#allocation2 + $0x740] sm:$0xff]  ;;  %v2956_v31 = vld [vmem:[#allocation2 + $0x508] sm:$0xff] }
 0x322   :  { %2771 = vmatpush.msra.mxu3 %v2380_v52  ;;  %3111 = vmatpush.msrb.mxu2 %v2967_v34  ;;  %v2908_v52 = vld [vmem:[#allocation2 + $0x388] sm:$0xff] }
 0x323   :  { %3154 = vmatpush.msra.mxu0 %v2852_v51  ;;  %v2964_v51 = vld [vmem:[#allocation2 + $0x548] sm:$0xff] }
 0x324   :  { %2772 = vmatpush.msra.mxu3 %v2376_v53  ;;  %3112 = vmatpush.msrb.mxu2 %v2963_v36  ;;  %v2939_v53 = vld [vmem:[#allocation2 + $0x480] sm:$0xff]  ;;  %v2952_v34 = vld [vmem:[#allocation2 + $0x4e8] sm:$0xff] }
 0x325   :  { %3155 = vmatpush.msra.mxu0 %v2848_v28  ;;  %v2948_v36 = vld [vmem:[#allocation2 + $0x4c8] sm:$0xff] }
 0x326   :  { %2773 = vmatpush.msra.mxu3 %v2372_v6  ;;  %3113 = vmatpush.msrb.mxu2 %v2959_v62  ;;  %v2935_v6 = vld [vmem:[#allocation2 + $0x460] sm:$0xff] }
 0x328   :  { %2774 = vmatpush.msra.mxu3 %v2368_v57  ;;  %3114 = vmatpush.msrb.mxu2 %v2955_v3  ;;  %v2900_v57 = vld [vmem:[#allocation2 + $0x348] sm:$0xff] }
 0x32a   :  { %2775 = vmatpush.msra.mxu3 %v2364_v59  ;;  %3115 = vmatpush.msrb.mxu2 %v2951_v41  ;;  %v2800_v59 = vld [vmem:[#allocation2 + $0x28] sm:$0xff]  ;;  %v2999_v41 = vld [vmem:[#allocation2 + $0x660] sm:$0xff] }
 0x32c   :  { %2776 = vmatpush.msra.mxu3 %v2360_v60  ;;  %3116 = vmatpush.msrb.mxu2 %v2947_v24  ;;  %v2896_v60 = vld [vmem:[#allocation2 + $0x328] sm:$0xff]  ;;  %v2995_v24 = vld [vmem:[#allocation2 + $0x640] sm:$0xff] }
 0x32e   :  { %2777 = vmatpush.msra.mxu3 %v2356_v1  ;;  %3117 = vmatpush.msrb.mxu2 %v2943_v49  ;;  %v3047_v1 = vld [vmem:[#allocation2 + $0x7e0] sm:$0xff]  ;;  %v2436_v17 = vpop.f32.mrf.mxu0  ;;  %v2932_v49 = vld [vmem:[#allocation2 + $0x448] sm:$0xff] }
 0x330   :  { %2778 = vmatpush.msra.mxu3 %v2352_v7  ;;  %3118 = vmatpush.msrb.mxu2 %v2939_v53  ;;  %v3043_v7 = vld [vmem:[#allocation2 + $0x7c0] sm:$0xff] }
 0x331   :  { %v2991_v53 = vld [vmem:[#allocation2 + $0x620] sm:$0xff] }
 0x332   :  { %2779 = vmatpush.msra.mxu3 %v2348_v11  ;;  %3119 = vmatpush.msrb.mxu2 %v2935_v6  ;;  %v2980_v11 = vld [vmem:[#allocation2 + $0x5c8] sm:$0xff] }
 0x333   :  { %2780 = vmatmul.f32.vlgmr.msra.gmra.mxu3 %v7240_v54  ;;  %v2887_v54 = vld [vmem:[#allocation2 + $0x2e0] sm:$0xff]  ;;  %v2928_v6 = vld [vmem:[#allocation2 + $0x428] sm:$0xff] }
 0x334   :  { %3092 = vmatpush.msrb.mxu1 %v2887_v54  ;;  %3120 = vmatpush.msrb.mxu2 %v2931_v58 }
 0x335   :  { %3130 = vmatpush.msrb.mxu3 %v3047_v1 }
 0x336   :  { %3093 = vmatpush.msrb.mxu1 %v2883_v21  ;;  %3121 = vmatpush.msrb.mxu2 %v2927_v43  ;;  %v3023_v21 = vld [vmem:[#allocation2 + $0x720] sm:$0xff]  ;;  %v3048_v43 = vld [vmem:[#allocation2 + $0x7e8] sm:$0xff] }
 0x337   :  { %3131 = vmatpush.msrb.mxu3 %v3043_v7  ;;  %v2845_v7 = vld [vmem:[#allocation2 + $0x190] sm:$0xff] }
 0x338   :  { %3094 = vmatpush.msrb.mxu1 %v2879_v23  ;;  %3122 = vmatpush.msrb.mxu2 %v2923_v63  ;;  %v2864_v23 = vld [vmem:[#allocation2 + $0x228] sm:$0xff] }
 0x339   :  { %3132 = vmatpush.msrb.mxu3 %v3039_v25 }
 0x33a   :  { %3095 = vmatpush.msrb.mxu1 %v2875_v29  ;;  %3199 = vmatpush.msra.mxu2 %v2984_v5  ;;  %v2860_v29 = vld [vmem:[#allocation2 + $0x208] sm:$0xff] }
 0x33b   :  { %2783 = vmatmul.f32.gmra.mxu3 %v7281_v45  ;;  %v2844_v45 = vld [vmem:[#allocation2 + $0x188] sm:$0xff] }
 0x33c   :  { %3156 = vmatpush.msra.mxu0 %v2844_v45  ;;  %3096 = vmatpush.msrb.mxu1 %v2871_v48  ;;  %v3019_v45 = vld [vmem:[#allocation2 + $0x700] sm:$0xff]  ;;  %v2411_v48 = vperm.slane %v7443_v22, 0 }
 0x33d   :  { %3200 = vmatpush.msra.mxu2 %v2980_v11  ;;  %3133 = vmatpush.msrb.mxu3 %v3035_v46  ;;  %v3040_v11 = vld [vmem:[#allocation2 + $0x7a8] sm:$0xff] }
 0x33e   :  { %3157 = vmatpush.msra.mxu0 %v2840_v33  ;;  %3097 = vmatpush.msrb.mxu1 %v2867_v35  ;;  %v3015_v33 = vld [vmem:[#allocation2 + $0x6e0] sm:$0xff]  ;;  %v2439_v35 = vpop.f32.mrf.mxu0  ;;  %v3036_v46 = vld [vmem:[#allocation2 + $0x788] sm:$0xff] }
 0x33f   :  { %3201 = vmatpush.msra.mxu2 %v2976_v13  ;;  %3134 = vmatpush.msrb.mxu3 %v3031_v15  ;;  %v2459_v54 = vpop.f32.mrf.mxu1  ;;  %v2841_v13 = vld [vmem:[#allocation2 + $0x170] sm:$0xff] }
 0x340   :  { %3158 = vmatpush.msra.mxu0 %v2836_v47  ;;  %3098 = vmatpush.msrb.mxu1 %v2863_v38  ;;  %v3011_v47 = vld [vmem:[#allocation2 + $0x6c0] sm:$0xff]  ;;  %v2837_v15 = vld [vmem:[#allocation2 + $0x150] sm:$0xff] }
 0x341   :  { %3202 = vmatpush.msra.mxu2 %v2972_v32  ;;  %3135 = vmatpush.msrb.mxu3 %v3027_v18  ;;  %v3007_v38 = vld [vmem:[#allocation2 + $0x6a0] sm:$0xff]  ;;  %v2833_v18 = vld [vmem:[#allocation2 + $0x130] sm:$0xff] }
 0x342   :  { %3159 = vmatpush.msra.mxu0 %v2832_v37  ;;  %3099 = vmatpush.msrb.mxu1 %v2859_v4  ;;  %v2437_v37 = vadd.f32 %v2436_v17, %v2411_v48  ;;  %v3003_v4 = vld [vmem:[#allocation2 + $0x680] sm:$0xff] }
 0x343   :  { %3203 = vmatpush.msra.mxu2 %v2968_v0  ;;  %3136 = vmatpush.msrb.mxu3 %v3023_v21 }
 0x344   :  { %3160 = vmatpush.msra.mxu0 %v2828_v39  ;;  %3176 = vmatpush.msra.mxu1 %v2920_v26  ;;  %v2944_v39 = vld [vmem:[#allocation2 + $0x4a8] sm:$0xff]  ;;  %v2460_v3 = vadd.f32 %v2459_v54, %v2437_v37 }
 0x345   :  { %3204 = vmatpush.msra.mxu2 %v2964_v51  ;;  %3137 = vmatpush.msrb.mxu3 %v3019_v45 }
 0x346   :  { %3161 = vmatpush.msra.mxu0 %v2824_v40  ;;  %3177 = vmatpush.msra.mxu1 %v2916_v44  ;;  %v2940_v40 = vld [vmem:[#allocation2 + $0x488] sm:$0xff] }
 0x347   :  { %3205 = vmatpush.msra.mxu2 %v2960_v61  ;;  %3138 = vmatpush.msrb.mxu3 %v3015_v33  ;;  %v2462_v62 = vpop.f32.mrf.mxu1  ;;  %v2936_v44 = vld [vmem:[#allocation2 + $0x468] sm:$0xff] }
 0x348   :  { %3162 = vmatpush.msra.mxu0 %v2820_v42  ;;  %3178 = vmatpush.msra.mxu1 %v2912_v50  ;;  %v3020_v33 = vld [vmem:[#allocation2 + $0x708] sm:$0xff] }
 0x349   :  { %3206 = vmatpush.msra.mxu2 %v2956_v31  ;;  %3139 = vmatpush.msrb.mxu3 %v3011_v47  ;;  %v2921_v31 = vld [vmem:[#allocation2 + $0x3f0] sm:$0xff] }
 0x34a   :  { %3163 = vmatpush.msra.mxu0 %v2816_v19  ;;  %3179 = vmatpush.msra.mxu1 %v2908_v52  ;;  %v2857_v52 = vld [vmem:[#allocation2 + $0x1f0] sm:$0xff] }
 0x34b   :  { %3207 = vmatpush.msra.mxu2 %v2952_v34  ;;  %3140 = vmatpush.msrb.mxu3 %v3007_v38  ;;  %v2821_v34 = vld [vmem:[#allocation2 + $0xd0] sm:$0xff] }
 0x34c   :  { %3164 = vmatpush.msra.mxu0 %v2812_v8  ;;  %3180 = vmatpush.msra.mxu1 %v2904_v27  ;;  %v2528_v27 = vpop.f32.mrf.mxu0  ;;  %v2917_v47 = vld [vmem:[#allocation2 + $0x3d0] sm:$0xff] }
 0x34d   :  { %3208 = vmatpush.msra.mxu2 %v2948_v36  ;;  %3141 = vmatpush.msrb.mxu3 %v3003_v4  ;;  %v2817_v38 = vld [vmem:[#allocation2 + $0xb0] sm:$0xff] }
 0x34e   :  { %3165 = vmatpush.msra.mxu0 %v2808_v55  ;;  %3181 = vmatpush.msra.mxu1 %v2900_v57  ;;  %v2440_v55 = vadd.f32 %v2439_v35, %v2411_v48  ;;  %v2987_v57 = vld [vmem:[#allocation2 + $0x600] sm:$0xff]  ;;  %v3016_v35 = vld [vmem:[#allocation2 + $0x6e8] sm:$0xff] }
 0x34f   :  { %3209 = vmatpush.msra.mxu2 %v2944_v39  ;;  %3142 = vmatpush.msrb.mxu3 %v2999_v41  ;;  %v2413_v39 = vperm.slane %v7443_v22, 2  ;;  %v2909_v41 = vld [vmem:[#allocation2 + $0x390] sm:$0xff] }
 0x350   :  { %3166 = vmatpush.msra.mxu0 %v2804_v56  ;;  %3182 = vmatpush.msra.mxu1 %v2896_v60  ;;  %v2853_v56 = vld [vmem:[#allocation2 + $0x1d0] sm:$0xff]  ;;  %v2463_v58 = vadd.f32 %v2462_v62, %v2440_v55  ;;  %v2924_v60 = vld [vmem:[#allocation2 + $0x408] sm:$0xff] }
 0x351   :  { %3210 = vmatpush.msra.mxu2 %v2940_v40  ;;  %3143 = vmatpush.msrb.mxu3 %v2995_v24  ;;  %v2913_v62 = vld [vmem:[#allocation2 + $0x3b0] sm:$0xff] }
 0x352   :  { %3167 = vmatpush.msra.mxu0 %v2800_v59  ;;  %3183 = vmatpush.msra.mxu1 %v2892_v30  ;;  %v2551_v59 = vpop.f32.mrf.mxu1  ;;  %v2412_v30 = vperm.slane %v7443_v22, 1  ;;  %v2901_v55 = vld [vmem:[#allocation2 + $0x350] sm:$0xff] }
 0x353   :  { %3211 = vmatpush.msra.mxu2 %v2936_v44  ;;  %3144 = vmatpush.msrb.mxu3 %v2991_v53  ;;  %v2805_v53 = vld [vmem:[#allocation2 + $0x50] sm:$0xff] }
 0x354   :  { %3168 = vmatpush.msra.mxu0 %v2796_v9  ;;  %3184 = vmatpush.msra.mxu1 %v2888_v2  ;;  %v2849_v9 = vld [vmem:[#allocation2 + $0x1b0] sm:$0xff]  ;;  %v3044_v2 = vld [vmem:[#allocation2 + $0x7c8] sm:$0xff]  ;;  %v2529_v25 = vadd.f32 %v2528_v27, %v2412_v30 }
 0x355   :  { %v2482_v28 = vpop.f32.mrf.mxu2  ;;  %3212 = vmatpush.msra.mxu2 %v2932_v49  ;;  %3145 = vmatpush.msrb.mxu3 %v2987_v57  ;;  %v2897_v57 = vld [vmem:[#allocation2 + $0x330] sm:$0xff] }
 0x356   :  { %3185 = vmatpush.msra.mxu1 %v2884_v10  ;;  %v2483_v42 = vadd.f32 %v2482_v28, %v2460_v3  ;;  %v2552_v32 = vadd.f32 %v2551_v59, %v2529_v25  ;;  %v2829_v28 = vld [vmem:[#allocation2 + $0x110] sm:$0xff]  ;;  %v3000_v59 = vld [vmem:[#allocation2 + $0x668] sm:$0xff] }
 0x357   :  { %3213 = vmatpush.msra.mxu2 %v2928_v6  ;;  %3222 = vmatpush.msra.mxu3 %v3048_v43  ;;  %v3004_v6 = vld [vmem:[#allocation2 + $0x688] sm:$0xff] }
 0x358   :  { %3186 = vmatpush.msra.mxu1 %v2880_v12 }
 0x359   :  { %3214 = vmatpush.msra.mxu2 %v2924_v60  ;;  %3223 = vmatpush.msra.mxu3 %v3044_v2 }
 0x35a   :  { %3187 = vmatpush.msra.mxu1 %v2876_v14  ;;  %v2531_v14 = vpop.f32.mrf.mxu0  ;;  %v2554_v0 = vpop.f32.mrf.mxu1 }
 0x35b   :  { %3224 = vmatpush.msra.mxu3 %v3040_v11  ;;  %v2532_v61 = vadd.f32 %v2531_v14, %v2412_v30  ;;  %v2893_v30 = vld [vmem:[#allocation2 + $0x310] sm:$0xff] }
 0x35c   :  { %3188 = vmatpush.msra.mxu1 %v2872_v16  ;;  %v3032_v16 = vld [vmem:[#allocation2 + $0x768] sm:$0xff]  ;;  %v2985_v11 = vld [vmem:[#allocation2 + $0x5f0] sm:$0xff] }
 0x35d   :  { %3225 = vmatpush.msra.mxu3 %v3036_v46  ;;  %v2555_v48 = vadd.f32 %v2554_v0, %v2532_v61  ;;  %v2996_v46 = vld [vmem:[#allocation2 + $0x648] sm:$0xff]  ;;  %v2973_v61 = vld [vmem:[#allocation2 + $0x590] sm:$0xff] }
 0x35e   :  { %3189 = vmatpush.msra.mxu1 %v2868_v20  ;;  %v2485_v26 = vpop.f32.mrf.mxu2  ;;  %v3028_v20 = vld [vmem:[#allocation2 + $0x748] sm:$0xff] }
 0x35f   :  { %v2486_v63 = vadd.f32 %v2485_v26, %v2463_v58  ;;  %3226 = vmatpush.msra.mxu3 %v3032_v16  ;;  %v2813_v26 = vld [vmem:[#allocation2 + $0x90] sm:$0xff]  ;;  %v2850_v16 = vld [vmem:[#allocation2 + $0x1b8] sm:$0xff]  ;;  %v2992_v0 = vld [vmem:[#allocation2 + $0x628] sm:$0xff] }
 0x360   :  { %3190 = vmatpush.msra.mxu1 %v2864_v23  ;;  %v3024_v23 = vld [vmem:[#allocation2 + $0x728] sm:$0xff] }
 0x361   :  { %3227 = vmatpush.msra.mxu3 %v3028_v20 }
 0x362   :  { %3191 = vmatpush.msra.mxu1 %v2860_v29  ;;  %v2825_v29 = vld [vmem:[#allocation2 + $0xf0] sm:$0xff]  ;;  %v2620_v36 = vpop.f32.mrf.mxu0  ;;  %v2643_v3 = vpop.f32.mrf.mxu1 }
 0x363   :  { %3228 = vmatpush.msra.mxu3 %v3024_v23  ;;  %v2621_v49 = vadd.f32 %v2620_v36, %v2413_v39  ;;  %v2877_v23 = vld [vmem:[#allocation2 + $0x290] sm:$0xff]  ;;  %v2834_v36 = vld [vmem:[#allocation2 + $0x138] sm:$0xff] }
 0x365   :  { %3229 = vmatpush.msra.mxu3 %v3020_v33  ;;  %v2644_v27 = vadd.f32 %v2643_v3, %v2621_v49  ;;  %v2873_v33 = vld [vmem:[#allocation2 + $0x270] sm:$0xff]  ;;  %v2826_v3 = vld [vmem:[#allocation2 + $0xf8] sm:$0xff] }
 0x366   :  { %v2949_v49 = vld [vmem:[#allocation2 + $0x4d0] sm:$0xff] }
 0x367   :  { %v2574_v1 = vpop.f32.mrf.mxu2  ;;  %3230 = vmatpush.msra.mxu3 %v3016_v35  ;;  %v2965_v35 = vld [vmem:[#allocation2 + $0x550] sm:$0xff] }
 0x368   :  { %v2575_v17 = vadd.f32 %v2574_v1, %v2552_v32  ;;  %v2858_v1 = vld [vmem:[#allocation2 + $0x1f8] sm:$0xff]  ;;  %v2885_v32 = vld [vmem:[#allocation2 + $0x2d0] sm:$0xff] }
 0x36a   :  { %v2623_v60 = vpop.f32.mrf.mxu0  ;;  %v2646_v2 = vpop.f32.mrf.mxu1 }
 0x370   :  { %v2577_v51 = vpop.f32.mrf.mxu2 }
 0x371   :  { %v2578_v37 = vadd.f32 %v2577_v51, %v2555_v48  ;;  %v2846_v51 = vld [vmem:[#allocation2 + $0x198] sm:$0xff]  ;;  %v2969_v48 = vld [vmem:[#allocation2 + $0x570] sm:$0xff] }
 0x375   :  { %v2505_v19 = vpop.f32.mrf.mxu3 }
 0x376   :  { %v2506_v50 = vadd.f32 %v2505_v19, %v2483_v42  ;;  %v3012_v42 = vld [vmem:[#allocation2 + $0x6c8] sm:$0xff]  ;;  %v2809_v19 = vld [vmem:[#allocation2 + $0x70] sm:$0xff] }
 0x377   :  { %3231 = vmatpush.msra.mxu3 %v3012_v42  ;;  %v2953_v42 = vld [vmem:[#allocation2 + $0x4f0] sm:$0xff] }
 0x378   :  { %v7446_v8 = vmax.f32 %v2506_v50, 0.0  ;;  %v2905_v50 = vld [vmem:[#allocation2 + $0x370] sm:$0xff] }
 0x37a   :  { %3077 = vmatmul.f32.vlgmr.msrb.gmra.mxu0 %v7446_v8  ;;  %v2666_v44 = vpop.f32.mrf.mxu2 }
 0x37b   :  { %3245 = vmatpush.msrb.mxu0 %v2857_v52  ;;  %v3008_v52 = vld [vmem:[#allocation2 + $0x6a8] sm:$0xff]  ;;  %v2667_v58 = vadd.f32 %v2666_v44, %v2644_v27  ;;  %v2822_v44 = vld [vmem:[#allocation2 + $0xd8] sm:$0xff] }
 0x37c   :  { %3232 = vmatpush.msra.mxu3 %v3008_v52  ;;  %v2818_v52 = vld [vmem:[#allocation2 + $0xb8] sm:$0xff] }
 0x37d   :  { %3246 = vmatpush.msrb.mxu0 %v2853_v56  ;;  %v2801_v56 = vld [vmem:[#allocation2 + $0x30] sm:$0xff] }
 0x37e   :  { %v2508_v5 = vpop.f32.mrf.mxu3  ;;  %3233 = vmatpush.msra.mxu3 %v3004_v6  ;;  %v2814_v6 = vld [vmem:[#allocation2 + $0x98] sm:$0xff] }
 0x37f   :  { %v2509_v10 = vadd.f32 %v2508_v5, %v2486_v63  ;;  %3247 = vmatpush.msrb.mxu0 %v2849_v9  ;;  %v2797_v9 = vld [vmem:[#allocation2 + $0x10] sm:$0xff]  ;;  %v2624_v5 = vadd.f32 %v2623_v60, %v2413_v39  ;;  %v2906_v60 = vld [vmem:[#allocation2 + $0x378] sm:$0xff] }
 0x380   :  { %3234 = vmatpush.msra.mxu3 %v3000_v59  ;;  %v2861_v39 = vld [vmem:[#allocation2 + $0x210] sm:$0xff]  ;;  %v2810_v59 = vld [vmem:[#allocation2 + $0x78] sm:$0xff] }
 0x381   :  { %v7450_v12 = vmax.f32 %v2509_v10, 0.0  ;;  %3248 = vmatpush.msrb.mxu0 %v2845_v7  ;;  %v2889_v10 = vld [vmem:[#allocation2 + $0x2f0] sm:$0xff]  ;;  %v2647_v14 = vadd.f32 %v2646_v2, %v2624_v5  ;;  %v2902_v2 = vld [vmem:[#allocation2 + $0x358] sm:$0xff] }
 0x382   :  { %v2669_v25 = vpop.f32.mrf.mxu2  ;;  %3235 = vmatpush.msra.mxu3 %v2996_v46 }
 0x383   :  { %3080 = vmatmul.f32.gmra.mxu0 %v7450_v12 }
 0x384   :  { %3249 = vmatpush.msrb.mxu0 %v2841_v13  ;;  %v2854_v13 = vld [vmem:[#allocation2 + $0x1d8] sm:$0xff]  ;;  %3236 = vmatpush.msra.mxu3 %v2992_v0 }
 0x385   :  { %v2894_v0 = vld [vmem:[#allocation2 + $0x318] sm:$0xff] }
 0x386   :  { %3250 = vmatpush.msrb.mxu0 %v2837_v15  ;;  %v2597_v54 = vpop.f32.mrf.mxu3  ;;  %v2981_v15 = vld [vmem:[#allocation2 + $0x5d0] sm:$0xff] }
 0x387   :  { %v2598_v21 = vadd.f32 %v2597_v54, %v2575_v17  ;;  %v2670_v17 = vadd.f32 %v2669_v25, %v2647_v14  ;;  %v2977_v54 = vld [vmem:[#allocation2 + $0x5b0] sm:$0xff]  ;;  %v2802_v25 = vld [vmem:[#allocation2 + $0x38] sm:$0xff] }
 0x388   :  { %3251 = vmatpush.msrb.mxu0 %v2833_v18  ;;  %v2881_v18 = vld [vmem:[#allocation2 + $0x2b0] sm:$0xff] }
 0x389   :  { %v7453_v45 = vmax.f32 %v2598_v21, 0.0  ;;  %v2988_v21 = vld [vmem:[#allocation2 + $0x608] sm:$0xff] }
 0x38a   :  { %3252 = vmatpush.msrb.mxu0 %v2829_v28  ;;  %3237 = vmatpush.msra.mxu3 %v2988_v21  ;;  %v2986_v21 = vld [vmem:[#allocation2 + $0x5f8] sm:$0xff] }
 0x38b   :  { %3100 = vmatmul.f32.vlgmr.msrb.gmra.mxu1 %v7453_v45  ;;  %3169 = vmatmul.f32.vlgmr.msra.gmra.mxu0 %v7446_v8 }
 0x38c   :  { %3253 = vmatpush.msrb.mxu0 %v2825_v29  ;;  %3268 = vmatpush.msrb.mxu1 %v2921_v31  ;;  %v2842_v29 = vld [vmem:[#allocation2 + $0x178] sm:$0xff] }
 0x38e   :  { %3254 = vmatpush.msrb.mxu0 %v2821_v34  ;;  %3269 = vmatpush.msrb.mxu1 %v2917_v47  ;;  %v2600_v4 = vpop.f32.mrf.mxu3  ;;  %v2838_v34 = vld [vmem:[#allocation2 + $0x158] sm:$0xff]  ;;  %v2869_v47 = vld [vmem:[#allocation2 + $0x250] sm:$0xff] }
 0x38f   :  { %v2601_v40 = vadd.f32 %v2600_v4, %v2578_v37  ;;  %v2865_v37 = vld [vmem:[#allocation2 + $0x230] sm:$0xff] }
 0x390   :  { %3255 = vmatpush.msrb.mxu0 %v2817_v38  ;;  %3270 = vmatpush.msrb.mxu1 %v2913_v62  ;;  %v2961_v38 = vld [vmem:[#allocation2 + $0x530] sm:$0xff]  ;;  %v2830_v62 = vld [vmem:[#allocation2 + $0x118] sm:$0xff] }
 0x391   :  { %v7458_v24 = vmax.f32 %v2601_v40, 0.0  ;;  %v2957_v4 = vld [vmem:[#allocation2 + $0x510] sm:$0xff]  ;;  %v2922_v40 = vld [vmem:[#allocation2 + $0x3f8] sm:$0xff] }
 0x392   :  { %3256 = vmatpush.msrb.mxu0 %v2813_v26  ;;  %3271 = vmatpush.msrb.mxu1 %v2909_v41  ;;  %v2712_v26 = vpop.f32.mrf.mxu0  ;;  %v2414_v41 = vperm.slane %v7443_v22, 3  ;;  %v2945_v22 = vld [vmem:[#allocation2 + $0x4b0] sm:$0xff] }
 0x393   :  { %3103 = vmatmul.f32.gmra.mxu1 %v7458_v24  ;;  %3172 = vmatmul.f32.gmra.mxu0 %v7450_v12 }
 0x394   :  { %3257 = vmatpush.msrb.mxu0 %v2809_v19  ;;  %3272 = vmatpush.msrb.mxu1 %v2905_v50  ;;  %v2735_v19 = vpop.f32.mrf.mxu1  ;;  %v2918_v50 = vld [vmem:[#allocation2 + $0x3d8] sm:$0xff]  ;;  %v2713_v27 = vadd.f32 %v2712_v26, %v2414_v41  ;;  %v3025_v26 = vld [vmem:[#allocation2 + $0x730] sm:$0xff] }
 0x396   :  { %3258 = vmatpush.msrb.mxu0 %v2805_v53  ;;  %3273 = vmatpush.msrb.mxu1 %v2901_v55  ;;  %v2689_v43 = vpop.f32.mrf.mxu3  ;;  %v2914_v55 = vld [vmem:[#allocation2 + $0x3b8] sm:$0xff] }
 0x397   :  { %v2690_v63 = vadd.f32 %v2689_v43, %v2667_v58  ;;  %v2941_v58 = vld [vmem:[#allocation2 + $0x490] sm:$0xff] }
 0x398   :  { %3259 = vmatpush.msrb.mxu0 %v2801_v56  ;;  %3274 = vmatpush.msrb.mxu1 %v2897_v57  ;;  %v2758_v53 = vpop.f32.mrf.mxu2  ;;  %v2910_v56 = vld [vmem:[#allocation2 + $0x398] sm:$0xff]  ;;  %v2736_v57 = vadd.f32 %v2735_v19, %v2713_v27 }
 0x399   :  { %v7462_v7 = vmax.f32 %v2690_v63, 0.0  ;;  %v2862_v19 = vld [vmem:[#allocation2 + $0x218] sm:$0xff] }
 0x39a   :  { %3260 = vmatpush.msrb.mxu0 %v2797_v9  ;;  %3275 = vmatpush.msrb.mxu1 %v2893_v30  ;;  %v2759_v43 = vadd.f32 %v2758_v53, %v2736_v57  ;;  %v2937_v9 = vld [vmem:[#allocation2 + $0x470] sm:$0xff]  ;;  %v2715_v30 = vpop.f32.mrf.mxu0  ;;  %v2950_v53 = vld [vmem:[#allocation2 + $0x4d8] sm:$0xff] }
 0x39b   :  { %3192 = vmatmul.f32.vlgmr.msra.gmra.mxu1 %v7453_v45  ;;  %3123 = vmatmul.f32.vlgmr.msrb.gmra.mxu2 %v7462_v7  ;;  %v2716_v46 = vadd.f32 %v2715_v30, %v2414_v41  ;;  %v2866_v41 = vld [vmem:[#allocation2 + $0x238] sm:$0xff] }
 0x39c   :  { %3337 = vmatpush.msra.mxu0 %v2858_v1  ;;  %3276 = vmatpush.msrb.mxu1 %v2889_v10  ;;  %v2806_v1 = vld [vmem:[#allocation2 + $0x58] sm:$0xff]  ;;  %v2933_v10 = vld [vmem:[#allocation2 + $0x450] sm:$0xff] }
 0x39d   :  { %3261 = vmatmul.f32.vlgmr.msrb.gmra.mxu0 %v7446_v8  ;;  %3291 = vmatpush.msrb.mxu2 %v2985_v11  ;;  %v2738_v11 = vpop.f32.mrf.mxu1  ;;  %v2946_v27 = vld [vmem:[#allocation2 + $0x4b8] sm:$0xff] }
 0x39e   :  { %3338 = vmatpush.msra.mxu0 %v2854_v13  ;;  %3277 = vmatpush.msrb.mxu1 %v2885_v32  ;;  %v2692_v20 = vpop.f32.mrf.mxu3  ;;  %v2898_v13 = vld [vmem:[#allocation2 + $0x338] sm:$0xff]  ;;  %v2929_v32 = vld [vmem:[#allocation2 + $0x430] sm:$0xff] }
 0x39f   :  { %3292 = vmatpush.msrb.mxu2 %v2981_v15  ;;  %v2693_v28 = vadd.f32 %v2692_v20, %v2670_v17  ;;  %v2739_v17 = vadd.f32 %v2738_v11, %v2716_v46  ;;  %v2890_v20 = vld [vmem:[#allocation2 + $0x2f8] sm:$0xff] }
 0x3a0   :  { %3339 = vmatpush.msra.mxu0 %v2850_v16  ;;  %3278 = vmatpush.msrb.mxu1 %v2881_v18  ;;  %v2761_v15 = vpop.f32.mrf.mxu2  ;;  %v2798_v16 = vld [vmem:[#allocation2 + $0x18] sm:$0xff]  ;;  %v2925_v18 = vld [vmem:[#allocation2 + $0x410] sm:$0xff] }
 0x3a1   :  { %3293 = vmatpush.msrb.mxu2 %v2977_v54  ;;  %v7467_v31 = vmax.f32 %v2693_v28, 0.0  ;;  %v3049_v54 = vld [vmem:[#allocation2 + $0x7f0] sm:$0xff]  ;;  %v2938_v57 = vld [vmem:[#allocation2 + $0x478] sm:$0xff] }
 0x3a2   :  { %3340 = vmatpush.msra.mxu0 %v2846_v51  ;;  %3279 = vmatpush.msrb.mxu1 %v2877_v23  ;;  %v2762_v51 = vadd.f32 %v2761_v15, %v2739_v17  ;;  %v3045_v28 = vld [vmem:[#allocation2 + $0x7d0] sm:$0xff]  ;;  %v2926_v30 = vld [vmem:[#allocation2 + $0x418] sm:$0xff] }
 0x3a3   :  { %3294 = vmatpush.msrb.mxu2 %v2973_v61  ;;  %3195 = vmatmul.f32.gmra.mxu1 %v7458_v24  ;;  %v2886_v61 = vld [vmem:[#allocation2 + $0x2d8] sm:$0xff]  ;;  %v3467_v15 = vld [vmem:[%s7914_s11 + $0xf0] sm:$0xff] }
 0x3a4   :  { %3341 = vmatpush.msra.mxu0 %v2842_v29  ;;  %3126 = vmatmul.f32.gmra.mxu2 %v7467_v31  ;;  %v3022_v11 = vld [vmem:[#allocation2 + $0x718] sm:$0xff] }
 0x3a5   :  { %3264 = vmatmul.f32.gmra.mxu0 %v7450_v12  ;;  %3280 = vmatpush.msrb.mxu1 %v2873_v33  ;;  %v2982_v33 = vld [vmem:[#allocation2 + $0x5d8] sm:$0xff] }
 0x3a6   :  { %3295 = vmatpush.msrb.mxu2 %v2969_v48  ;;  %3342 = vmatpush.msra.mxu0 %v2838_v34  ;;  %v3041_v48 = vld [vmem:[#allocation2 + $0x7b0] sm:$0xff]  ;;  %v2882_v34 = vld [vmem:[#allocation2 + $0x2b8] sm:$0xff] }
 0x3a7   :  { %3281 = vmatpush.msrb.mxu1 %v2869_v47  ;;  %v3006_v46 = vld [vmem:[#allocation2 + $0x698] sm:$0xff] }
 0x3a8   :  { %3296 = vmatpush.msrb.mxu2 %v2965_v35  ;;  %3343 = vmatpush.msra.mxu0 %v2834_v36  ;;  %v2978_v35 = vld [vmem:[#allocation2 + $0x5b8] sm:$0xff]  ;;  %v3037_v36 = vld [vmem:[#allocation2 + $0x790] sm:$0xff] }
 0x3a9   :  { %3282 = vmatpush.msrb.mxu1 %v2865_v37  ;;  %v2878_v37 = vld [vmem:[#allocation2 + $0x298] sm:$0xff] }
 0x3aa   :  { %3297 = vmatpush.msrb.mxu2 %v2961_v38  ;;  %3344 = vmatpush.msra.mxu0 %v2830_v62  ;;  %v2974_v38 = vld [vmem:[#allocation2 + $0x598] sm:$0xff] }
 0x3ab   :  { %3283 = vmatpush.msrb.mxu1 %v2861_v39  ;;  %v2874_v62 = vld [vmem:[#allocation2 + $0x278] sm:$0xff] }
 0x3ac   :  { %3298 = vmatpush.msrb.mxu2 %v2957_v4  ;;  %3345 = vmatpush.msra.mxu0 %v2826_v3  ;;  %v2970_v39 = vld [vmem:[#allocation2 + $0x578] sm:$0xff]  ;;  %v3029_v4 = vld [vmem:[#allocation2 + $0x750] sm:$0xff] }
 0x3ad   :  { %3360 = vmatpush.msra.mxu1 %v2922_v40  ;;  %3215 = vmatmul.f32.vlgmr.msra.gmra.mxu2 %v7462_v7  ;;  %v2870_v3 = vld [vmem:[#allocation2 + $0x258] sm:$0xff] }
 0x3ae   :  { %3284 = vmatmul.f32.vlgmr.msrb.gmra.mxu1 %v7453_v45  ;;  %3299 = vmatpush.msrb.mxu2 %v2953_v42  ;;  %v2966_v40 = vld [vmem:[#allocation2 + $0x558] sm:$0xff] }
 0x3af   :  { %3346 = vmatpush.msra.mxu0 %v2822_v44  ;;  %3361 = vmatpush.msra.mxu1 %v2918_v50  ;;  %v2962_v42 = vld [vmem:[#allocation2 + $0x538] sm:$0xff]  ;;  %v3021_v44 = vld [vmem:[#allocation2 + $0x710] sm:$0xff] }
 0x3b0   :  { %3300 = vmatpush.msrb.mxu2 %v2949_v49  ;;  %v2958_v50 = vld [vmem:[#allocation2 + $0x518] sm:$0xff]  ;;  %v3017_v49 = vld [vmem:[#allocation2 + $0x6f0] sm:$0xff] }
 0x3b1   :  { %3347 = vmatpush.msra.mxu0 %v2818_v52  ;;  %3362 = vmatpush.msra.mxu1 %v2914_v55  ;;  %v3013_v52 = vld [vmem:[#allocation2 + $0x6d0] sm:$0xff]  ;;  %v2994_v17 = vld [vmem:[#allocation2 + $0x638] sm:$0xff] }
 0x3b2   :  { %3301 = vmatpush.msrb.mxu2 %v2945_v22  ;;  %v3009_v55 = vld [vmem:[#allocation2 + $0x6b0] sm:$0xff] }
 0x3b3   :  { %3348 = vmatpush.msra.mxu0 %v2814_v6  ;;  %3363 = vmatpush.msra.mxu1 %v2910_v56  ;;  %v3005_v22 = vld [vmem:[#allocation2 + $0x690] sm:$0xff]  ;;  %v2942_v6 = vld [vmem:[#allocation2 + $0x498] sm:$0xff] }
 0x3b4   :  { %3302 = vmatpush.msrb.mxu2 %v2941_v58  ;;  %v3001_v56 = vld [vmem:[#allocation2 + $0x670] sm:$0xff] }
 0x3b5   :  { %3349 = vmatpush.msra.mxu0 %v2810_v59  ;;  %3364 = vmatpush.msra.mxu1 %v2906_v60  ;;  %v2997_v58 = vld [vmem:[#allocation2 + $0x650] sm:$0xff]  ;;  %v2930_v60 = vld [vmem:[#allocation2 + $0x438] sm:$0xff] }
 0x3b6   :  { %v2781_v63 = vpop.f32.mrf.mxu3  ;;  %3218 = vmatmul.f32.gmra.mxu2 %v7467_v31  ;;  %3287 = vmatmul.f32.gmra.mxu1 %v7458_v24  ;;  %v2993_v59 = vld [vmem:[#allocation2 + $0x630] sm:$0xff] }
 0x3b7   :  { %v2782_v5 = vadd.f32 %v2781_v63, %v2759_v43  ;;  %3303 = vmatpush.msrb.mxu2 %v2937_v9  ;;  %3350 = vmatpush.msra.mxu0 %v2806_v1  ;;  %v2989_v43 = vld [vmem:[#allocation2 + $0x610] sm:$0xff]  ;;  %v3050_v9 = vld [vmem:[#allocation2 + $0x7f8] sm:$0xff] }
 0x3b8   :  { %3365 = vmatpush.msra.mxu1 %v2902_v2  ;;  %v3046_v63 = vld [vmem:[#allocation2 + $0x7d8] sm:$0xff] }
 0x3b9   :  { %v7477_v14 = vmax.f32 %v2782_v5, 0.0  ;;  %3304 = vmatpush.msrb.mxu2 %v2933_v10  ;;  %3351 = vmatpush.msra.mxu0 %v2802_v25  ;;  %v3042_v1 = vld [vmem:[#allocation2 + $0x7b8] sm:$0xff] }
 0x3ba   :  { %3366 = vmatpush.msra.mxu1 %v2898_v13  ;;  %v3034_v2 = vld [vmem:[#allocation2 + $0x778] sm:$0xff] }
 0x3bb   :  { %3305 = vmatpush.msrb.mxu2 %v2929_v32  ;;  %3146 = vmatmul.f32.vlgmr.msrb.gmra.mxu3 %v7477_v14  ;;  %v3030_v5 = vld [vmem:[#allocation2 + $0x758] sm:$0xff] }
 0x3bc   :  { %3352 = vmatpush.msra.mxu0 %v2798_v16  ;;  %3367 = vmatpush.msra.mxu1 %v2894_v0  ;;  %v3026_v10 = vld [vmem:[#allocation2 + $0x738] sm:$0xff]  ;;  %v3463_v0 = vld [vmem:[%s7914_s11 + $0xd0] sm:$0xff] }
 0x3bd   :  { %3306 = vmatpush.msrb.mxu2 %v2925_v18  ;;  %3314 = vmatpush.msrb.mxu3 %v3049_v54  ;;  %v3018_v25 = vld [vmem:[#allocation2 + $0x6f8] sm:$0xff]  ;;  %v3461_v54 = vld [vmem:[%s7914_s11 + $0xc0] sm:$0xff] }
 0x3be   :  { %v2784_v23 = vpop.f32.mrf.mxu3  ;;  %3353 = vmatmul.f32.vlgmr.msra.gmra.mxu0 %v7446_v8  ;;  %3368 = vmatpush.msra.mxu1 %v2890_v20  ;;  %v3033_v8 = vld [vmem:[#allocation2 + $0x770] sm:$0xff]  ;;  %v3014_v13 = vld [vmem:[#allocation2 + $0x6d8] sm:$0xff] }
 0x3bf   :  { %v2785_v29 = vadd.f32 %v2784_v23, %v2762_v51  ;;  %3383 = vmatpush.msra.mxu2 %v2986_v21  ;;  %3315 = vmatpush.msrb.mxu3 %v3045_v28  ;;  %v3002_v32 = vld [vmem:[#allocation2 + $0x678] sm:$0xff]  ;;  %v3459_v20 = vld [vmem:[%s7914_s11 + $0xb0] sm:$0xff]  ;;  %v3457_v51 = vld [vmem:[%s7914_s11 + $0xa0] sm:$0xff] }
 0x3c0   :  { %3307 = vmatmul.f32.vlgmr.msrb.gmra.mxu2 %v7462_v7  ;;  %3369 = vmatpush.msra.mxu1 %v2886_v61  ;;  %v2998_v16 = vld [vmem:[#allocation2 + $0x658] sm:$0xff]  ;;  %v3455_v21 = vld [vmem:[%s7914_s11 + $0x90] sm:$0xff]  ;;  %v3453_v28 = vld [vmem:[%s7914_s11 + $0x80] sm:$0xff] }
 0x3c1   :  { %v7482_v47 = vmax.f32 %v2785_v29, 0.0  ;;  %3384 = vmatpush.msra.mxu2 %v2982_v33  ;;  %3316 = vmatpush.msrb.mxu3 %v3041_v48  ;;  %v2990_v18 = vld [vmem:[#allocation2 + $0x618] sm:$0xff]  ;;  %v3499_v23 = vld [vmem:[%s7914_s11 + $0x1f0] sm:$0xff]  ;;  %v3497_v61 = vld [vmem:[%s7914_s11 + $0x1e0] sm:$0xff] }
 0x3c2   :  { %3370 = vmatpush.msra.mxu1 %v2882_v34  ;;  %3571 = vmatpush.msrb.mxu0 %v3467_v15  ;;  %v3449_v29 = vld [vmem:[%s7914_s11 + $0x60] sm:$0xff]  ;;  %v3447_v33 = vld [vmem:[%s7914_s11 + $0x50] sm:$0xff]  ;;  %v3492_v15 = vld [vmem:[%s7914_s11 + $0x1b8] sm:$0xff] }
 0x3c3   :  { %3385 = vmatpush.msra.mxu2 %v2978_v35  ;;  %3317 = vmatpush.msrb.mxu3 %v3037_v36  ;;  %v3495_v48 = vld [vmem:[%s7914_s11 + $0x1d0] sm:$0xff]  ;;  %v3445_v34 = vld [vmem:[%s7914_s11 + $0x40] sm:$0xff] }
 0x3c4   :  { %3371 = vmatpush.msra.mxu1 %v2878_v37  ;;  %3149 = vmatmul.f32.gmra.mxu3 %v7482_v47  ;;  %v3443_v35 = vld [vmem:[%s7914_s11 + $0x30] sm:$0xff]  ;;  %v3441_v37 = vld [vmem:[%s7914_s11 + $0x20] sm:$0xff] }
 0x3c5   :  { %3386 = vmatpush.msra.mxu2 %v2974_v38  ;;  %3318 = vmatpush.msrb.mxu3 %v3033_v8  ;;  %v3491_v36 = vld [vmem:[%s7914_s11 + $0x1b0] sm:$0xff]  ;;  %v3489_v38 = vld [vmem:[%s7914_s11 + $0x1a0] sm:$0xff] }
 0x3c6   :  { %3356 = vmatmul.f32.gmra.mxu0 %v7450_v12  ;;  %3372 = vmatpush.msra.mxu1 %v2874_v62  ;;  %v2954_v12 = vld [vmem:[#allocation2 + $0x4f8] sm:$0xff]  ;;  %v3439_v8 = vld [vmem:[%s7914_s11 + $0x10] sm:$0xff] }
 0x3c7   :  { %3387 = vmatpush.msra.mxu2 %v2970_v39  ;;  %3319 = vmatpush.msrb.mxu3 %v3029_v4  ;;  %v3487_v62 = vld [vmem:[%s7914_s11 + $0x190] sm:$0xff]  ;;  %v3437_v39 = vld [vmem:[%s7914_s11] sm:$0xff] }
 0x3c8   :  { %3310 = vmatmul.f32.gmra.mxu2 %v7467_v31  ;;  %3373 = vmatpush.msra.mxu1 %v2870_v3  ;;  %v3485_v4 = vld [vmem:[%s7914_s11 + $0x180] sm:$0xff]  ;;  %v3468_v3 = vld [vmem:[%s7914_s11 + $0xf8] sm:$0xff] }
 0x3c9   :  { %3388 = vmatpush.msra.mxu2 %v2966_v40  ;;  %3320 = vmatpush.msrb.mxu3 %v3025_v26  ;;  %v3483_v40 = vld [vmem:[%s7914_s11 + $0x170] sm:$0xff] }
 0x3ca   :  { %3374 = vmatpush.msra.mxu1 %v2866_v41  ;;  %v3531_v26 = vld [vmem:[%s7914_s11 + $0x2f0] sm:$0xff]  ;;  %v3466_v41 = vld [vmem:[%s7914_s11 + $0xe8] sm:$0xff] }
 0x3cb   :  { %3389 = vmatpush.msra.mxu2 %v2962_v42  ;;  %3321 = vmatpush.msrb.mxu3 %v3021_v44  ;;  %v3481_v42 = vld [vmem:[%s7914_s11 + $0x160] sm:$0xff] }
 0x3cc   :  { %3375 = vmatpush.msra.mxu1 %v2862_v19  ;;  %3238 = vmatmul.f32.vlgmr.msra.gmra.mxu3 %v7477_v14  ;;  %v3529_v44 = vld [vmem:[%s7914_s11 + $0x2e0] sm:$0xff]  ;;  %v3464_v19 = vld [vmem:[%s7914_s11 + $0xd8] sm:$0xff] }
 0x3cd   :  { %3390 = vmatpush.msra.mxu2 %v2958_v50  ;;  %3322 = vmatpush.msrb.mxu3 %v3017_v49  ;;  %v3479_v50 = vld [vmem:[%s7914_s11 + $0x150] sm:$0xff] }
 0x3ce   :  { %3376 = vmatmul.f32.vlgmr.msra.gmra.mxu1 %v7453_v45  ;;  %v2934_v45 = vld [vmem:[#allocation2 + $0x458] sm:$0xff]  ;;  %v3527_v49 = vld [vmem:[%s7914_s11 + $0x2d0] sm:$0xff] }
 0x3cf   :  { %3391 = vmatpush.msra.mxu2 %v2954_v12  ;;  %3323 = vmatpush.msrb.mxu3 %v3013_v52  ;;  %v3462_v12 = vld [vmem:[%s7914_s11 + $0xc8] sm:$0xff]  ;;  %v3477_v52 = vld [vmem:[%s7914_s11 + $0x140] sm:$0xff] }
 0x3d0   :  { %3594 = vmatpush.msrb.mxu1 %v3499_v23  ;;  %v3438_v23 = vld [vmem:[%s7914_s11 + $0x8] sm:$0xff] }
 0x3d1   :  { %3392 = vmatpush.msra.mxu2 %v2950_v53  ;;  %3324 = vmatpush.msrb.mxu3 %v3009_v55  ;;  %v3525_v53 = vld [vmem:[%s7914_s11 + $0x2c0] sm:$0xff]  ;;  %v3460_v55 = vld [vmem:[%s7914_s11 + $0xb8] sm:$0xff] }
 0x3d2   :  { %3595 = vmatpush.msrb.mxu1 %v3497_v61  ;;  %v3486_v61 = vld [vmem:[%s7914_s11 + $0x188] sm:$0xff] }
 0x3d3   :  { %3393 = vmatpush.msra.mxu2 %v2946_v27  ;;  %3325 = vmatpush.msrb.mxu3 %v3005_v22  ;;  %v3475_v27 = vld [vmem:[%s7914_s11 + $0x130] sm:$0xff] }
 0x3d4   :  { %3241 = vmatmul.f32.gmra.mxu3 %v7482_v47  ;;  %3596 = vmatpush.msrb.mxu1 %v3495_v48  ;;  %v3523_v22 = vld [vmem:[%s7914_s11 + $0x2b0] sm:$0xff] }
 0x3d5   :  { %3394 = vmatpush.msra.mxu2 %v2942_v6  ;;  %3326 = vmatpush.msrb.mxu3 %v3001_v56  ;;  %v3458_v6 = vld [vmem:[%s7914_s11 + $0xa8] sm:$0xff]  ;;  %v3473_v56 = vld [vmem:[%s7914_s11 + $0x120] sm:$0xff]  ;;  %v3563_v48 = vld [vmem:[%s7914_s11 + $0x3f0] sm:$0xff] }
 0x3d6   :  { %3379 = vmatmul.f32.gmra.mxu1 %v7458_v24  ;;  %v3038_v24 = vld [vmem:[#allocation2 + $0x798] sm:$0xff] }
 0x3d7   :  { %3395 = vmatpush.msra.mxu2 %v2938_v57  ;;  %3327 = vmatpush.msrb.mxu3 %v2997_v58  ;;  %v3521_v57 = vld [vmem:[%s7914_s11 + $0x2a0] sm:$0xff]  ;;  %v3456_v58 = vld [vmem:[%s7914_s11 + $0x98] sm:$0xff] }
 0x3d9   :  { %3396 = vmatpush.msra.mxu2 %v2934_v45  ;;  %3328 = vmatpush.msrb.mxu3 %v2993_v59  ;;  %v3471_v45 = vld [vmem:[%s7914_s11 + $0x110] sm:$0xff] }
 0x3da   :  { %v3519_v59 = vld [vmem:[%s7914_s11 + $0x290] sm:$0xff] }
 0x3db   :  { %3397 = vmatpush.msra.mxu2 %v2930_v60  ;;  %3329 = vmatpush.msrb.mxu3 %v2989_v43  ;;  %v3454_v60 = vld [vmem:[%s7914_s11 + $0x88] sm:$0xff]  ;;  %v3469_v43 = vld [vmem:[%s7914_s11 + $0x100] sm:$0xff] }
 0x3dc   :  { %3330 = vmatmul.f32.vlgmr.msrb.gmra.mxu3 %v7477_v14 }
 0x3dd   :  { %3406 = vmatpush.msra.mxu3 %v3050_v9  ;;  %3398 = vmatpush.msra.mxu2 %v2926_v30  ;;  %v3517_v9 = vld [vmem:[%s7914_s11 + $0x280] sm:$0xff]  ;;  %v3452_v30 = vld [vmem:[%s7914_s11 + $0x78] sm:$0xff] }
 0x3de   :  { %3399 = vmatmul.f32.vlgmr.msra.gmra.mxu2 %v7462_v7  ;;  %v3010_v7 = vld [vmem:[#allocation2 + $0x6b8] sm:$0xff] }
 0x3df   :  { %3407 = vmatpush.msra.mxu3 %v3046_v63  ;;  %3617 = vmatpush.msrb.mxu2 %v3531_v26  ;;  %v3500_v63 = vld [vmem:[%s7914_s11 + $0x1f8] sm:$0xff] }
 0x3e1   :  { %3408 = vmatpush.msra.mxu3 %v3042_v1  ;;  %3618 = vmatpush.msrb.mxu2 %v3529_v44  ;;  %v3515_v1 = vld [vmem:[%s7914_s11 + $0x270] sm:$0xff] }
 0x3e3   :  { %3409 = vmatpush.msra.mxu3 %v3038_v24  ;;  %3619 = vmatpush.msrb.mxu2 %v3527_v49  ;;  %v3450_v24 = vld [vmem:[%s7914_s11 + $0x68] sm:$0xff]  ;;  %v3524_v49 = vld [vmem:[%s7914_s11 + $0x2b8] sm:$0xff] }
 0x3e4   :  { %3333 = vmatmul.f32.gmra.mxu3 %v7482_v47 }
 0x3e5   :  { %3410 = vmatpush.msra.mxu3 %v3034_v2  ;;  %3620 = vmatpush.msrb.mxu2 %v3525_v53  ;;  %v3498_v2 = vld [vmem:[%s7914_s11 + $0x1e8] sm:$0xff] }
 0x3e6   :  { %3402 = vmatmul.f32.gmra.mxu2 %v7467_v31  ;;  %v3465_v31 = vld [vmem:[%s7914_s11 + $0xe0] sm:$0xff] }
 0x3e7   :  { %3411 = vmatpush.msra.mxu3 %v3030_v5  ;;  %3572 = vmatpush.msrb.mxu0 %v3465_v31  ;;  %v3513_v5 = vld [vmem:[%s7914_s11 + $0x260] sm:$0xff]  ;;  %v3507_v31 = vld [vmem:[%s7914_s11 + $0x230] sm:$0xff] }
 0x3e8   :  { %3621 = vmatpush.msrb.mxu2 %v3523_v22  ;;  %v3522_v22 = vld [vmem:[%s7914_s11 + $0x2a8] sm:$0xff] }
 0x3e9   :  { %3412 = vmatpush.msra.mxu3 %v3026_v10  ;;  %3573 = vmatpush.msrb.mxu0 %v3463_v0  ;;  %v3448_v10 = vld [vmem:[%s7914_s11 + $0x58] sm:$0xff] }
 0x3ea   :  { %3622 = vmatpush.msrb.mxu2 %v3521_v57 }
 0x3eb   :  { %3413 = vmatpush.msra.mxu3 %v3022_v11  ;;  %3574 = vmatpush.msrb.mxu0 %v3461_v54  ;;  %v3496_v11 = vld [vmem:[%s7914_s11 + $0x1d8] sm:$0xff]  ;;  %v3505_v54 = vld [vmem:[%s7914_s11 + $0x220] sm:$0xff] }
 0x3ec   :  { %3623 = vmatpush.msrb.mxu2 %v3519_v59  ;;  %v3520_v59 = vld [vmem:[%s7914_s11 + $0x298] sm:$0xff] }
 0x3ed   :  { %3414 = vmatpush.msra.mxu3 %v3018_v25  ;;  %3575 = vmatpush.msrb.mxu0 %v3459_v20  ;;  %v3511_v25 = vld [vmem:[%s7914_s11 + $0x250] sm:$0xff]  ;;  %v7698_v20 = vld [vmem:[%s7913_s10] sm:$0xf] }
 0x3ee   :  { %3624 = vmatpush.msrb.mxu2 %v3517_v9  ;;  %v3518_v9 = vld [vmem:[%s7914_s11 + $0x288] sm:$0xff] }
 0x3ef   :  { %3415 = vmatpush.msra.mxu3 %v3014_v13  ;;  %3576 = vmatpush.msrb.mxu0 %v3457_v51  ;;  %v3446_v13 = vld [vmem:[%s7914_s11 + $0x48] sm:$0xff] }
 0x3f0   :  { %3625 = vmatpush.msrb.mxu2 %v3515_v1  ;;  %v3547_v1 = vld [vmem:[%s7914_s11 + $0x370] sm:$0xff] }
 0x3f1   :  { %3416 = vmatpush.msra.mxu3 %v3010_v7  ;;  %3577 = vmatpush.msrb.mxu0 %v3455_v21  ;;  %v3494_v7 = vld [vmem:[%s7914_s11 + $0x1c8] sm:$0xff]  ;;  %v3440_v21 = vld [vmem:[%s7914_s11 + $0x18] sm:$0xff] }
 0x3f2   :  { %3626 = vmatpush.msrb.mxu2 %v3513_v5  ;;  %v3054_v5 = vperm.slane %v7698_v20, 1 }
 0x3f3   :  { %3417 = vmatpush.msra.mxu3 %v3006_v46  ;;  %3578 = vmatpush.msrb.mxu0 %v3453_v28  ;;  %v3509_v46 = vld [vmem:[%s7914_s11 + $0x240] sm:$0xff]  ;;  %v3488_v28 = vld [vmem:[%s7914_s11 + $0x198] sm:$0xff] }
 0x3f4   :  { %3627 = vmatpush.msrb.mxu2 %v3511_v25 }
 0x3f5   :  { %3418 = vmatpush.msra.mxu3 %v3002_v32  ;;  %v3444_v32 = vld [vmem:[%s7914_s11 + $0x38] sm:$0xff] }
 0x3f6   :  { %3628 = vmatpush.msrb.mxu2 %v3509_v46  ;;  %v3543_v46 = vld [vmem:[%s7914_s11 + $0x350] sm:$0xff] }
 0x3f7   :  { %3419 = vmatpush.msra.mxu3 %v2998_v16  ;;  %v3078_v16 = vpop.f32.mrf.mxu0 }
 0x3f8   :  { %3629 = vmatpush.msrb.mxu2 %v3507_v31  ;;  %v3512_v31 = vld [vmem:[%s7914_s11 + $0x258] sm:$0xff] }
 0x3f9   :  { %3420 = vmatpush.msra.mxu3 %v2994_v17  ;;  %v3442_v17 = vld [vmem:[%s7914_s11 + $0x28] sm:$0xff] }
 0x3fa   :  { %3630 = vmatpush.msrb.mxu2 %v3505_v54  ;;  %v3539_v54 = vld [vmem:[%s7914_s11 + $0x330] sm:$0xff] }
 0x3fb   :  { %3421 = vmatpush.msra.mxu3 %v2990_v18  ;;  %v3490_v18 = vld [vmem:[%s7914_s11 + $0x1a8] sm:$0xff] }
 0x3fc   :  { %3422 = vmatmul.f32.vlgmr.msra.gmra.mxu3 %v7477_v14  ;;  %v3451_v14 = vld [vmem:[%s7914_s11 + $0x70] sm:$0xff] }
 0x3fd   :  { %3579 = vmatpush.msrb.mxu0 %v3451_v14  ;;  %v3503_v14 = vld [vmem:[%s7914_s11 + $0x210] sm:$0xff]  ;;  %3640 = vmatpush.msrb.mxu3 %v3563_v48 }
 0x3fe   :  { %3631 = vmatpush.msrb.mxu2 %v3503_v14  ;;  %v3537_v14 = vld [vmem:[%s7914_s11 + $0x320] sm:$0xff]  ;;  %v3535_v48 = vld [vmem:[%s7914_s11 + $0x310] sm:$0xff] }
 0x3ff   :  { %3580 = vmatpush.msrb.mxu0 %v3449_v29  ;;  %v3501_v29 = vld [vmem:[%s7914_s11 + $0x200] sm:$0xff] }
 0x400   :  { %3632 = vmatpush.msrb.mxu2 %v3501_v29 }
 0x401   :  { %3581 = vmatpush.msrb.mxu0 %v3447_v33  ;;  %v3053_v33 = vperm.slane %v7698_v20, 0 }
 0x403   :  { %3582 = vmatpush.msrb.mxu0 %v3445_v34  ;;  %v3484_v34 = vld [vmem:[%s7914_s11 + $0x178] sm:$0xff] }
 0x404   :  { %3425 = vmatmul.f32.gmra.mxu3 %v7482_v47  ;;  %v3493_v47 = vld [vmem:[%s7914_s11 + $0x1c0] sm:$0xff] }
 0x405   :  { %3597 = vmatpush.msrb.mxu1 %v3493_v47  ;;  %3583 = vmatpush.msrb.mxu0 %v3443_v35  ;;  %v3532_v47 = vld [vmem:[%s7914_s11 + $0x2f8] sm:$0xff]  ;;  %v3561_v35 = vld [vmem:[%s7914_s11 + $0x3e0] sm:$0xff] }
 0x406   :  { %3709 = vmatpush.msra.mxu2 %v3532_v47  ;;  %3641 = vmatpush.msrb.mxu3 %v3561_v35  ;;  %v3504_v35 = vld [vmem:[%s7914_s11 + $0x218] sm:$0xff] }
 0x407   :  { %3598 = vmatpush.msrb.mxu1 %v3491_v36  ;;  %3584 = vmatpush.msrb.mxu0 %v3441_v37  ;;  %v3081_v36 = vpop.f32.mrf.mxu0  ;;  %v3482_v37 = vld [vmem:[%s7914_s11 + $0x168] sm:$0xff] }
 0x408   :  { %v3101_v0 = vpop.f32.mrf.mxu1  ;;  %v3082_v57 = vadd.f32 %v3081_v36, %v3053_v33  ;;  %v3533_v36 = vld [vmem:[%s7914_s11 + $0x300] sm:$0xff] }
 0x409   :  { %3599 = vmatpush.msrb.mxu1 %v3489_v38  ;;  %3585 = vmatpush.msrb.mxu0 %v3439_v8  ;;  %v3530_v38 = vld [vmem:[%s7914_s11 + $0x2e8] sm:$0xff]  ;;  %v3079_v8 = vadd.f32 %v3078_v16, %v3053_v33  ;;  %v3541_v16 = vld [vmem:[%s7914_s11 + $0x340] sm:$0xff] }
 0x40a   :  { %3710 = vmatpush.msra.mxu2 %v3530_v38 }
 0x40b   :  { %3600 = vmatpush.msrb.mxu1 %v3487_v62  ;;  %3586 = vmatpush.msrb.mxu0 %v3437_v39  ;;  %v3559_v62 = vld [vmem:[%s7914_s11 + $0x3d0] sm:$0xff]  ;;  %v3102_v26 = vadd.f32 %v3101_v0, %v3079_v8  ;;  %v3510_v0 = vld [vmem:[%s7914_s11 + $0x248] sm:$0xff] }
 0x40c   :  { %3642 = vmatpush.msrb.mxu3 %v3559_v62  ;;  %v3502_v8 = vld [vmem:[%s7914_s11 + $0x208] sm:$0xff] }
 0x40d   :  { %3601 = vmatpush.msrb.mxu1 %v3485_v4  ;;  %3663 = vmatpush.msra.mxu0 %v3468_v3  ;;  %v3480_v4 = vld [vmem:[%s7914_s11 + $0x158] sm:$0xff]  ;;  %v3562_v62 = vld [vmem:[%s7914_s11 + $0x3e8] sm:$0xff] }
 0x40e   :  { %v3528_v3 = vld [vmem:[%s7914_s11 + $0x2d8] sm:$0xff] }
 0x40f   :  { %3602 = vmatpush.msrb.mxu1 %v3483_v40  ;;  %3664 = vmatpush.msra.mxu0 %v3466_v41  ;;  %v3557_v40 = vld [vmem:[%s7914_s11 + $0x3c0] sm:$0xff]  ;;  %v3478_v41 = vld [vmem:[%s7914_s11 + $0x148] sm:$0xff] }
 0x410   :  { %v3104_v39 = vpop.f32.mrf.mxu1  ;;  %3711 = vmatpush.msra.mxu2 %v3528_v3  ;;  %3643 = vmatpush.msrb.mxu3 %v3557_v40  ;;  %v3055_v3 = vperm.slane %v7698_v20, 2 }
 0x411   :  { %3603 = vmatpush.msrb.mxu1 %v3481_v42  ;;  %3665 = vmatpush.msra.mxu0 %v3464_v19  ;;  %v3526_v42 = vld [vmem:[%s7914_s11 + $0x2c8] sm:$0xff]  ;;  %v3555_v19 = vld [vmem:[%s7914_s11 + $0x3b0] sm:$0xff] }
 0x412   :  { %3712 = vmatpush.msra.mxu2 %v3526_v42  ;;  %3644 = vmatpush.msrb.mxu3 %v3555_v19 }
 0x413   :  { %3604 = vmatpush.msrb.mxu1 %v3479_v50  ;;  %3666 = vmatpush.msra.mxu0 %v3462_v12  ;;  %v3476_v50 = vld [vmem:[%s7914_s11 + $0x138] sm:$0xff] }
 0x414   :  { %3713 = vmatpush.msra.mxu2 %v3524_v49 }
 0x415   :  { %3605 = vmatpush.msrb.mxu1 %v3477_v52  ;;  %3667 = vmatpush.msra.mxu0 %v3460_v55  ;;  %v3553_v52 = vld [vmem:[%s7914_s11 + $0x3a0] sm:$0xff] }
 0x416   :  { %3645 = vmatpush.msrb.mxu3 %v3553_v52  ;;  %3714 = vmatpush.msra.mxu2 %v3522_v22 }
 0x417   :  { %3606 = vmatpush.msrb.mxu1 %v3475_v27  ;;  %3668 = vmatpush.msra.mxu0 %v3458_v6  ;;  %v3474_v27 = vld [vmem:[%s7914_s11 + $0x128] sm:$0xff] }
 0x418   :  { %3715 = vmatpush.msra.mxu2 %v3520_v59 }
 0x419   :  { %3607 = vmatpush.msrb.mxu1 %v3473_v56  ;;  %3669 = vmatpush.msra.mxu0 %v3456_v58  ;;  %v3551_v56 = vld [vmem:[%s7914_s11 + $0x390] sm:$0xff]  ;;  %v3170_v58 = vpop.f32.mrf.mxu0 }
 0x41a   :  { %3646 = vmatpush.msrb.mxu3 %v3551_v56  ;;  %3716 = vmatpush.msra.mxu2 %v3518_v9 }
 0x41b   :  { %3608 = vmatpush.msrb.mxu1 %v3471_v45  ;;  %3670 = vmatpush.msra.mxu0 %v3454_v60  ;;  %v3472_v45 = vld [vmem:[%s7914_s11 + $0x118] sm:$0xff]  ;;  %v3549_v60 = vld [vmem:[%s7914_s11 + $0x380] sm:$0xff] }
 0x41c   :  { %3647 = vmatpush.msrb.mxu3 %v3549_v60 }
 0x41d   :  { %3609 = vmatpush.msrb.mxu1 %v3469_v43  ;;  %3671 = vmatpush.msra.mxu0 %v3452_v30  ;;  %v3470_v43 = vld [vmem:[%s7914_s11 + $0x108] sm:$0xff]  ;;  %v3105_v30 = vadd.f32 %v3104_v39, %v3082_v57 }
 0x41e   :  { %v3124_v51 = vpop.f32.mrf.mxu2  ;;  %3648 = vmatpush.msrb.mxu3 %v3547_v1 }
 0x41f   :  { %3686 = vmatpush.msra.mxu1 %v3500_v63  ;;  %3672 = vmatpush.msra.mxu0 %v3450_v24  ;;  %v3125_v12 = vadd.f32 %v3124_v51, %v3102_v26  ;;  %v3193_v63 = vpop.f32.mrf.mxu1  ;;  %v3516_v24 = vld [vmem:[%s7914_s11 + $0x278] sm:$0xff] }
 0x420   :  { %3717 = vmatpush.msra.mxu2 %v3516_v24  ;;  %v3508_v51 = vld [vmem:[%s7914_s11 + $0x238] sm:$0xff] }
 0x421   :  { %3687 = vmatpush.msra.mxu1 %v3498_v2  ;;  %3673 = vmatpush.msra.mxu0 %v3448_v10  ;;  %v3545_v2 = vld [vmem:[%s7914_s11 + $0x360] sm:$0xff]  ;;  %v3560_v26 = vld [vmem:[%s7914_s11 + $0x3d8] sm:$0xff] }
 0x422   :  { %3649 = vmatpush.msrb.mxu3 %v3545_v2  ;;  %v3544_v24 = vld [vmem:[%s7914_s11 + $0x358] sm:$0xff] }
 0x423   :  { %3688 = vmatpush.msra.mxu1 %v3496_v11  ;;  %3674 = vmatpush.msra.mxu0 %v3446_v13 }
 0x424   :  { %3650 = vmatpush.msrb.mxu3 %v3543_v46 }
 0x425   :  { %3689 = vmatpush.msra.mxu1 %v3494_v7  ;;  %3675 = vmatpush.msra.mxu0 %v3444_v32  ;;  %v3514_v7 = vld [vmem:[%s7914_s11 + $0x268] sm:$0xff]  ;;  %v3171_v32 = vadd.f32 %v3170_v58, %v3054_v5 }
 0x426   :  { %3718 = vmatpush.msra.mxu2 %v3514_v7  ;;  %3651 = vmatpush.msrb.mxu3 %v3541_v16  ;;  %v3550_v58 = vld [vmem:[%s7914_s11 + $0x388] sm:$0xff] }
 0x427   :  { %3690 = vmatpush.msra.mxu1 %v3492_v15  ;;  %3676 = vmatpush.msra.mxu0 %v3442_v17  ;;  %v3127_v44 = vpop.f32.mrf.mxu2  ;;  %v3173_v17 = vpop.f32.mrf.mxu0  ;;  %v3534_v7 = vld [vmem:[%s7914_s11 + $0x308] sm:$0xff] }
 0x428   :  { %v3128_v10 = vadd.f32 %v3127_v44, %v3105_v30  ;;  %3719 = vmatpush.msra.mxu2 %v3512_v31  ;;  %3652 = vmatpush.msrb.mxu3 %v3539_v54  ;;  %v3546_v30 = vld [vmem:[%s7914_s11 + $0x368] sm:$0xff] }
 0x429   :  { %3691 = vmatpush.msra.mxu1 %v3490_v18  ;;  %3677 = vmatpush.msra.mxu0 %v3440_v21  ;;  %v3194_v18 = vadd.f32 %v3193_v63, %v3171_v32  ;;  %v3196_v21 = vpop.f32.mrf.mxu1  ;;  %v3056_v32 = vperm.slane %v7698_v20, 3 }
 0x42a   :  { %3720 = vmatpush.msra.mxu2 %v3510_v0  ;;  %3653 = vmatpush.msrb.mxu3 %v3537_v14 }
 0x42b   :  { %3692 = vmatpush.msra.mxu1 %v3488_v28  ;;  %3678 = vmatpush.msra.mxu0 %v3438_v23 }
 0x42c   :  { %3721 = vmatpush.msra.mxu2 %v3508_v51  ;;  %3654 = vmatpush.msrb.mxu3 %v3535_v48 }
 0x42d   :  { %3693 = vmatpush.msra.mxu1 %v3486_v61  ;;  %v3506_v61 = vld [vmem:[%s7914_s11 + $0x228] sm:$0xff] }
 0x42e   :  { %3722 = vmatpush.msra.mxu2 %v3506_v61  ;;  %3655 = vmatpush.msrb.mxu3 %v3533_v36 }
 0x42f   :  { %3694 = vmatpush.msra.mxu1 %v3484_v34  ;;  %v3174_v34 = vadd.f32 %v3173_v17, %v3054_v5  ;;  %v3262_v39 = vpop.f32.mrf.mxu0  ;;  %v3542_v5 = vld [vmem:[%s7914_s11 + $0x348] sm:$0xff] }
 0x430   :  { %v3216_v11 = vpop.f32.mrf.mxu2  ;;  %3723 = vmatpush.msra.mxu2 %v3504_v35  ;;  %v3263_v49 = vadd.f32 %v3262_v39, %v3055_v3 }
 0x431   :  { %3695 = vmatpush.msra.mxu1 %v3482_v37  ;;  %v3217_v28 = vadd.f32 %v3216_v11, %v3194_v18  ;;  %v3564_v37 = vld [vmem:[%s7914_s11 + $0x3f8] sm:$0xff]  ;;  %v3197_v38 = vadd.f32 %v3196_v21, %v3174_v34 }
 0x432   :  { %3732 = vmatpush.msra.mxu3 %v3564_v37  ;;  %3724 = vmatpush.msra.mxu2 %v3502_v8  ;;  %v3540_v11 = vld [vmem:[%s7914_s11 + $0x338] sm:$0xff] }
 0x433   :  { %3696 = vmatpush.msra.mxu1 %v3480_v4 }
 0x434   :  { %3733 = vmatpush.msra.mxu3 %v3562_v62 }
 0x435   :  { %3697 = vmatpush.msra.mxu1 %v3478_v41  ;;  %v3285_v41 = vpop.f32.mrf.mxu1 }
 0x436   :  { %3734 = vmatpush.msra.mxu3 %v3560_v26  ;;  %v3286_v52 = vadd.f32 %v3285_v41, %v3263_v49 }
 0x437   :  { %3698 = vmatpush.msra.mxu1 %v3476_v50  ;;  %v3558_v50 = vld [vmem:[%s7914_s11 + $0x3c8] sm:$0xff] }
 0x438   :  { %3735 = vmatpush.msra.mxu3 %v3558_v50 }
 0x439   :  { %3699 = vmatpush.msra.mxu1 %v3474_v27  ;;  %v3219_v29 = vpop.f32.mrf.mxu2  ;;  %v3265_v27 = vpop.f32.mrf.mxu0 }
 0x43a   :  { %v3220_v4 = vadd.f32 %v3219_v29, %v3197_v38 }
 0x43b   :  { %3700 = vmatpush.msra.mxu1 %v3472_v45  ;;  %v3266_v45 = vadd.f32 %v3265_v27, %v3055_v3 }
 0x43d   :  { %3701 = vmatpush.msra.mxu1 %v3470_v43  ;;  %v3288_v57 = vpop.f32.mrf.mxu1  ;;  %v3548_v43 = vld [vmem:[%s7914_s11 + $0x378] sm:$0xff] }
 0x43e   :  { %v3147_v53 = vpop.f32.mrf.mxu3  ;;  %v3289_v9 = vadd.f32 %v3288_v57, %v3266_v45 }
 0x43f   :  { %v7767_v55 = vadd.f32 %v3147_v53, %v3125_v12  ;;  %v3556_v12 = vld [vmem:[%s7914_s11 + $0x3b8] sm:$0xff]  ;;  %v3554_v53 = vld [vmem:[%s7914_s11 + $0x3a8] sm:$0xff] }
 0x440   :  { %3736 = vmatpush.msra.mxu3 %v3556_v12 }
 0x441   :  { %v3429_v6 = vmax.f32 %v7767_v55, 0.0  ;;  %v3354_v46 = vpop.f32.mrf.mxu0 }
 0x442   :  { %3737 = vmatpush.msra.mxu3 %v3554_v53  ;;  %v3355_v16 = vadd.f32 %v3354_v46, %v3056_v32 }
 0x443   :  { %3587 = vmatmul.f32.vlgmr.msrb.gmra.mxu0 %v3429_v6  ;;  %v3308_v44 = vpop.f32.mrf.mxu2 }
 0x444   :  { %v3309_v55 = vadd.f32 %v3308_v44, %v3286_v52 }
 0x447   :  { %v3150_v25 = vpop.f32.mrf.mxu3 }
 0x448   :  { %v3151_v13 = vadd.f32 %v3150_v25, %v3128_v10  ;;  %v3538_v25 = vld [vmem:[%s7914_s11 + $0x328] sm:$0xff] }
 0x449   :  { %v3357_v18 = vpop.f32.mrf.mxu0 }
 0x44a   :  { %v3433_v15 = vmax.f32 %v3151_v13, 0.0  ;;  %v3536_v13 = vld [vmem:[%s7914_s11 + $0x318] sm:$0xff] }
 0x44b   :  { %v3311_v60 = vpop.f32.mrf.mxu2 }
 0x44c   :  { %3590 = vmatmul.f32.gmra.mxu0 %v3433_v15  ;;  %v3312_v63 = vadd.f32 %v3311_v60, %v3289_v9 }
 0x44f   :  { %v3239_v23 = vpop.f32.mrf.mxu3 }
 0x450   :  { %v3240_v33 = vadd.f32 %v3239_v23, %v3217_v28  ;;  %v3358_v28 = vadd.f32 %v3357_v18, %v3056_v32 }
 0x452   :  { %v3430_v47 = vmax.f32 %v3240_v33, 0.0 }
 0x454   :  { %3610 = vmatmul.f32.vlgmr.msrb.gmra.mxu1 %v3430_v47  ;;  %3679 = vmatmul.f32.vlgmr.msra.gmra.mxu0 %v3429_v6  ;;  %v3552_v6 = vld [vmem:[%s7914_s11 + $0x398] sm:$0xff] }
 0x455   :  { %3738 = vmatpush.msra.mxu3 %v3552_v6 }
 0x457   :  { %v3242_v40 = vpop.f32.mrf.mxu3  ;;  %3739 = vmatpush.msra.mxu3 %v3550_v58 }
 0x458   :  { %v3243_v42 = vadd.f32 %v3242_v40, %v3220_v4 }
 0x459   :  { %3740 = vmatpush.msra.mxu3 %v3548_v43 }
 0x45a   :  { %v3434_v19 = vmax.f32 %v3243_v42, 0.0 }
 0x45b   :  { %3741 = vmatpush.msra.mxu3 %v3546_v30 }
 0x45c   :  { %3613 = vmatmul.f32.gmra.mxu1 %v3434_v19  ;;  %3682 = vmatmul.f32.gmra.mxu0 %v3433_v15  ;;  %v3377_v15 = vpop.f32.mrf.mxu1 }
 0x45d   :  { %3742 = vmatpush.msra.mxu3 %v3544_v24  ;;  %v3378_v0 = vadd.f32 %v3377_v15, %v3355_v16 }
 0x45f   :  { %v3331_v22 = vpop.f32.mrf.mxu3  ;;  %3743 = vmatpush.msra.mxu3 %v3542_v5 }
 0x460   :  { %v3332_v56 = vadd.f32 %v3331_v22, %v3309_v55 }
 0x461   :  { %3744 = vmatpush.msra.mxu3 %v3540_v11  ;;  %v3400_v31 = vpop.f32.mrf.mxu2 }
 0x462   :  { %v3431_v59 = vmax.f32 %v3332_v56, 0.0  ;;  %v3401_v17 = vadd.f32 %v3400_v31, %v3378_v0 }
 0x463   :  { %3745 = vmatpush.msra.mxu3 %v3538_v25 }
 0x464   :  { %3702 = vmatmul.f32.vlgmr.msra.gmra.mxu1 %v3430_v47  ;;  %3633 = vmatmul.f32.vlgmr.msrb.gmra.mxu2 %v3431_v59  ;;  %v3380_v21 = vpop.f32.mrf.mxu1  ;;  %v3565_v47 = vld [vmem:[%s7915_s12] sm:$0x3]  ;;  %s3839_s12 = smov [#allocation5]  }
 0x465   :  { %3746 = vmatpush.msra.mxu3 %v3536_v13  ;;  %v3381_v61 = vadd.f32 %v3380_v21, %v3358_v28  ;;  %v3567_v37 = vperm.slane %v3565_v47, 0  ;;  %s3763_s9 = sshll.u32 %s3839_s12, 4  ;;  %s3764_s9 = int_to_ptr.vmem [resolvable:$true] %s3763_s9 }
 0x467   :  { %v3334_v1 = vpop.f32.mrf.mxu3  ;;  %3747 = vmatpush.msra.mxu3 %v3534_v7 }
 0x468   :  { %v3335_v2 = vadd.f32 %v3334_v1, %v3312_v63 }
 0x469   :  { %v3403_v23 = vpop.f32.mrf.mxu2 }
 0x46a   :  { %v3435_v10 = vmax.f32 %v3335_v2, 0.0  ;;  %v3404_v29 = vadd.f32 %v3403_v23, %v3381_v61 }
 0x46c   :  { %3705 = vmatmul.f32.gmra.mxu1 %v3434_v19  ;;  %3636 = vmatmul.f32.gmra.mxu2 %v3435_v10  ;;  %v3568_v19 = vperm.slane %v3565_v47, 1 }
 0x474   :  { %3725 = vmatmul.f32.vlgmr.msra.gmra.mxu2 %v3431_v59 }
 0x47c   :  { %3728 = vmatmul.f32.gmra.mxu2 %v3435_v10 }
 0x47f   :  { %v3423_v54 = vpop.f32.mrf.mxu3 }
 0x480   :  { %v3424_v51 = vadd.f32 %v3423_v54, %v3401_v17 }
 0x482   :  { %v3432_v14 = vmax.f32 %v3424_v51, 0.0 }
 0x484   :  { %3656 = vmatmul.f32.vlgmr.msrb.gmra.mxu3 %v3432_v14 }
 0x487   :  { %v3426_v33 = vpop.f32.mrf.mxu3 }
 0x488   :  { %v3427_v20 = vadd.f32 %v3426_v33, %v3404_v29 }
 0x48a   :  { %v3436_v48 = vmax.f32 %v3427_v20, 0.0 }
 0x48c   :  { %3659 = vmatmul.f32.gmra.mxu3 %v3436_v48 }
 0x494   :  { %3748 = vmatmul.f32.vlgmr.msra.gmra.mxu3 %v3432_v14 }
 0x49c   :  { %3751 = vmatmul.f32.gmra.mxu3 %v3436_v48 }
 0x4c0   :  { %v3588_v34 = vpop.f32.mrf.mxu0 }
 0x4c1   :  { %v3589_v38 = vadd.f32 %v3588_v34, %v3567_v37 }
 0x4c9   :  { %v3591_v8 = vpop.f32.mrf.mxu0 }
 0x4ca   :  { %v3592_v41 = vadd.f32 %v3591_v8, %v3567_v37 }
 0x4d1   :  { %v3611_v35 = vpop.f32.mrf.mxu1  ;;  %v3680_v44 = vpop.f32.mrf.mxu0 }
 0x4d2   :  { %v3612_v62 = vadd.f32 %v3611_v35, %v3589_v38  ;;  %v3681_v55 = vadd.f32 %v3680_v44, %v3568_v19 }
 0x4d9   :  { %v3614_v39 = vpop.f32.mrf.mxu1  ;;  %v3683_v6 = vpop.f32.mrf.mxu0 }
 0x4da   :  { %v3615_v42 = vadd.f32 %v3614_v39, %v3592_v41  ;;  %v3684_v45 = vadd.f32 %v3683_v6, %v3568_v19 }
 0x4e1   :  { %v3703_v49 = vpop.f32.mrf.mxu1 }
 0x4e2   :  { %v3704_v27 = vadd.f32 %v3703_v49, %v3681_v55 }
 0x4e7   :  { %v3634_v36 = vpop.f32.mrf.mxu2 }
 0x4e8   :  { %v3635_v4 = vadd.f32 %v3634_v36, %v3612_v62 }
 0x4e9   :  { %v3706_v58 = vpop.f32.mrf.mxu1 }
 0x4ea   :  { %v3707_v60 = vadd.f32 %v3706_v58, %v3684_v45 }
 0x4ef   :  { %v3637_v3 = vpop.f32.mrf.mxu2 }
 0x4f0   :  { %v3638_v50 = vadd.f32 %v3637_v3, %v3615_v42 }
 0x4f7   :  { %v3726_v53 = vpop.f32.mrf.mxu2 }
 0x4f8   :  { %v3727_v22 = vadd.f32 %v3726_v53, %v3704_v27 }
 0x4ff   :  { %v3729_v59 = vpop.f32.mrf.mxu2 }
 0x500   :  { %v3730_v43 = vadd.f32 %v3729_v59, %v3707_v60 }
 0x507   :  { %v3657_v40 = vpop.f32.mrf.mxu3 }
 0x508   :  { %v3658_v26 = vadd.f32 %v3657_v40, %v3635_v4 }
 0x50a   :  { %3755 = vst [vmem:[#allocation5] sm:$0xff] %v3658_v26 }
 0x50f   :  { %v3660_v12 = vpop.f32.mrf.mxu3 }
 0x510   :  { %v3661_v52 = vadd.f32 %v3660_v12, %v3638_v50 }
 0x512   :  { %3757 = vst [vmem:[#allocation5 + $0x10] sm:$0xff] %v3661_v52 }
 0x517   :  { %v3749_v56 = vpop.f32.mrf.mxu3 }
 0x518   :  { %v3750_v57 = vadd.f32 %v3749_v56, %v3727_v22 }
 0x51a   :  { %3756 = vst [vmem:[#allocation5 + $0x8] sm:$0xff] %v3750_v57 }
 0x51f   :  { %v3752_v9 = vpop.f32.mrf.mxu3 }
 0x520   :  { %v3753_v30 = vadd.f32 %v3752_v9, %v3730_v43 }
 0x522   :  { %3758 = vst [vmem:[#allocation5 + $0x18] sm:$0xff] %v3753_v30 }
 0x523   :  { %3771 = dma.vmem_to_hbm [thread:$0]  %s3764_s9, 512, %s3766_s5, [#allocation4], %s3840_s22, %s3840_s22, %s3841_s23  }
 0x524   :  { %3834 = dma.done.wait [#allocation4], 512  }
 0x525   :  { %3835 = vsyncadd [#allocation4], 4294966784 }
 0x526   :  { %3776 = vsyncpa [#allocation3], 1 }
 0x527   :  { %3777 = vsyncpa [#allocation4], 1 }

</bundles_post_ra>
